<compile_context>
chip_gen: v6e
topology: v6e:2x2x1
jax: 0.10.0
libtpu: 0.0.40
codegen_flags: <defaults>
</compile_context>

<pallas_src>
import functools

import jax
import jax.numpy as jnp
from jax.experimental import pallas as pl
from jax.experimental.pallas import tpu as pltpu

# ---------------- model hyper-parameters (small, consistent with the forward) ------
NUM_CLASSES = 5
NUM_QUERIES = 8
HIDDEN_DIM = 32
NHEAD = 4
NUM_ENC_LAYERS = 2
NUM_DEC_LAYERS = 2
DIM_FFN = 64
BACKBONE_C1 = 8              # stride-4 feature channels (stand-in backbone)
BACKBONE_OUT = 16            # last-level channels, scaled down
LANE = 128

# lane offsets inside the packed weight slabs (128-aligned so in-kernel slices never
# straddle a lane tile)
E_QKV, E_WO, E_W1 = 0, 128, 256                       # encoder slab, width 384
ENC_W_LANES = 384
D_QKV, D_WO, D_CAQ, D_CKV, D_CWO, D_W1, D_CLS = 0, 128, 256, 384, 512, 640, 768
DEC_W_LANES = 896


# ============================== in-kernel math helpers ==============================
def _mm(a_bf16, w_bf16):
    """MXU matmul on bf16 operands with f32 accumulation."""
    return jnp.dot(a_bf16, w_bf16, preferred_element_type=jnp.float32)


def _layer_norm(x, g, b):
    mu = jnp.mean(x, axis=-1, keepdims=True)
    xc = x - mu
    var = jnp.mean(xc * xc, axis=-1, keepdims=True)
    return xc * jax.lax.rsqrt(var + 1e-5) * g + b


def _softmax(s):
    s = s - jnp.max(s, axis=-1, keepdims=True)
    p = jnp.exp(s)
    return p * pl.reciprocal(jnp.sum(p, axis=-1, keepdims=True), approx=True)


def _attention(q, k, v, wo_bf16, bo, *, batch, nhead):
    """Multi-head attention over a batch-flattened block.

    q: (B*Lq, D), k/v: (B*Lk, D) f32 (Q already scaled via packed weights).
    Scores/softmax/AV run per (batch, head); head outputs are lane-concatenated and a
    single matmul applies the output projection for all batches at once.
    """
    d = q.shape[-1]
    dh = d // nhead
    lq = q.shape[0] // batch
    lk = k.shape[0] // batch
    qb = q.astype(jnp.bfloat16)
    kb = k.astype(jnp.bfloat16)
    vb = v.astype(jnp.bfloat16)
    outs = []
    for b in range(batch):                              # unrolled at trace time (B=2)
        q_b = qb[b * lq:(b + 1) * lq]
        k_b = kb[b * lk:(b + 1) * lk]
        v_b = vb[b * lk:(b + 1) * lk]
        heads = []
        for h in range(nhead):                          # unrolled (nhead=4)
            sl = slice(h * dh, (h + 1) * dh)
            s = jax.lax.dot_general(q_b[:, sl], k_b[:, sl], (((1,), (1,)), ((), ())),
                                    preferred_element_type=jnp.float32)
            p = _softmax(s)
            heads.append(jnp.dot(p.astype(jnp.bfloat16), v_b[:, sl],
                                 preferred_element_type=jnp.float32))
        outs.append(jnp.concatenate(heads, axis=-1))    # (Lq, D)
    o = jnp.concatenate(outs, axis=0)                   # (B*Lq, D)
    return _mm(o.astype(jnp.bfloat16), wo_bf16) + bo    # single projection matmul


# ============================== Pallas kernels ======================================
def _backbone_kernel(xp_ref, w1_ref, wm_ref, w2_ref, wp_ref, vec_ref,
                     xtok_ref, pix_ref):
    """Fused stand-in backbone: stride-4 patchify conv (block-diag over the 4 sub
    patches of each stride-8 cell) + ReLU, mask-head pixel embedding, stride-2 2x2
    conv + ReLU, and the 1x1 hidden-dim projection - one kernel, four matmuls."""
    vec = vec_ref[...]
    xpb = xp_ref[...].astype(jnp.bfloat16)                                 # (B*S, 192)
    f = jnp.maximum(_mm(xpb, w1_ref[...]) + vec[0:1, 0:4 * BACKBONE_C1], 0.0)
    fb = f.astype(jnp.bfloat16)                                            # (B*S, 32)
    pix_ref[...] = _mm(fb, wm_ref[...]) + vec[1:2, :]                      # (B*S, 4*D)
    x2 = jnp.maximum(_mm(fb, w2_ref[...]) + vec[2:3, 0:BACKBONE_OUT], 0.0)
    xtok_ref[...] = _mm(x2.astype(jnp.bfloat16), wp_ref[...]) + vec[3:4, 0:HIDDEN_DIM]


def _encoder_kernel(x_ref, pos_ref, wslab_ref, w2_ref, vec_ref, out_ref, *,
                    batch, nhead, d, dff):
    """One full encoder layer per grid step; grid = (layer,). Weights are shared
    across layers (same layer object in PyTorch) and stay VMEM-resident."""
    vec = vec_ref[...]

    @pl.when(pl.program_id(0) == 0)
    def _():
        out_ref[...] = x_ref[...]                       # carry <- encoder input

    src = out_ref[...] + pos_ref[...]                   # layer(memory + pos)
    qkv = _mm(src.astype(jnp.bfloat16), wslab_ref[:, E_QKV:E_QKV + 3 * d]) \
        + vec[0:1, 0:3 * d]
    a = _attention(qkv[:, 0:d], qkv[:, d:2 * d], qkv[:, 2 * d:3 * d],
                   wslab_ref[:, E_WO:E_WO + d], vec[1:2, 0:d],
                   batch=batch, nhead=nhead)
    src = _layer_norm(src + a, vec[2:3, 0:d], vec[3:4, 0:d])
    ff = jnp.maximum(_mm(src.astype(jnp.bfloat16), wslab_ref[:, E_W1:E_W1 + dff])
                     + vec[4:5, 0:dff], 0.0)
    ff = _mm(ff.astype(jnp.bfloat16), w2_ref[...]) + vec[5:6, 0:d]
    out_ref[...] = _layer_norm(src + ff, vec[6:7, 0:d], vec[7:8, 0:d])


def _decoder_kernel(qemb_ref, mem_ref, pix_ref, wslab_ref, w2_ref, vec_ref,
                    logits_ref, masks_ref, hs_scr, kv_scr, *,
                    batch, seq, nq, nhead, d, dff, mask_w):
    """One full decoder layer per grid step (grid = (layer,)).  The running query
    activation is carried in VMEM scratch; memory K/V is projected once at layer 0;
    class head and mask head run only on the last layer."""
    l = pl.program_id(0)
    vec = vec_ref[...]

    @pl.when(l == 0)
    def _():
        hs_scr[...] = jnp.zeros_like(hs_scr)            # tgt starts at zeros
        kv_scr[...] = _mm(mem_ref[...].astype(jnp.bfloat16),
                          wslab_ref[:, D_CKV:D_CKV + 2 * d]) + vec[5:6, 0:2 * d]

    tgt = hs_scr[...] + qemb_ref[...]                   # layer(hs + query_embed, mem)

    # --- self-attention + LN ---
    qkv = _mm(tgt.astype(jnp.bfloat16), wslab_ref[:, D_QKV:D_QKV + 3 * d]) \
        + vec[0:1, 0:3 * d]
    a = _attention(qkv[:, 0:d], qkv[:, d:2 * d], qkv[:, 2 * d:3 * d],
                   wslab_ref[:, D_WO:D_WO + d], vec[1:2, 0:d],
                   batch=batch, nhead=nhead)
    tgt = _layer_norm(tgt + a, vec[2:3, 0:d], vec[3:4, 0:d])

    # --- cross-attention + LN (K/V cached in scratch) ---
    qc = _mm(tgt.astype(jnp.bfloat16), wslab_ref[:, D_CAQ:D_CAQ + d]) + vec[4:5, 0:d]
    kv = kv_scr[...]
    a = _attention(qc, kv[:, 0:d], kv[:, d:2 * d],
                   wslab_ref[:, D_CWO:D_CWO + d], vec[6:7, 0:d],
                   batch=batch, nhead=nhead)
    tgt = _layer_norm(tgt + a, vec[7:8, 0:d], vec[8:9, 0:d])

    # --- FFN + LN ---
    tb = tgt.astype(jnp.bfloat16)
    ff = jnp.maximum(_mm(tb, wslab_ref[:, D_W1:D_W1 + dff]) + vec[9:10, 0:dff], 0.0)
    ff = _mm(ff.astype(jnp.bfloat16), w2_ref[...]) + vec[10:11, 0:d]
    tgt = _layer_norm(tgt + ff, vec[11:12, 0:d], vec[12:13, 0:d])

    hs_scr[...] = tgt

    # --- heads: only the last layer's values are needed ---
    @pl.when(l == pl.num_programs(0) - 1)
    def _():
        hb = tgt.astype(jnp.bfloat16)
        logits_ref[...] = _mm(hb, wslab_ref[:, D_CLS:D_CLS + LANE]) + vec[13:14, :]
        pixb = pix_ref[...].astype(jnp.bfloat16)        # (B*S, 4*D), grouped sub-patches
        pad = mask_w - 4 * seq
        for b in range(batch):
            hbb = hb[b * nq:(b + 1) * nq]
            blocks = [jax.lax.dot_general(
                          hbb, pixb[b * seq:(b + 1) * seq, j * d:(j + 1) * d],
                          (((1,), (1,)), ((), ())),
                          preferred_element_type=jnp.float32)
                      for j in range(4)]
            if pad:
                blocks.append(jnp.zeros((nq, pad), jnp.float32))
            masks_ref[b * nq:(b + 1) * nq, :] = jnp.concatenate(blocks, axis=-1)


# ============================== pallas_call wrappers ================================
def _const_spec(a):
    nd = a.ndim
    return pl.BlockSpec(a.shape, lambda l, nd=nd: (0,) * nd)


def backbone_forward(xp, pp):
    M = xp.shape[0]                                     # B * S
    D = HIDDEN_DIM
    ins = (xp, pp["bb_w1"], pp["bb_wm"], pp["bb_w2"], pp["bb_wp"], pp["bb_vec"])
    return pl.pallas_call(
        _backbone_kernel,
        out_shape=(jax.ShapeDtypeStruct((M, D), jnp.float32),
                   jax.ShapeDtypeStruct((M, 4 * D), jnp.float32)),
        grid=(1,),
        in_specs=[_const_spec(a) for a in ins],
        out_specs=(pl.BlockSpec((M, D), lambda i: (0, 0)),
                   pl.BlockSpec((M, 4 * D), lambda i: (0, 0))),
    )(*ins)


def run_encoder(x_tok, pp, *, batch):
    M, D = x_tok.shape
    ins = (x_tok, pp["pos"], pp["enc_w"], pp["enc_w2"], pp["enc_vec"])
    return pl.pallas_call(
        functools.partial(_encoder_kernel, batch=batch, nhead=NHEAD, d=D, dff=DIM_FFN),
        out_shape=jax.ShapeDtypeStruct((M, D), jnp.float32),
        grid=(NUM_ENC_LAYERS,),
        in_specs=[_const_spec(a) for a in ins],
        out_specs=pl.BlockSpec((M, D), lambda l: (0, 0)),
        compiler_params=pltpu.CompilerParams(dimension_semantics=("arbitrary",)),
    )(*ins)


def run_decoder(pp, memory, pix, *, batch, seq):
    D = HIDDEN_DIM
    N = NUM_QUERIES
    M = batch * N
    mask_w = max(LANE, ((4 * seq + LANE - 1) // LANE) * LANE)   # lane-dense masks
    ins = (pp["qemb"], memory, pix, pp["dec_w"], pp["dec_w2"], pp["dec_vec"])
    out_shape = (jax.ShapeDtypeStruct((M, LANE), jnp.float32),
                 jax.ShapeDtypeStruct((M, mask_w), jnp.float32))
    out_specs = (pl.BlockSpec((M, LANE), lambda l: (0, 0)),
                 pl.BlockSpec((M, mask_w), lambda l: (0, 0)))
    return pl.pallas_call(
        functools.partial(_decoder_kernel, batch=batch, seq=seq, nq=N,
                          nhead=NHEAD, d=D, dff=DIM_FFN, mask_w=mask_w),
        out_shape=out_shape,
        grid=(NUM_DEC_LAYERS,),
        in_specs=[_const_spec(a) for a in ins],
        out_specs=out_specs,
        scratch_shapes=[pltpu.VMEM((M, D), jnp.float32),            # hs carry
                        pltpu.VMEM((batch * seq, 2 * D), jnp.float32)],  # cached K/V
        compiler_params=pltpu.CompilerParams(dimension_semantics=("arbitrary",)),
    )(*ins)


# ============================== one-time parameter packing ==========================
def positional_encoding(seq_len, dim):
    pos = jnp.arange(seq_len, dtype=jnp.float32)[:, None]
    i = jnp.arange(dim // 2, dtype=jnp.float32)[None, :]
    angle = pos / jnp.power(10000.0, 2.0 * i / dim)
    pe = jnp.zeros((seq_len, dim), jnp.float32)
    pe = pe.at[:, 0::2].set(jnp.sin(angle))
    pe = pe.at[:, 1::2].set(jnp.cos(angle))
    return pe                                           # (S, D)


def pack_params(params, batch, image_hw):
    """Hoisted out of the forward: concat/pad/cast all weights into a few packed slabs,
    fold the 1/sqrt(dh) attention scale into the Q weights/biases, tile pos/query
    embeddings to the batch-flattened layout.  Called once."""
    D = HIDDEN_DIM
    dh = D // NHEAD
    scale = 1.0 / float(dh) ** 0.5
    H, W = image_hw
    S = (H // 8) * (W // 8)

    def place(slab, r0, c0, w):
        return slab.at[r0:r0 + w.shape[0], c0:c0 + w.shape[1]].set(w)

    def vec_slab(rows, entries):
        v = jnp.zeros((rows, LANE), jnp.float32)
        for r, x in entries:
            v = v.at[r, :x.shape[0]].set(x)
        return v

    # --- encoder (single shared layer) ---
    e = params["enc"]
    esa = e["sa"]
    enc_w = jnp.zeros((D, ENC_W_LANES), jnp.float32)
    enc_w = place(enc_w, 0, E_QKV,
                  jnp.concatenate([esa["wq"] * scale, esa["wk"], esa["wv"]], axis=1))
    enc_w = place(enc_w, 0, E_WO, esa["wo"])
    enc_w = place(enc_w, 0, E_W1, e["ffn_w1"])
    enc_vec = vec_slab(8, [
        (0, jnp.concatenate([esa["bq"] * scale, esa["bk"], esa["bv"]])),
        (1, esa["bo"]), (2, e["ln1_g"]), (3, e["ln1_b"]),
        (4, e["ffn_b1"]), (5, e["ffn_b2"]), (6, e["ln2_g"]), (7, e["ln2_b"])])

    # --- decoder (single shared layer) + heads ---
    dd = params["dec"]
    dsa, dca = dd["sa"], dd["ca"]
    dec_w = jnp.zeros((D, DEC_W_LANES), jnp.float32)
    dec_w = place(dec_w, 0, D_QKV,
                  jnp.concatenate([dsa["wq"] * scale, dsa["wk"], dsa["wv"]], axis=1))
    dec_w = place(dec_w, 0, D_WO, dsa["wo"])
    dec_w = place(dec_w, 0, D_CAQ, dca["wq"] * scale)
    dec_w = place(dec_w, 0, D_CKV, jnp.concatenate([dca["wk"], dca["wv"]], axis=1))
    dec_w = place(dec_w, 0, D_CWO, dca["wo"])
    dec_w = place(dec_w, 0, D_W1, dd["ffn_w1"])
    dec_w = place(dec_w, 0, D_CLS, params["cls_w"])     # lane-padded class head
    dec_vec = vec_slab(16, [
        (0, jnp.concatenate([dsa["bq"] * scale, dsa["bk"], dsa["bv"]])),
        (1, dsa["bo"]), (2, dd["ln1_g"]), (3, dd["ln1_b"]),
        (4, dca["bq"] * scale), (5, jnp.concatenate([dca["bk"], dca["bv"]])),
        (6, dca["bo"]), (7, dd["ln2_g"]), (8, dd["ln2_b"]),
        (9, dd["ffn_b1"]), (10, dd["ffn_b2"]), (11, dd["ln3_g"]), (12, dd["ln3_b"]),
        (13, params["cls_b"])])

    # --- backbone stand-in: block-diagonal stem / pixel-embed weights so the 2x2
    #     stride-2 regroup becomes plain matmuls inside a single kernel ---
    C1 = BACKBONE_C1
    w1, wm = params["bb1_w"], params["mask_w"]
    w1_blk = jnp.zeros((4 * w1.shape[0], 4 * C1), jnp.float32)
    wm_blk = jnp.zeros((4 * C1, 4 * D), jnp.float32)
    for j in range(4):
        w1_blk = place(w1_blk, j * w1.shape[0], j * C1, w1)
        wm_blk = place(wm_blk, j * C1, j * D, wm)
    bb_vec = vec_slab(8, [
        (0, jnp.tile(params["bb1_b"], 4)),
        (1, jnp.tile(params["mask_b"], 4)),
        (2, params["bb2_b"]), (3, params["proj_b"])])

    pos = positional_encoding(S, D)
    return {
        "enc_w": enc_w.astype(jnp.bfloat16), "enc_w2": e["ffn_w2"].astype(jnp.bfloat16),
        "enc_vec": enc_vec,
        "dec_w": dec_w.astype(jnp.bfloat16), "dec_w2": dd["ffn_w2"].astype(jnp.bfloat16),
        "dec_vec": dec_vec,
        "bb_w1": w1_blk.astype(jnp.bfloat16), "bb_wm": wm_blk.astype(jnp.bfloat16),
        "bb_w2": params["bb2_w"].astype(jnp.bfloat16),
        "bb_wp": params["proj_w"].astype(jnp.bfloat16),
        "bb_vec": bb_vec,
        "pos": jnp.tile(pos, (batch, 1)),               # (B*S, D)
        "qemb": jnp.tile(params["query_embed"], (batch, 1)),   # (B*N, D)
    }


# ============================== model glue ==========================================
def detr_forward(images, pp):
    B, C, H, W = images.shape
    H4, W4 = H // 4, W // 4
    H8, W8 = H // 8, W // 8
    S = H8 * W8
    N = NUM_QUERIES

    # single patchify relayout of the raw images: token = stride-8 cell, features
    # grouped by its 4 stride-4 sub-patches (r, c), each with (C, 4, 4) pixels.
    # TODO(synk): this relayout could also move into the backbone kernel via a gather.
    xp = (images.reshape(B, C, H8, 2, 4, W8, 2, 4)
          .transpose(0, 2, 5, 3, 6, 1, 4, 7)
          .reshape(B * S, 2 * 2 * C * 16))

    x_tok, pix = backbone_forward(xp, pp)               # (B*S, D), (B*S, 4*D)
    memory = run_encoder(x_tok, pp, batch=B)            # (B*S, D)
    logits_pad, masks_pad = run_decoder(pp, memory, pix, batch=B, seq=S)

    pred_logits = logits_pad.reshape(B, N, LANE)[:, :, :NUM_CLASSES + 1]
    m = masks_pad.reshape(B, N, -1)[:, :, :4 * S]       # lane order (r, c, h8, w8)
    pred_masks = (m.reshape(B, N, 2, 2, H8, W8)
                  .transpose(0, 1, 4, 2, 5, 3)
                  .reshape(B, N, H4, W4))
    return {"pred_logits": pred_logits, "pred_masks": pred_masks}


# ============================== deterministic parameter init ========================
def init_params(key):
    keys = iter(jax.random.split(key, 64))

    def w(shape, scale=0.02):
        return scale * jax.random.normal(next(keys), shape, jnp.float32)

    def attn_block(d):
        return {
            "wq": w((d, d)), "bq": jnp.zeros((d,), jnp.float32),
            "wk": w((d, d)), "bk": jnp.zeros((d,), jnp.float32),
            "wv": w((d, d)), "bv": jnp.zeros((d,), jnp.float32),
            "wo": w((d, d)), "bo": jnp.zeros((d,), jnp.float32),
        }

    D = HIDDEN_DIM
    enc = {
        "sa": attn_block(D),
        "ffn_w1": w((D, DIM_FFN)), "ffn_b1": jnp.zeros((DIM_FFN,), jnp.float32),
        "ffn_w2": w((DIM_FFN, D)), "ffn_b2": jnp.zeros((D,), jnp.float32),
        "ln1_g": jnp.ones((D,), jnp.float32), "ln1_b": jnp.zeros((D,), jnp.float32),
        "ln2_g": jnp.ones((D,), jnp.float32), "ln2_b": jnp.zeros((D,), jnp.float32),
    }
    dec = {
        "sa": attn_block(D),
        "ca": attn_block(D),
        "ffn_w1": w((D, DIM_FFN)), "ffn_b1": jnp.zeros((DIM_FFN,), jnp.float32),
        "ffn_w2": w((DIM_FFN, D)), "ffn_b2": jnp.zeros((D,), jnp.float32),
        "ln1_g": jnp.ones((D,), jnp.float32), "ln1_b": jnp.zeros((D,), jnp.float32),
        "ln2_g": jnp.ones((D,), jnp.float32), "ln2_b": jnp.zeros((D,), jnp.float32),
        "ln3_g": jnp.ones((D,), jnp.float32), "ln3_b": jnp.zeros((D,), jnp.float32),
    }
    params = {
        # backbone stand-in: stride-4 patchify conv (feature order (ch, dy, dx)),
        # stride-2 2x2 conv (row order (sub-patch j, c1)), 1x1 projection conv.
        "bb1_w": w((3 * 4 * 4, BACKBONE_C1)),
        "bb1_b": jnp.zeros((BACKBONE_C1,), jnp.float32),
        "bb2_w": w((4 * BACKBONE_C1, BACKBONE_OUT)),
        "bb2_b": jnp.zeros((BACKBONE_OUT,), jnp.float32),
        "proj_w": w((BACKBONE_OUT, D)), "proj_b": jnp.zeros((D,), jnp.float32),
        "enc": enc,
        "dec": dec,
        "query_embed": w((NUM_QUERIES, D), scale=1.0),
        "cls_w": w((D, NUM_CLASSES + 1)),
        "cls_b": jnp.zeros((NUM_CLASSES + 1,), jnp.float32),
        # mask head 1x1 conv (stride-4 feature channels -> hidden_dim)
        "mask_w": w((BACKBONE_C1, D)), "mask_b": jnp.zeros((D,), jnp.float32),
    }
    return params


# ============================== main ================================================
if __name__ == "__main__":
    key = jax.random.PRNGKey(0)
    pkey, xkey = jax.random.split(key)
    params = init_params(pkey)

    # images: (B=2, C=3, H=32, W=32) NCHW, matching the PyTorch forward signature.
    images = jax.random.normal(xkey, (2, 3, 32, 32), jnp.float32)

    packed = pack_params(params, batch=2, image_hw=(32, 32))   # one-time packing
    outputs = jax.jit(detr_forward)(images, packed)
    jax.block_until_ready(outputs)

    assert outputs["pred_logits"].shape == (2, NUM_QUERIES, NUM_CLASSES + 1)
    assert outputs["pred_masks"].shape == (2, NUM_QUERIES, 8, 8)   # (B, N, H/4, W/4)
    print("KERNEL_OK")
</pallas_src>

<mosaic_0001>
module attributes {stable_mosaic.version = 11 : i64} {
  func.func @_backbone_kernel(%arg0: i32, %arg1: memref<32x192xf32, #tpu.memory_space<vmem>>, %arg2: memref<192x32xbf16, #tpu.memory_space<vmem>>, %arg3: memref<32x128xbf16, #tpu.memory_space<vmem>>, %arg4: memref<32x16xbf16, #tpu.memory_space<vmem>>, %arg5: memref<16x32xbf16, #tpu.memory_space<vmem>>, %arg6: memref<8x128xf32, #tpu.memory_space<vmem>>, %arg7: memref<32x32xf32, #tpu.memory_space<vmem>>, %arg8: memref<32x128xf32, #tpu.memory_space<vmem>>) attributes {dimension_semantics = [#tpu.dimension_semantics<arbitrary>], iteration_bounds = array<i64: 1>, scalar_prefetch = 0 : i64, scratch_operands = 0 : i64, tpu.core_type = #tpu.core_type<tc>, window_params = [{pipeline_mode = #tpu.pipeline_mode<synchronous>, transform_indices = @transform_0, window_bounds = array<i64: 32, 192>}, {pipeline_mode = #tpu.pipeline_mode<synchronous>, transform_indices = @transform_1, window_bounds = array<i64: 192, 32>}, {pipeline_mode = #tpu.pipeline_mode<synchronous>, transform_indices = @transform_2, window_bounds = array<i64: 32, 128>}, {pipeline_mode = #tpu.pipeline_mode<synchronous>, transform_indices = @transform_3, window_bounds = array<i64: 32, 16>}, {pipeline_mode = #tpu.pipeline_mode<synchronous>, transform_indices = @transform_4, window_bounds = array<i64: 16, 32>}, {pipeline_mode = #tpu.pipeline_mode<synchronous>, transform_indices = @transform_5, window_bounds = array<i64: 8, 128>}, {pipeline_mode = #tpu.pipeline_mode<synchronous>, transform_indices = @transform_6, window_bounds = array<i64: 32, 32>}, {pipeline_mode = #tpu.pipeline_mode<synchronous>, transform_indices = @transform_7, window_bounds = array<i64: 32, 128>}]} {
    %c0 = arith.constant 0 : index
    %c0_0 = arith.constant 0 : index
    %0 = vector.load %arg6[%c0, %c0_0] : memref<8x128xf32, #tpu.memory_space<vmem>>, vector<8x128xf32>
    %c0_1 = arith.constant 0 : index
    %c0_2 = arith.constant 0 : index
    %1 = vector.load %arg1[%c0_1, %c0_2] : memref<32x192xf32, #tpu.memory_space<vmem>>, vector<32x192xf32>
    %2 = arith.truncf %1 : vector<32x192xf32> to vector<32x192xbf16>
    %c0_3 = arith.constant 0 : index
    %c0_4 = arith.constant 0 : index
    %3 = vector.load %arg2[%c0_3, %c0_4] : memref<192x32xbf16, #tpu.memory_space<vmem>>, vector<192x32xbf16>
    %cst = arith.constant dense<0.000000e+00> : vector<32x32xf32>
    %4 = tpu.matmul %2, %3, %cst {dimension_numbers = #tpu.dot_dimension_numbers<[1], [0], [0], [1], [0, 0, 1, 1], [], []>} : vector<32x192xbf16>, vector<192x32xbf16>, vector<32x32xf32> -> vector<32x32xf32>
    %5 = vector.extract_strided_slice %0 {offsets = [0, 0], sizes = [1, 32], strides = [1, 1]} : vector<8x128xf32> to vector<1x32xf32>
    %6 = vector.broadcast %5 : vector<1x32xf32> to vector<32x32xf32>
    %7 = arith.addf %4, %6 : vector<32x32xf32>
    %cst_5 = arith.constant 0.000000e+00 : f32
    %8 = vector.broadcast %cst_5 : f32 to vector<32x32xf32>
    %9 = arith.maximumf %7, %8 : vector<32x32xf32>
    %10 = arith.truncf %9 : vector<32x32xf32> to vector<32x32xbf16>
    %c0_6 = arith.constant 0 : index
    %c0_7 = arith.constant 0 : index
    %11 = vector.load %arg3[%c0_6, %c0_7] : memref<32x128xbf16, #tpu.memory_space<vmem>>, vector<32x128xbf16>
    %cst_8 = arith.constant dense<0.000000e+00> : vector<32x128xf32>
    %12 = tpu.matmul %10, %11, %cst_8 {dimension_numbers = #tpu.dot_dimension_numbers<[1], [0], [0], [1], [0, 0, 1, 1], [], []>} : vector<32x32xbf16>, vector<32x128xbf16>, vector<32x128xf32> -> vector<32x128xf32>
    %13 = vector.extract_strided_slice %0 {offsets = [1, 0], sizes = [1, 128], strides = [1, 1]} : vector<8x128xf32> to vector<1x128xf32>
    %14 = vector.broadcast %13 : vector<1x128xf32> to vector<32x128xf32>
    %15 = arith.addf %12, %14 : vector<32x128xf32>
    %c0_9 = arith.constant 0 : index
    %c0_10 = arith.constant 0 : index
    %16 = vector.load %arg8[%c0_9, %c0_10] : memref<32x128xf32, #tpu.memory_space<vmem>>, vector<32x128xf32>
    tpu.vector_store %arg8[%c0_9, %c0_10], %15 {strides = array<i32>} : memref<32x128xf32, #tpu.memory_space<vmem>>, vector<32x128xf32>,
    %c0_11 = arith.constant 0 : index
    %c0_12 = arith.constant 0 : index
    %17 = vector.load %arg4[%c0_11, %c0_12] : memref<32x16xbf16, #tpu.memory_space<vmem>>, vector<32x16xbf16>
    %cst_13 = arith.constant dense<0.000000e+00> : vector<32x16xf32>
    %18 = tpu.matmul %10, %17, %cst_13 {dimension_numbers = #tpu.dot_dimension_numbers<[1], [0], [0], [1], [0, 0, 1, 1], [], []>} : vector<32x32xbf16>, vector<32x16xbf16>, vector<32x16xf32> -> vector<32x16xf32>
    %19 = vector.extract_strided_slice %0 {offsets = [2, 0], sizes = [1, 16], strides = [1, 1]} : vector<8x128xf32> to vector<1x16xf32>
    %20 = vector.broadcast %19 : vector<1x16xf32> to vector<32x16xf32>
    %21 = arith.addf %18, %20 : vector<32x16xf32>
    %cst_14 = arith.constant 0.000000e+00 : f32
    %22 = vector.broadcast %cst_14 : f32 to vector<32x16xf32>
    %23 = arith.maximumf %21, %22 : vector<32x16xf32>
    %24 = arith.truncf %23 : vector<32x16xf32> to vector<32x16xbf16>
    %c0_15 = arith.constant 0 : index
    %c0_16 = arith.constant 0 : index
    %25 = vector.load %arg5[%c0_15, %c0_16] : memref<16x32xbf16, #tpu.memory_space<vmem>>, vector<16x32xbf16>
    %cst_17 = arith.constant dense<0.000000e+00> : vector<32x32xf32>
    %26 = tpu.matmul %24, %25, %cst_17 {dimension_numbers = #tpu.dot_dimension_numbers<[1], [0], [0], [1], [0, 0, 1, 1], [], []>} : vector<32x16xbf16>, vector<16x32xbf16>, vector<32x32xf32> -> vector<32x32xf32>
    %27 = vector.extract_strided_slice %0 {offsets = [3, 0], sizes = [1, 32], strides = [1, 1]} : vector<8x128xf32> to vector<1x32xf32>
    %28 = vector.broadcast %27 : vector<1x32xf32> to vector<32x32xf32>
    %29 = arith.addf %26, %28 : vector<32x32xf32>
    %c0_18 = arith.constant 0 : index
    %c0_19 = arith.constant 0 : index
    %30 = vector.load %arg7[%c0_18, %c0_19] : memref<32x32xf32, #tpu.memory_space<vmem>>, vector<32x32xf32>
    tpu.vector_store %arg7[%c0_18, %c0_19], %29 {strides = array<i32>} : memref<32x32xf32, #tpu.memory_space<vmem>>, vector<32x32xf32>,
    return
  }
  func.func @transform_0(%arg0: i32) -> (i32, i32) {
    %c0_i32 = arith.constant 0 : i32
    %c0_i32_0 = arith.constant 0 : i32
    %c0_i32_1 = arith.constant 0 : i32
    return %c0_i32, %c0_i32_0 : i32, i32
  }
  func.func @transform_1(%arg0: i32) -> (i32, i32) {
    %c0_i32 = arith.constant 0 : i32
    %c0_i32_0 = arith.constant 0 : i32
    %c0_i32_1 = arith.constant 0 : i32
    return %c0_i32, %c0_i32_0 : i32, i32
  }
  func.func @transform_2(%arg0: i32) -> (i32, i32) {
    %c0_i32 = arith.constant 0 : i32
    %c0_i32_0 = arith.constant 0 : i32
    %c0_i32_1 = arith.constant 0 : i32
    return %c0_i32, %c0_i32_0 : i32, i32
  }
  func.func @transform_3(%arg0: i32) -> (i32, i32) {
    %c0_i32 = arith.constant 0 : i32
    %c0_i32_0 = arith.constant 0 : i32
    %c0_i32_1 = arith.constant 0 : i32
    return %c0_i32, %c0_i32_0 : i32, i32
  }
  func.func @transform_4(%arg0: i32) -> (i32, i32) {
    %c0_i32 = arith.constant 0 : i32
    %c0_i32_0 = arith.constant 0 : i32
    %c0_i32_1 = arith.constant 0 : i32
    return %c0_i32, %c0_i32_0 : i32, i32
  }
  func.func @transform_5(%arg0: i32) -> (i32, i32) {
    %c0_i32 = arith.constant 0 : i32
    %c0_i32_0 = arith.constant 0 : i32
    %c0_i32_1 = arith.constant 0 : i32
    return %c0_i32, %c0_i32_0 : i32, i32
  }
  func.func @transform_6(%arg0: i32) -> (i32, i32) {
    %c0_i32 = arith.constant 0 : i32
    %c0_i32_0 = arith.constant 0 : i32
    %c0_i32_1 = arith.constant 0 : i32
    return %c0_i32, %c0_i32_0 : i32, i32
  }
  func.func @transform_7(%arg0: i32) -> (i32, i32) {
    %c0_i32 = arith.constant 0 : i32
    %c0_i32_0 = arith.constant 0 : i32
    %c0_i32_1 = arith.constant 0 : i32
    return %c0_i32, %c0_i32_0 : i32, i32
  }
}

module attributes {stable_mosaic.version = 11 : i64} {
  func.func @_encoder_kernel(%arg0: i32, %arg1: memref<32x32xf32, #tpu.memory_space<vmem>>, %arg2: memref<32x32xf32, #tpu.memory_space<vmem>>, %arg3: memref<32x384xbf16, #tpu.memory_space<vmem>>, %arg4: memref<64x32xbf16, #tpu.memory_space<vmem>>, %arg5: memref<8x128xf32, #tpu.memory_space<vmem>>, %arg6: memref<32x32xf32, #tpu.memory_space<vmem>>) attributes {dimension_semantics = [#tpu.dimension_semantics<arbitrary>], iteration_bounds = array<i64: 2>, scalar_prefetch = 0 : i64, scratch_operands = 0 : i64, tpu.core_type = #tpu.core_type<tc>, window_params = [{pipeline_mode = #tpu.pipeline_mode<synchronous>, transform_indices = @transform_0, window_bounds = array<i64: 32, 32>}, {pipeline_mode = #tpu.pipeline_mode<synchronous>, transform_indices = @transform_1, window_bounds = array<i64: 32, 32>}, {pipeline_mode = #tpu.pipeline_mode<synchronous>, transform_indices = @transform_2, window_bounds = array<i64: 32, 384>}, {pipeline_mode = #tpu.pipeline_mode<synchronous>, transform_indices = @transform_3, window_bounds = array<i64: 64, 32>}, {pipeline_mode = #tpu.pipeline_mode<synchronous>, transform_indices = @transform_4, window_bounds = array<i64: 8, 128>}, {pipeline_mode = #tpu.pipeline_mode<synchronous>, transform_indices = @transform_5, window_bounds = array<i64: 32, 32>}]} {
    %c0 = arith.constant 0 : index
    %c0_0 = arith.constant 0 : index
    %0 = vector.load %arg5[%c0, %c0_0] : memref<8x128xf32, #tpu.memory_space<vmem>>, vector<8x128xf32>
    %c0_i32 = arith.constant 0 : i32
    %1 = arith.cmpi eq, %arg0, %c0_i32 : i32
    %2 = arith.extui %1 : i1 to i32
    %c0_i32_1 = arith.constant 0 : i32
    %3 = arith.cmpi ne, %2, %c0_i32_1 : i32
    scf.if %3 {
      %c0_60 = arith.constant 0 : index
      %c0_61 = arith.constant 0 : index
      %223 = vector.load %arg1[%c0_60, %c0_61] : memref<32x32xf32, #tpu.memory_space<vmem>>, vector<32x32xf32>
      %c0_62 = arith.constant 0 : index
      %c0_63 = arith.constant 0 : index
      %224 = vector.load %arg6[%c0_62, %c0_63] : memref<32x32xf32, #tpu.memory_space<vmem>>, vector<32x32xf32>
      tpu.vector_store %arg6[%c0_62, %c0_63], %223 {strides = array<i32>} : memref<32x32xf32, #tpu.memory_space<vmem>>, vector<32x32xf32>,
    } else {
    }
    %c0_2 = arith.constant 0 : index
    %c0_3 = arith.constant 0 : index
    %4 = vector.load %arg6[%c0_2, %c0_3] : memref<32x32xf32, #tpu.memory_space<vmem>>, vector<32x32xf32>
    %c0_4 = arith.constant 0 : index
    %c0_5 = arith.constant 0 : index
    %5 = vector.load %arg2[%c0_4, %c0_5] : memref<32x32xf32, #tpu.memory_space<vmem>>, vector<32x32xf32>
    %6 = arith.addf %4, %5 : vector<32x32xf32>
    %7 = arith.truncf %6 : vector<32x32xf32> to vector<32x32xbf16>
    %c0_6 = arith.constant 0 : index
    %c0_7 = arith.constant 0 : index
    %8 = vector.load %arg3[%c0_6, %c0_7] : memref<32x384xbf16, #tpu.memory_space<vmem>>, vector<32x96xbf16>
    %cst = arith.constant dense<0.000000e+00> : vector<32x96xf32>
    %9 = tpu.matmul %7, %8, %cst {dimension_numbers = #tpu.dot_dimension_numbers<[1], [0], [0], [1], [0, 0, 1, 1], [], []>} : vector<32x32xbf16>, vector<32x96xbf16>, vector<32x96xf32> -> vector<32x96xf32>
    %10 = vector.extract_strided_slice %0 {offsets = [0, 0], sizes = [1, 96], strides = [1, 1]} : vector<8x128xf32> to vector<1x96xf32>
    %11 = vector.broadcast %10 : vector<1x96xf32> to vector<32x96xf32>
    %12 = arith.addf %9, %11 : vector<32x96xf32>
    %13 = vector.extract_strided_slice %12 {offsets = [0, 0], sizes = [32, 32], strides = [1, 1]} : vector<32x96xf32> to vector<32x32xf32>
    %14 = vector.extract_strided_slice %12 {offsets = [0, 32], sizes = [32, 32], strides = [1, 1]} : vector<32x96xf32> to vector<32x32xf32>
    %15 = vector.extract_strided_slice %12 {offsets = [0, 64], sizes = [32, 32], strides = [1, 1]} : vector<32x96xf32> to vector<32x32xf32>
    %c0_8 = arith.constant 0 : index
    %c128 = arith.constant 128 : index
    %16 = vector.load %arg3[%c0_8, %c128] : memref<32x384xbf16, #tpu.memory_space<vmem>>, vector<32x32xbf16>
    %17 = vector.extract_strided_slice %0 {offsets = [1, 0], sizes = [1, 32], strides = [1, 1]} : vector<8x128xf32> to vector<1x32xf32>
    %18 = arith.truncf %13 : vector<32x32xf32> to vector<32x32xbf16>
    %19 = arith.truncf %14 : vector<32x32xf32> to vector<32x32xbf16>
    %20 = arith.truncf %15 : vector<32x32xf32> to vector<32x32xbf16>
    %21 = vector.extract_strided_slice %18 {offsets = [0, 0], sizes = [16, 32], strides = [1, 1]} : vector<32x32xbf16> to vector<16x32xbf16>
    %22 = vector.extract_strided_slice %19 {offsets = [0, 0], sizes = [16, 32], strides = [1, 1]} : vector<32x32xbf16> to vector<16x32xbf16>
    %23 = vector.extract_strided_slice %20 {offsets = [0, 0], sizes = [16, 32], strides = [1, 1]} : vector<32x32xbf16> to vector<16x32xbf16>
    %24 = vector.extract_strided_slice %21 {offsets = [0, 0], sizes = [16, 8], strides = [1, 1]} : vector<16x32xbf16> to vector<16x8xbf16>
    %25 = vector.extract_strided_slice %22 {offsets = [0, 0], sizes = [16, 8], strides = [1, 1]} : vector<16x32xbf16> to vector<16x8xbf16>
    %cst_9 = arith.constant dense<0.000000e+00> : vector<16x16xf32>
    %26 = tpu.matmul %24, %25, %cst_9 {dimension_numbers = #tpu.dot_dimension_numbers<[1], [1], [0], [0], [0, 0, 1, 0], [], []>} : vector<16x8xbf16>, vector<16x8xbf16>, vector<16x16xf32> -> vector<16x16xf32>
    %cst_10 = arith.constant dense<0xFF800000> : vector<16xf32>
    %27 = vector.multi_reduction <maximumf>, %26, %cst_10 [1] : vector<16x16xf32> to vector<16xf32>
    %28 = vector.shape_cast %27 : vector<16xf32> to vector<16x1xf32>
    %29 = vector.broadcast %28 : vector<16x1xf32> to vector<16x16xf32>
    %30 = arith.subf %26, %29 : vector<16x16xf32>
    %31 = math.exp %30 : vector<16x16xf32>
    %cst_11 = arith.constant dense<0.000000e+00> : vector<16xf32>
    %32 = vector.multi_reduction <add>, %31, %cst_11 [1] : vector<16x16xf32> to vector<16xf32>
    %33 = vector.shape_cast %32 : vector<16xf32> to vector<16x1xf32>
    %34 = tpu.reciprocal %33 {approx = true} : vector<16x1xf32> -> vector<16x1xf32>
    %35 = vector.broadcast %34 : vector<16x1xf32> to vector<16x16xf32>
    %36 = arith.mulf %31, %35 : vector<16x16xf32>
    %37 = arith.truncf %36 : vector<16x16xf32> to vector<16x16xbf16>
    %38 = vector.extract_strided_slice %23 {offsets = [0, 0], sizes = [16, 8], strides = [1, 1]} : vector<16x32xbf16> to vector<16x8xbf16>
    %cst_12 = arith.constant dense<0.000000e+00> : vector<16x8xf32>
    %39 = tpu.matmul %37, %38, %cst_12 {dimension_numbers = #tpu.dot_dimension_numbers<[1], [0], [0], [1], [0, 0, 1, 1], [], []>} : vector<16x16xbf16>, vector<16x8xbf16>, vector<16x8xf32> -> vector<16x8xf32>
    %40 = vector.extract_strided_slice %21 {offsets = [0, 8], sizes = [16, 8], strides = [1, 1]} : vector<16x32xbf16> to vector<16x8xbf16>
    %41 = vector.extract_strided_slice %22 {offsets = [0, 8], sizes = [16, 8], strides = [1, 1]} : vector<16x32xbf16> to vector<16x8xbf16>
    %cst_13 = arith.constant dense<0.000000e+00> : vector<16x16xf32>
    %42 = tpu.matmul %40, %41, %cst_13 {dimension_numbers = #tpu.dot_dimension_numbers<[1], [1], [0], [0], [0, 0, 1, 0], [], []>} : vector<16x8xbf16>, vector<16x8xbf16>, vector<16x16xf32> -> vector<16x16xf32>
    %cst_14 = arith.constant dense<0xFF800000> : vector<16xf32>
    %43 = vector.multi_reduction <maximumf>, %42, %cst_14 [1] : vector<16x16xf32> to vector<16xf32>
    %44 = vector.shape_cast %43 : vector<16xf32> to vector<16x1xf32>
    %45 = vector.broadcast %44 : vector<16x1xf32> to vector<16x16xf32>
    %46 = arith.subf %42, %45 : vector<16x16xf32>
    %47 = math.exp %46 : vector<16x16xf32>
    %cst_15 = arith.constant dense<0.000000e+00> : vector<16xf32>
    %48 = vector.multi_reduction <add>, %47, %cst_15 [1] : vector<16x16xf32> to vector<16xf32>
    %49 = vector.shape_cast %48 : vector<16xf32> to vector<16x1xf32>
    %50 = tpu.reciprocal %49 {approx = true} : vector<16x1xf32> -> vector<16x1xf32>
    %51 = vector.broadcast %50 : vector<16x1xf32> to vector<16x16xf32>
    %52 = arith.mulf %47, %51 : vector<16x16xf32>
    %53 = arith.truncf %52 : vector<16x16xf32> to vector<16x16xbf16>
    %54 = vector.extract_strided_slice %23 {offsets = [0, 8], sizes = [16, 8], strides = [1, 1]} : vector<16x32xbf16> to vector<16x8xbf16>
    %cst_16 = arith.constant dense<0.000000e+00> : vector<16x8xf32>
    %55 = tpu.matmul %53, %54, %cst_16 {dimension_numbers = #tpu.dot_dimension_numbers<[1], [0], [0], [1], [0, 0, 1, 1], [], []>} : vector<16x16xbf16>, vector<16x8xbf16>, vector<16x8xf32> -> vector<16x8xf32>
    %56 = vector.extract_strided_slice %21 {offsets = [0, 16], sizes = [16, 8], strides = [1, 1]} : vector<16x32xbf16> to vector<16x8xbf16>
    %57 = vector.extract_strided_slice %22 {offsets = [0, 16], sizes = [16, 8], strides = [1, 1]} : vector<16x32xbf16> to vector<16x8xbf16>
    %cst_17 = arith.constant dense<0.000000e+00> : vector<16x16xf32>
    %58 = tpu.matmul %56, %57, %cst_17 {dimension_numbers = #tpu.dot_dimension_numbers<[1], [1], [0], [0], [0, 0, 1, 0], [], []>} : vector<16x8xbf16>, vector<16x8xbf16>, vector<16x16xf32> -> vector<16x16xf32>
    %cst_18 = arith.constant dense<0xFF800000> : vector<16xf32>
    %59 = vector.multi_reduction <maximumf>, %58, %cst_18 [1] : vector<16x16xf32> to vector<16xf32>
    %60 = vector.shape_cast %59 : vector<16xf32> to vector<16x1xf32>
    %61 = vector.broadcast %60 : vector<16x1xf32> to vector<16x16xf32>
    %62 = arith.subf %58, %61 : vector<16x16xf32>
    %63 = math.exp %62 : vector<16x16xf32>
    %cst_19 = arith.constant dense<0.000000e+00> : vector<16xf32>
    %64 = vector.multi_reduction <add>, %63, %cst_19 [1] : vector<16x16xf32> to vector<16xf32>
    %65 = vector.shape_cast %64 : vector<16xf32> to vector<16x1xf32>
    %66 = tpu.reciprocal %65 {approx = true} : vector<16x1xf32> -> vector<16x1xf32>
    %67 = vector.broadcast %66 : vector<16x1xf32> to vector<16x16xf32>
    %68 = arith.mulf %63, %67 : vector<16x16xf32>
    %69 = arith.truncf %68 : vector<16x16xf32> to vector<16x16xbf16>
    %70 = vector.extract_strided_slice %23 {offsets = [0, 16], sizes = [16, 8], strides = [1, 1]} : vector<16x32xbf16> to vector<16x8xbf16>
    %cst_20 = arith.constant dense<0.000000e+00> : vector<16x8xf32>
    %71 = tpu.matmul %69, %70, %cst_20 {dimension_numbers = #tpu.dot_dimension_numbers<[1], [0], [0], [1], [0, 0, 1, 1], [], []>} : vector<16x16xbf16>, vector<16x8xbf16>, vector<16x8xf32> -> vector<16x8xf32>
    %72 = vector.extract_strided_slice %21 {offsets = [0, 24], sizes = [16, 8], strides = [1, 1]} : vector<16x32xbf16> to vector<16x8xbf16>
    %73 = vector.extract_strided_slice %22 {offsets = [0, 24], sizes = [16, 8], strides = [1, 1]} : vector<16x32xbf16> to vector<16x8xbf16>
    %cst_21 = arith.constant dense<0.000000e+00> : vector<16x16xf32>
    %74 = tpu.matmul %72, %73, %cst_21 {dimension_numbers = #tpu.dot_dimension_numbers<[1], [1], [0], [0], [0, 0, 1, 0], [], []>} : vector<16x8xbf16>, vector<16x8xbf16>, vector<16x16xf32> -> vector<16x16xf32>
    %cst_22 = arith.constant dense<0xFF800000> : vector<16xf32>
    %75 = vector.multi_reduction <maximumf>, %74, %cst_22 [1] : vector<16x16xf32> to vector<16xf32>
    %76 = vector.shape_cast %75 : vector<16xf32> to vector<16x1xf32>
    %77 = vector.broadcast %76 : vector<16x1xf32> to vector<16x16xf32>
    %78 = arith.subf %74, %77 : vector<16x16xf32>
    %79 = math.exp %78 : vector<16x16xf32>
    %cst_23 = arith.constant dense<0.000000e+00> : vector<16xf32>
    %80 = vector.multi_reduction <add>, %79, %cst_23 [1] : vector<16x16xf32> to vector<16xf32>
    %81 = vector.shape_cast %80 : vector<16xf32> to vector<16x1xf32>
    %82 = tpu.reciprocal %81 {approx = true} : vector<16x1xf32> -> vector<16x1xf32>
    %83 = vector.broadcast %82 : vector<16x1xf32> to vector<16x16xf32>
    %84 = arith.mulf %79, %83 : vector<16x16xf32>
    %85 = arith.truncf %84 : vector<16x16xf32> to vector<16x16xbf16>
    %86 = vector.extract_strided_slice %23 {offsets = [0, 24], sizes = [16, 8], strides = [1, 1]} : vector<16x32xbf16> to vector<16x8xbf16>
    %cst_24 = arith.constant dense<0.000000e+00> : vector<16x8xf32>
    %87 = tpu.matmul %85, %86, %cst_24 {dimension_numbers = #tpu.dot_dimension_numbers<[1], [0], [0], [1], [0, 0, 1, 1], [], []>} : vector<16x16xbf16>, vector<16x8xbf16>, vector<16x8xf32> -> vector<16x8xf32>
    %88 = tpu.concatenate %39, %55, %71, %87 in 1 : vector<16x8xf32>, vector<16x8xf32>, vector<16x8xf32>, vector<16x8xf32> -> vector<16x32xf32>
    %89 = vector.extract_strided_slice %18 {offsets = [16, 0], sizes = [16, 32], strides = [1, 1]} : vector<32x32xbf16> to vector<16x32xbf16>
    %90 = vector.extract_strided_slice %19 {offsets = [16, 0], sizes = [16, 32], strides = [1, 1]} : vector<32x32xbf16> to vector<16x32xbf16>
    %91 = vector.extract_strided_slice %20 {offsets = [16, 0], sizes = [16, 32], strides = [1, 1]} : vector<32x32xbf16> to vector<16x32xbf16>
    %92 = vector.extract_strided_slice %89 {offsets = [0, 0], sizes = [16, 8], strides = [1, 1]} : vector<16x32xbf16> to vector<16x8xbf16>
    %93 = vector.extract_strided_slice %90 {offsets = [0, 0], sizes = [16, 8], strides = [1, 1]} : vector<16x32xbf16> to vector<16x8xbf16>
    %cst_25 = arith.constant dense<0.000000e+00> : vector<16x16xf32>
    %94 = tpu.matmul %92, %93, %cst_25 {dimension_numbers = #tpu.dot_dimension_numbers<[1], [1], [0], [0], [0, 0, 1, 0], [], []>} : vector<16x8xbf16>, vector<16x8xbf16>, vector<16x16xf32> -> vector<16x16xf32>
    %cst_26 = arith.constant dense<0xFF800000> : vector<16xf32>
    %95 = vector.multi_reduction <maximumf>, %94, %cst_26 [1] : vector<16x16xf32> to vector<16xf32>
    %96 = vector.shape_cast %95 : vector<16xf32> to vector<16x1xf32>
    %97 = vector.broadcast %96 : vector<16x1xf32> to vector<16x16xf32>
    %98 = arith.subf %94, %97 : vector<16x16xf32>
    %99 = math.exp %98 : vector<16x16xf32>
    %cst_27 = arith.constant dense<0.000000e+00> : vector<16xf32>
    %100 = vector.multi_reduction <add>, %99, %cst_27 [1] : vector<16x16xf32> to vector<16xf32>
    %101 = vector.shape_cast %100 : vector<16xf32> to vector<16x1xf32>
    %102 = tpu.reciprocal %101 {approx = true} : vector<16x1xf32> -> vector<16x1xf32>
    %103 = vector.broadcast %102 : vector<16x1xf32> to vector<16x16xf32>
    %104 = arith.mulf %99, %103 : vector<16x16xf32>
    %105 = arith.truncf %104 : vector<16x16xf32> to vector<16x16xbf16>
    %106 = vector.extract_strided_slice %91 {offsets = [0, 0], sizes = [16, 8], strides = [1, 1]} : vector<16x32xbf16> to vector<16x8xbf16>
    %cst_28 = arith.constant dense<0.000000e+00> : vector<16x8xf32>
    %107 = tpu.matmul %105, %106, %cst_28 {dimension_numbers = #tpu.dot_dimension_numbers<[1], [0], [0], [1], [0, 0, 1, 1], [], []>} : vector<16x16xbf16>, vector<16x8xbf16>, vector<16x8xf32> -> vector<16x8xf32>
    %108 = vector.extract_strided_slice %89 {offsets = [0, 8], sizes = [16, 8], strides = [1, 1]} : vector<16x32xbf16> to vector<16x8xbf16>
    %109 = vector.extract_strided_slice %90 {offsets = [0, 8], sizes = [16, 8], strides = [1, 1]} : vector<16x32xbf16> to vector<16x8xbf16>
    %cst_29 = arith.constant dense<0.000000e+00> : vector<16x16xf32>
    %110 = tpu.matmul %108, %109, %cst_29 {dimension_numbers = #tpu.dot_dimension_numbers<[1], [1], [0], [0], [0, 0, 1, 0], [], []>} : vector<16x8xbf16>, vector<16x8xbf16>, vector<16x16xf32> -> vector<16x16xf32>
    %cst_30 = arith.constant dense<0xFF800000> : vector<16xf32>
    %111 = vector.multi_reduction <maximumf>, %110, %cst_30 [1] : vector<16x16xf32> to vector<16xf32>
    %112 = vector.shape_cast %111 : vector<16xf32> to vector<16x1xf32>
    %113 = vector.broadcast %112 : vector<16x1xf32> to vector<16x16xf32>
    %114 = arith.subf %110, %113 : vector<16x16xf32>
    %115 = math.exp %114 : vector<16x16xf32>
    %cst_31 = arith.constant dense<0.000000e+00> : vector<16xf32>
    %116 = vector.multi_reduction <add>, %115, %cst_31 [1] : vector<16x16xf32> to vector<16xf32>
    %117 = vector.shape_cast %116 : vector<16xf32> to vector<16x1xf32>
    %118 = tpu.reciprocal %117 {approx = true} : vector<16x1xf32> -> vector<16x1xf32>
    %119 = vector.broadcast %118 : vector<16x1xf32> to vector<16x16xf32>
    %120 = arith.mulf %115, %119 : vector<16x16xf32>
    %121 = arith.truncf %120 : vector<16x16xf32> to vector<16x16xbf16>
    %122 = vector.extract_strided_slice %91 {offsets = [0, 8], sizes = [16, 8], strides = [1, 1]} : vector<16x32xbf16> to vector<16x8xbf16>
    %cst_32 = arith.constant dense<0.000000e+00> : vector<16x8xf32>
    %123 = tpu.matmul %121, %122, %cst_32 {dimension_numbers = #tpu.dot_dimension_numbers<[1], [0], [0], [1], [0, 0, 1, 1], [], []>} : vector<16x16xbf16>, vector<16x8xbf16>, vector<16x8xf32> -> vector<16x8xf32>
    %124 = vector.extract_strided_slice %89 {offsets = [0, 16], sizes = [16, 8], strides = [1, 1]} : vector<16x32xbf16> to vector<16x8xbf16>
    %125 = vector.extract_strided_slice %90 {offsets = [0, 16], sizes = [16, 8], strides = [1, 1]} : vector<16x32xbf16> to vector<16x8xbf16>
    %cst_33 = arith.constant dense<0.000000e+00> : vector<16x16xf32>
    %126 = tpu.matmul %124, %125, %cst_33 {dimension_numbers = #tpu.dot_dimension_numbers<[1], [1], [0], [0], [0, 0, 1, 0], [], []>} : vector<16x8xbf16>, vector<16x8xbf16>, vector<16x16xf32> -> vector<16x16xf32>
    %cst_34 = arith.constant dense<0xFF800000> : vector<16xf32>
    %127 = vector.multi_reduction <maximumf>, %126, %cst_34 [1] : vector<16x16xf32> to vector<16xf32>
    %128 = vector.shape_cast %127 : vector<16xf32> to vector<16x1xf32>
    %129 = vector.broadcast %128 : vector<16x1xf32> to vector<16x16xf32>
    %130 = arith.subf %126, %129 : vector<16x16xf32>
    %131 = math.exp %130 : vector<16x16xf32>
    %cst_35 = arith.constant dense<0.000000e+00> : vector<16xf32>
    %132 = vector.multi_reduction <add>, %131, %cst_35 [1] : vector<16x16xf32> to vector<16xf32>
    %133 = vector.shape_cast %132 : vector<16xf32> to vector<16x1xf32>
    %134 = tpu.reciprocal %133 {approx = true} : vector<16x1xf32> -> vector<16x1xf32>
    %135 = vector.broadcast %134 : vector<16x1xf32> to vector<16x16xf32>
    %136 = arith.mulf %131, %135 : vector<16x16xf32>
    %137 = arith.truncf %136 : vector<16x16xf32> to vector<16x16xbf16>
    %138 = vector.extract_strided_slice %91 {offsets = [0, 16], sizes = [16, 8], strides = [1, 1]} : vector<16x32xbf16> to vector<16x8xbf16>
    %cst_36 = arith.constant dense<0.000000e+00> : vector<16x8xf32>
    %139 = tpu.matmul %137, %138, %cst_36 {dimension_numbers = #tpu.dot_dimension_numbers<[1], [0], [0], [1], [0, 0, 1, 1], [], []>} : vector<16x16xbf16>, vector<16x8xbf16>, vector<16x8xf32> -> vector<16x8xf32>
    %140 = vector.extract_strided_slice %89 {offsets = [0, 24], sizes = [16, 8], strides = [1, 1]} : vector<16x32xbf16> to vector<16x8xbf16>
    %141 = vector.extract_strided_slice %90 {offsets = [0, 24], sizes = [16, 8], strides = [1, 1]} : vector<16x32xbf16> to vector<16x8xbf16>
    %cst_37 = arith.constant dense<0.000000e+00> : vector<16x16xf32>
    %142 = tpu.matmul %140, %141, %cst_37 {dimension_numbers = #tpu.dot_dimension_numbers<[1], [1], [0], [0], [0, 0, 1, 0], [], []>} : vector<16x8xbf16>, vector<16x8xbf16>, vector<16x16xf32> -> vector<16x16xf32>
    %cst_38 = arith.constant dense<0xFF800000> : vector<16xf32>
    %143 = vector.multi_reduction <maximumf>, %142, %cst_38 [1] : vector<16x16xf32> to vector<16xf32>
    %144 = vector.shape_cast %143 : vector<16xf32> to vector<16x1xf32>
    %145 = vector.broadcast %144 : vector<16x1xf32> to vector<16x16xf32>
    %146 = arith.subf %142, %145 : vector<16x16xf32>
    %147 = math.exp %146 : vector<16x16xf32>
    %cst_39 = arith.constant dense<0.000000e+00> : vector<16xf32>
    %148 = vector.multi_reduction <add>, %147, %cst_39 [1] : vector<16x16xf32> to vector<16xf32>
    %149 = vector.shape_cast %148 : vector<16xf32> to vector<16x1xf32>
    %150 = tpu.reciprocal %149 {approx = true} : vector<16x1xf32> -> vector<16x1xf32>
    %151 = vector.broadcast %150 : vector<16x1xf32> to vector<16x16xf32>
    %152 = arith.mulf %147, %151 : vector<16x16xf32>
    %153 = arith.truncf %152 : vector<16x16xf32> to vector<16x16xbf16>
    %154 = vector.extract_strided_slice %91 {offsets = [0, 24], sizes = [16, 8], strides = [1, 1]} : vector<16x32xbf16> to vector<16x8xbf16>
    %cst_40 = arith.constant dense<0.000000e+00> : vector<16x8xf32>
    %155 = tpu.matmul %153, %154, %cst_40 {dimension_numbers = #tpu.dot_dimension_numbers<[1], [0], [0], [1], [0, 0, 1, 1], [], []>} : vector<16x16xbf16>, vector<16x8xbf16>, vector<16x8xf32> -> vector<16x8xf32>
    %156 = tpu.concatenate %107, %123, %139, %155 in 1 : vector<16x8xf32>, vector<16x8xf32>, vector<16x8xf32>, vector<16x8xf32> -> vector<16x32xf32>
    %157 = tpu.concatenate %88, %156 in 0 : vector<16x32xf32>, vector<16x32xf32> -> vector<32x32xf32>
    %158 = arith.truncf %157 : vector<32x32xf32> to vector<32x32xbf16>
    %cst_41 = arith.constant dense<0.000000e+00> : vector<32x32xf32>
    %159 = tpu.matmul %158, %16, %cst_41 {dimension_numbers = #tpu.dot_dimension_numbers<[1], [0], [0], [1], [0, 0, 1, 1], [], []>} : vector<32x32xbf16>, vector<32x32xbf16>, vector<32x32xf32> -> vector<32x32xf32>
    %160 = vector.broadcast %17 : vector<1x32xf32> to vector<32x32xf32>
    %161 = arith.addf %159, %160 : vector<32x32xf32>
    %162 = arith.addf %6, %161 : vector<32x32xf32>
    %163 = vector.extract_strided_slice %0 {offsets = [2, 0], sizes = [1, 32], strides = [1, 1]} : vector<8x128xf32> to vector<1x32xf32>
    %164 = vector.extract_strided_slice %0 {offsets = [3, 0], sizes = [1, 32], strides = [1, 1]} : vector<8x128xf32> to vector<1x32xf32>
    %cst_42 = arith.constant dense<0.000000e+00> : vector<32xf32>
    %165 = vector.multi_reduction <add>, %162, %cst_42 [1] : vector<32x32xf32> to vector<32xf32>
    %166 = vector.shape_cast %165 : vector<32xf32> to vector<32x1xf32>
    %cst_43 = arith.constant 3.200000e+01 : f32
    %167 = vector.broadcast %cst_43 : f32 to vector<32x1xf32>
    %168 = arith.divf %166, %167 : vector<32x1xf32>
    %169 = vector.broadcast %168 : vector<32x1xf32> to vector<32x32xf32>
    %170 = arith.subf %162, %169 : vector<32x32xf32>
    %171 = arith.mulf %170, %170 : vector<32x32xf32>
    %cst_44 = arith.constant dense<0.000000e+00> : vector<32xf32>
    %172 = vector.multi_reduction <add>, %171, %cst_44 [1] : vector<32x32xf32> to vector<32xf32>
    %173 = vector.shape_cast %172 : vector<32xf32> to vector<32x1xf32>
    %cst_45 = arith.constant 3.200000e+01 : f32
    %174 = vector.broadcast %cst_45 : f32 to vector<32x1xf32>
    %175 = arith.divf %173, %174 : vector<32x1xf32>
    %cst_46 = arith.constant 9.99999974E-6 : f32
    %176 = vector.broadcast %cst_46 : f32 to vector<32x1xf32>
    %177 = arith.addf %175, %176 : vector<32x1xf32>
    %178 = math.rsqrt %177 : vector<32x1xf32>
    %179 = vector.broadcast %178 : vector<32x1xf32> to vector<32x32xf32>
    %180 = arith.mulf %170, %179 : vector<32x32xf32>
    %181 = vector.broadcast %163 : vector<1x32xf32> to vector<32x32xf32>
    %182 = arith.mulf %180, %181 : vector<32x32xf32>
    %183 = vector.broadcast %164 : vector<1x32xf32> to vector<32x32xf32>
    %184 = arith.addf %182, %183 : vector<32x32xf32>
    %185 = arith.truncf %184 : vector<32x32xf32> to vector<32x32xbf16>
    %c0_47 = arith.constant 0 : index
    %c256 = arith.constant 256 : index
    %186 = vector.load %arg3[%c0_47, %c256] : memref<32x384xbf16, #tpu.memory_space<vmem>>, vector<32x64xbf16>
    %cst_48 = arith.constant dense<0.000000e+00> : vector<32x64xf32>
    %187 = tpu.matmul %185, %186, %cst_48 {dimension_numbers = #tpu.dot_dimension_numbers<[1], [0], [0], [1], [0, 0, 1, 1], [], []>} : vector<32x32xbf16>, vector<32x64xbf16>, vector<32x64xf32> -> vector<32x64xf32>
    %188 = vector.extract_strided_slice %0 {offsets = [4, 0], sizes = [1, 64], strides = [1, 1]} : vector<8x128xf32> to vector<1x64xf32>
    %189 = vector.broadcast %188 : vector<1x64xf32> to vector<32x64xf32>
    %190 = arith.addf %187, %189 : vector<32x64xf32>
    %cst_49 = arith.constant 0.000000e+00 : f32
    %191 = vector.broadcast %cst_49 : f32 to vector<32x64xf32>
    %192 = arith.maximumf %190, %191 : vector<32x64xf32>
    %193 = arith.truncf %192 : vector<32x64xf32> to vector<32x64xbf16>
    %c0_50 = arith.constant 0 : index
    %c0_51 = arith.constant 0 : index
    %194 = vector.load %arg4[%c0_50, %c0_51] : memref<64x32xbf16, #tpu.memory_space<vmem>>, vector<64x32xbf16>
    %cst_52 = arith.constant dense<0.000000e+00> : vector<32x32xf32>
    %195 = tpu.matmul %193, %194, %cst_52 {dimension_numbers = #tpu.dot_dimension_numbers<[1], [0], [0], [1], [0, 0, 1, 1], [], []>} : vector<32x64xbf16>, vector<64x32xbf16>, vector<32x32xf32> -> vector<32x32xf32>
    %196 = vector.extract_strided_slice %0 {offsets = [5, 0], sizes = [1, 32], strides = [1, 1]} : vector<8x128xf32> to vector<1x32xf32>
    %197 = vector.broadcast %196 : vector<1x32xf32> to vector<32x32xf32>
    %198 = arith.addf %195, %197 : vector<32x32xf32>
    %199 = arith.addf %184, %198 : vector<32x32xf32>
    %200 = vector.extract_strided_slice %0 {offsets = [6, 0], sizes = [1, 32], strides = [1, 1]} : vector<8x128xf32> to vector<1x32xf32>
    %201 = vector.extract_strided_slice %0 {offsets = [7, 0], sizes = [1, 32], strides = [1, 1]} : vector<8x128xf32> to vector<1x32xf32>
    %cst_53 = arith.constant dense<0.000000e+00> : vector<32xf32>
    %202 = vector.multi_reduction <add>, %199, %cst_53 [1] : vector<32x32xf32> to vector<32xf32>
    %203 = vector.shape_cast %202 : vector<32xf32> to vector<32x1xf32>
    %cst_54 = arith.constant 3.200000e+01 : f32
    %204 = vector.broadcast %cst_54 : f32 to vector<32x1xf32>
    %205 = arith.divf %203, %204 : vector<32x1xf32>
    %206 = vector.broadcast %205 : vector<32x1xf32> to vector<32x32xf32>
    %207 = arith.subf %199, %206 : vector<32x32xf32>
    %208 = arith.mulf %207, %207 : vector<32x32xf32>
    %cst_55 = arith.constant dense<0.000000e+00> : vector<32xf32>
    %209 = vector.multi_reduction <add>, %208, %cst_55 [1] : vector<32x32xf32> to vector<32xf32>
    %210 = vector.shape_cast %209 : vector<32xf32> to vector<32x1xf32>
    %cst_56 = arith.constant 3.200000e+01 : f32
    %211 = vector.broadcast %cst_56 : f32 to vector<32x1xf32>
    %212 = arith.divf %210, %211 : vector<32x1xf32>
    %cst_57 = arith.constant 9.99999974E-6 : f32
    %213 = vector.broadcast %cst_57 : f32 to vector<32x1xf32>
    %214 = arith.addf %212, %213 : vector<32x1xf32>
    %215 = math.rsqrt %214 : vector<32x1xf32>
    %216 = vector.broadcast %215 : vector<32x1xf32> to vector<32x32xf32>
    %217 = arith.mulf %207, %216 : vector<32x32xf32>
    %218 = vector.broadcast %200 : vector<1x32xf32> to vector<32x32xf32>
    %219 = arith.mulf %217, %218 : vector<32x32xf32>
    %220 = vector.broadcast %201 : vector<1x32xf32> to vector<32x32xf32>
    %221 = arith.addf %219, %220 : vector<32x32xf32>
    %c0_58 = arith.constant 0 : index
    %c0_59 = arith.constant 0 : index
    %222 = vector.load %arg6[%c0_58, %c0_59] : memref<32x32xf32, #tpu.memory_space<vmem>>, vector<32x32xf32>
    tpu.vector_store %arg6[%c0_58, %c0_59], %221 {strides = array<i32>} : memref<32x32xf32, #tpu.memory_space<vmem>>, vector<32x32xf32>,
    return
  }
  func.func @transform_0(%arg0: i32) -> (i32, i32) {
    %c0_i32 = arith.constant 0 : i32
    %c0_i32_0 = arith.constant 0 : i32
    %c0_i32_1 = arith.constant 0 : i32
    return %c0_i32, %c0_i32_0 : i32, i32
  }
  func.func @transform_1(%arg0: i32) -> (i32, i32) {
    %c0_i32 = arith.constant 0 : i32
    %c0_i32_0 = arith.constant 0 : i32
    %c0_i32_1 = arith.constant 0 : i32
    return %c0_i32, %c0_i32_0 : i32, i32
  }
  func.func @transform_2(%arg0: i32) -> (i32, i32) {
    %c0_i32 = arith.constant 0 : i32
    %c0_i32_0 = arith.constant 0 : i32
    %c0_i32_1 = arith.constant 0 : i32
    return %c0_i32, %c0_i32_0 : i32, i32
  }
  func.func @transform_3(%arg0: i32) -> (i32, i32) {
    %c0_i32 = arith.constant 0 : i32
    %c0_i32_0 = arith.constant 0 : i32
    %c0_i32_1 = arith.constant 0 : i32
    return %c0_i32, %c0_i32_0 : i32, i32
  }
  func.func @transform_4(%arg0: i32) -> (i32, i32) {
    %c0_i32 = arith.constant 0 : i32
    %c0_i32_0 = arith.constant 0 : i32
    %c0_i32_1 = arith.constant 0 : i32
    return %c0_i32, %c0_i32_0 : i32, i32
  }
  func.func @transform_5(%arg0: i32) -> (i32, i32) {
    %c0_i32 = arith.constant 0 : i32
    %c0_i32_0 = arith.constant 0 : i32
    %c0_i32_1 = arith.constant 0 : i32
    return %c0_i32, %c0_i32_0 : i32, i32
  }
}

module attributes {stable_mosaic.version = 11 : i64} {
  func.func @_decoder_kernel(%arg0: i32, %arg1: memref<16x32xf32, #tpu.memory_space<vmem>>, %arg2: memref<32x32xf32, #tpu.memory_space<vmem>>, %arg3: memref<32x128xf32, #tpu.memory_space<vmem>>, %arg4: memref<32x896xbf16, #tpu.memory_space<vmem>>, %arg5: memref<64x32xbf16, #tpu.memory_space<vmem>>, %arg6: memref<16x128xf32, #tpu.memory_space<vmem>>, %arg7: memref<16x128xf32, #tpu.memory_space<vmem>>, %arg8: memref<16x128xf32, #tpu.memory_space<vmem>>, %arg9: memref<16x32xf32, #tpu.memory_space<vmem>>, %arg10: memref<32x64xf32, #tpu.memory_space<vmem>>) attributes {dimension_semantics = [#tpu.dimension_semantics<arbitrary>], iteration_bounds = array<i64: 2>, scalar_prefetch = 0 : i64, scratch_operands = 2 : i64, tpu.core_type = #tpu.core_type<tc>, window_params = [{pipeline_mode = #tpu.pipeline_mode<synchronous>, transform_indices = @transform_0, window_bounds = array<i64: 16, 32>}, {pipeline_mode = #tpu.pipeline_mode<synchronous>, transform_indices = @transform_1, window_bounds = array<i64: 32, 32>}, {pipeline_mode = #tpu.pipeline_mode<synchronous>, transform_indices = @transform_2, window_bounds = array<i64: 32, 128>}, {pipeline_mode = #tpu.pipeline_mode<synchronous>, transform_indices = @transform_3, window_bounds = array<i64: 32, 896>}, {pipeline_mode = #tpu.pipeline_mode<synchronous>, transform_indices = @transform_4, window_bounds = array<i64: 64, 32>}, {pipeline_mode = #tpu.pipeline_mode<synchronous>, transform_indices = @transform_5, window_bounds = array<i64: 16, 128>}, {pipeline_mode = #tpu.pipeline_mode<synchronous>, transform_indices = @transform_6, window_bounds = array<i64: 16, 128>}, {pipeline_mode = #tpu.pipeline_mode<synchronous>, transform_indices = @transform_7, window_bounds = array<i64: 16, 128>}]} {
    %c0 = arith.constant 0 : index
    %c0_0 = arith.constant 0 : index
    %0 = vector.load %arg6[%c0, %c0_0] : memref<16x128xf32, #tpu.memory_space<vmem>>, vector<16x128xf32>
    %c0_i32 = arith.constant 0 : i32
    %1 = arith.cmpi eq, %arg0, %c0_i32 : i32
    %2 = arith.extui %1 : i1 to i32
    %c0_i32_1 = arith.constant 0 : i32
    %3 = arith.cmpi ne, %2, %c0_i32_1 : i32
    scf.if %3 {
      %cst_104 = arith.constant 0.000000e+00 : f32
      %404 = vector.broadcast %cst_104 : f32 to vector<16x32xf32>
      %c0_105 = arith.constant 0 : index
      %c0_106 = arith.constant 0 : index
      %405 = vector.load %arg9[%c0_105, %c0_106] : memref<16x32xf32, #tpu.memory_space<vmem>>, vector<16x32xf32>
      tpu.vector_store %arg9[%c0_105, %c0_106], %404 {strides = array<i32>} : memref<16x32xf32, #tpu.memory_space<vmem>>, vector<16x32xf32>,
      %c0_107 = arith.constant 0 : index
      %c0_108 = arith.constant 0 : index
      %406 = vector.load %arg2[%c0_107, %c0_108] : memref<32x32xf32, #tpu.memory_space<vmem>>, vector<32x32xf32>
      %407 = arith.truncf %406 : vector<32x32xf32> to vector<32x32xbf16>
      %c0_109 = arith.constant 0 : index
      %c384 = arith.constant 384 : index
      %408 = vector.load %arg4[%c0_109, %c384] : memref<32x896xbf16, #tpu.memory_space<vmem>>, vector<32x64xbf16>
      %cst_110 = arith.constant dense<0.000000e+00> : vector<32x64xf32>
      %409 = tpu.matmul %407, %408, %cst_110 {dimension_numbers = #tpu.dot_dimension_numbers<[1], [0], [0], [1], [0, 0, 1, 1], [], []>} : vector<32x32xbf16>, vector<32x64xbf16>, vector<32x64xf32> -> vector<32x64xf32>
      %410 = vector.extract_strided_slice %0 {offsets = [5, 0], sizes = [1, 64], strides = [1, 1]} : vector<16x128xf32> to vector<1x64xf32>
      %411 = vector.broadcast %410 : vector<1x64xf32> to vector<32x64xf32>
      %412 = arith.addf %409, %411 : vector<32x64xf32>
      %c0_111 = arith.constant 0 : index
      %c0_112 = arith.constant 0 : index
      %413 = vector.load %arg10[%c0_111, %c0_112] : memref<32x64xf32, #tpu.memory_space<vmem>>, vector<32x64xf32>
      tpu.vector_store %arg10[%c0_111, %c0_112], %412 {strides = array<i32>} : memref<32x64xf32, #tpu.memory_space<vmem>>, vector<32x64xf32>,
    } else {
    }
    %c0_2 = arith.constant 0 : index
    %c0_3 = arith.constant 0 : index
    %4 = vector.load %arg9[%c0_2, %c0_3] : memref<16x32xf32, #tpu.memory_space<vmem>>, vector<16x32xf32>
    %c0_4 = arith.constant 0 : index
    %c0_5 = arith.constant 0 : index
    %5 = vector.load %arg1[%c0_4, %c0_5] : memref<16x32xf32, #tpu.memory_space<vmem>>, vector<16x32xf32>
    %6 = arith.addf %4, %5 : vector<16x32xf32>
    %7 = arith.truncf %6 : vector<16x32xf32> to vector<16x32xbf16>
    %c0_6 = arith.constant 0 : index
    %c0_7 = arith.constant 0 : index
    %8 = vector.load %arg4[%c0_6, %c0_7] : memref<32x896xbf16, #tpu.memory_space<vmem>>, vector<32x96xbf16>
    %cst = arith.constant dense<0.000000e+00> : vector<16x96xf32>
    %9 = tpu.matmul %7, %8, %cst {dimension_numbers = #tpu.dot_dimension_numbers<[1], [0], [0], [1], [0, 0, 1, 1], [], []>} : vector<16x32xbf16>, vector<32x96xbf16>, vector<16x96xf32> -> vector<16x96xf32>
    %10 = vector.extract_strided_slice %0 {offsets = [0, 0], sizes = [1, 96], strides = [1, 1]} : vector<16x128xf32> to vector<1x96xf32>
    %11 = vector.broadcast %10 : vector<1x96xf32> to vector<16x96xf32>
    %12 = arith.addf %9, %11 : vector<16x96xf32>
    %13 = vector.extract_strided_slice %12 {offsets = [0, 0], sizes = [16, 32], strides = [1, 1]} : vector<16x96xf32> to vector<16x32xf32>
    %14 = vector.extract_strided_slice %12 {offsets = [0, 32], sizes = [16, 32], strides = [1, 1]} : vector<16x96xf32> to vector<16x32xf32>
    %15 = vector.extract_strided_slice %12 {offsets = [0, 64], sizes = [16, 32], strides = [1, 1]} : vector<16x96xf32> to vector<16x32xf32>
    %c0_8 = arith.constant 0 : index
    %c128 = arith.constant 128 : index
    %16 = vector.load %arg4[%c0_8, %c128] : memref<32x896xbf16, #tpu.memory_space<vmem>>, vector<32x32xbf16>
    %17 = vector.extract_strided_slice %0 {offsets = [1, 0], sizes = [1, 32], strides = [1, 1]} : vector<16x128xf32> to vector<1x32xf32>
    %18 = arith.truncf %13 : vector<16x32xf32> to vector<16x32xbf16>
    %19 = arith.truncf %14 : vector<16x32xf32> to vector<16x32xbf16>
    %20 = arith.truncf %15 : vector<16x32xf32> to vector<16x32xbf16>
    %21 = vector.extract_strided_slice %18 {offsets = [0, 0], sizes = [8, 32], strides = [1, 1]} : vector<16x32xbf16> to vector<8x32xbf16>
    %22 = vector.extract_strided_slice %19 {offsets = [0, 0], sizes = [8, 32], strides = [1, 1]} : vector<16x32xbf16> to vector<8x32xbf16>
    %23 = vector.extract_strided_slice %20 {offsets = [0, 0], sizes = [8, 32], strides = [1, 1]} : vector<16x32xbf16> to vector<8x32xbf16>
    %24 = vector.extract_strided_slice %21 {offsets = [0, 0], sizes = [8, 8], strides = [1, 1]} : vector<8x32xbf16> to vector<8x8xbf16>
    %25 = vector.extract_strided_slice %22 {offsets = [0, 0], sizes = [8, 8], strides = [1, 1]} : vector<8x32xbf16> to vector<8x8xbf16>
    %cst_9 = arith.constant dense<0.000000e+00> : vector<8x8xf32>
    %26 = tpu.matmul %24, %25, %cst_9 {dimension_numbers = #tpu.dot_dimension_numbers<[1], [1], [0], [0], [0, 0, 1, 0], [], []>} : vector<8x8xbf16>, vector<8x8xbf16>, vector<8x8xf32> -> vector<8x8xf32>
    %cst_10 = arith.constant dense<0xFF800000> : vector<8xf32>
    %27 = vector.multi_reduction <maximumf>, %26, %cst_10 [1] : vector<8x8xf32> to vector<8xf32>
    %28 = vector.shape_cast %27 : vector<8xf32> to vector<8x1xf32>
    %29 = vector.broadcast %28 : vector<8x1xf32> to vector<8x8xf32>
    %30 = arith.subf %26, %29 : vector<8x8xf32>
    %31 = math.exp %30 : vector<8x8xf32>
    %cst_11 = arith.constant dense<0.000000e+00> : vector<8xf32>
    %32 = vector.multi_reduction <add>, %31, %cst_11 [1] : vector<8x8xf32> to vector<8xf32>
    %33 = vector.shape_cast %32 : vector<8xf32> to vector<8x1xf32>
    %34 = tpu.reciprocal %33 {approx = true} : vector<8x1xf32> -> vector<8x1xf32>
    %35 = vector.broadcast %34 : vector<8x1xf32> to vector<8x8xf32>
    %36 = arith.mulf %31, %35 : vector<8x8xf32>
    %37 = arith.truncf %36 : vector<8x8xf32> to vector<8x8xbf16>
    %38 = vector.extract_strided_slice %23 {offsets = [0, 0], sizes = [8, 8], strides = [1, 1]} : vector<8x32xbf16> to vector<8x8xbf16>
    %cst_12 = arith.constant dense<0.000000e+00> : vector<8x8xf32>
    %39 = tpu.matmul %37, %38, %cst_12 {dimension_numbers = #tpu.dot_dimension_numbers<[1], [0], [0], [1], [0, 0, 1, 1], [], []>} : vector<8x8xbf16>, vector<8x8xbf16>, vector<8x8xf32> -> vector<8x8xf32>
    %40 = vector.extract_strided_slice %21 {offsets = [0, 8], sizes = [8, 8], strides = [1, 1]} : vector<8x32xbf16> to vector<8x8xbf16>
    %41 = vector.extract_strided_slice %22 {offsets = [0, 8], sizes = [8, 8], strides = [1, 1]} : vector<8x32xbf16> to vector<8x8xbf16>
    %cst_13 = arith.constant dense<0.000000e+00> : vector<8x8xf32>
    %42 = tpu.matmul %40, %41, %cst_13 {dimension_numbers = #tpu.dot_dimension_numbers<[1], [1], [0], [0], [0, 0, 1, 0], [], []>} : vector<8x8xbf16>, vector<8x8xbf16>, vector<8x8xf32> -> vector<8x8xf32>
    %cst_14 = arith.constant dense<0xFF800000> : vector<8xf32>
    %43 = vector.multi_reduction <maximumf>, %42, %cst_14 [1] : vector<8x8xf32> to vector<8xf32>
    %44 = vector.shape_cast %43 : vector<8xf32> to vector<8x1xf32>
    %45 = vector.broadcast %44 : vector<8x1xf32> to vector<8x8xf32>
    %46 = arith.subf %42, %45 : vector<8x8xf32>
    %47 = math.exp %46 : vector<8x8xf32>
    %cst_15 = arith.constant dense<0.000000e+00> : vector<8xf32>
    %48 = vector.multi_reduction <add>, %47, %cst_15 [1] : vector<8x8xf32> to vector<8xf32>
    %49 = vector.shape_cast %48 : vector<8xf32> to vector<8x1xf32>
    %50 = tpu.reciprocal %49 {approx = true} : vector<8x1xf32> -> vector<8x1xf32>
    %51 = vector.broadcast %50 : vector<8x1xf32> to vector<8x8xf32>
    %52 = arith.mulf %47, %51 : vector<8x8xf32>
    %53 = arith.truncf %52 : vector<8x8xf32> to vector<8x8xbf16>
    %54 = vector.extract_strided_slice %23 {offsets = [0, 8], sizes = [8, 8], strides = [1, 1]} : vector<8x32xbf16> to vector<8x8xbf16>
    %cst_16 = arith.constant dense<0.000000e+00> : vector<8x8xf32>
    %55 = tpu.matmul %53, %54, %cst_16 {dimension_numbers = #tpu.dot_dimension_numbers<[1], [0], [0], [1], [0, 0, 1, 1], [], []>} : vector<8x8xbf16>, vector<8x8xbf16>, vector<8x8xf32> -> vector<8x8xf32>
    %56 = vector.extract_strided_slice %21 {offsets = [0, 16], sizes = [8, 8], strides = [1, 1]} : vector<8x32xbf16> to vector<8x8xbf16>
    %57 = vector.extract_strided_slice %22 {offsets = [0, 16], sizes = [8, 8], strides = [1, 1]} : vector<8x32xbf16> to vector<8x8xbf16>
    %cst_17 = arith.constant dense<0.000000e+00> : vector<8x8xf32>
    %58 = tpu.matmul %56, %57, %cst_17 {dimension_numbers = #tpu.dot_dimension_numbers<[1], [1], [0], [0], [0, 0, 1, 0], [], []>} : vector<8x8xbf16>, vector<8x8xbf16>, vector<8x8xf32> -> vector<8x8xf32>
    %cst_18 = arith.constant dense<0xFF800000> : vector<8xf32>
    %59 = vector.multi_reduction <maximumf>, %58, %cst_18 [1] : vector<8x8xf32> to vector<8xf32>
    %60 = vector.shape_cast %59 : vector<8xf32> to vector<8x1xf32>
    %61 = vector.broadcast %60 : vector<8x1xf32> to vector<8x8xf32>
    %62 = arith.subf %58, %61 : vector<8x8xf32>
    %63 = math.exp %62 : vector<8x8xf32>
    %cst_19 = arith.constant dense<0.000000e+00> : vector<8xf32>
    %64 = vector.multi_reduction <add>, %63, %cst_19 [1] : vector<8x8xf32> to vector<8xf32>
    %65 = vector.shape_cast %64 : vector<8xf32> to vector<8x1xf32>
    %66 = tpu.reciprocal %65 {approx = true} : vector<8x1xf32> -> vector<8x1xf32>
    %67 = vector.broadcast %66 : vector<8x1xf32> to vector<8x8xf32>
    %68 = arith.mulf %63, %67 : vector<8x8xf32>
    %69 = arith.truncf %68 : vector<8x8xf32> to vector<8x8xbf16>
    %70 = vector.extract_strided_slice %23 {offsets = [0, 16], sizes = [8, 8], strides = [1, 1]} : vector<8x32xbf16> to vector<8x8xbf16>
    %cst_20 = arith.constant dense<0.000000e+00> : vector<8x8xf32>
    %71 = tpu.matmul %69, %70, %cst_20 {dimension_numbers = #tpu.dot_dimension_numbers<[1], [0], [0], [1], [0, 0, 1, 1], [], []>} : vector<8x8xbf16>, vector<8x8xbf16>, vector<8x8xf32> -> vector<8x8xf32>
    %72 = vector.extract_strided_slice %21 {offsets = [0, 24], sizes = [8, 8], strides = [1, 1]} : vector<8x32xbf16> to vector<8x8xbf16>
    %73 = vector.extract_strided_slice %22 {offsets = [0, 24], sizes = [8, 8], strides = [1, 1]} : vector<8x32xbf16> to vector<8x8xbf16>
    %cst_21 = arith.constant dense<0.000000e+00> : vector<8x8xf32>
    %74 = tpu.matmul %72, %73, %cst_21 {dimension_numbers = #tpu.dot_dimension_numbers<[1], [1], [0], [0], [0, 0, 1, 0], [], []>} : vector<8x8xbf16>, vector<8x8xbf16>, vector<8x8xf32> -> vector<8x8xf32>
    %cst_22 = arith.constant dense<0xFF800000> : vector<8xf32>
    %75 = vector.multi_reduction <maximumf>, %74, %cst_22 [1] : vector<8x8xf32> to vector<8xf32>
    %76 = vector.shape_cast %75 : vector<8xf32> to vector<8x1xf32>
    %77 = vector.broadcast %76 : vector<8x1xf32> to vector<8x8xf32>
    %78 = arith.subf %74, %77 : vector<8x8xf32>
    %79 = math.exp %78 : vector<8x8xf32>
    %cst_23 = arith.constant dense<0.000000e+00> : vector<8xf32>
    %80 = vector.multi_reduction <add>, %79, %cst_23 [1] : vector<8x8xf32> to vector<8xf32>
    %81 = vector.shape_cast %80 : vector<8xf32> to vector<8x1xf32>
    %82 = tpu.reciprocal %81 {approx = true} : vector<8x1xf32> -> vector<8x1xf32>
    %83 = vector.broadcast %82 : vector<8x1xf32> to vector<8x8xf32>
    %84 = arith.mulf %79, %83 : vector<8x8xf32>
    %85 = arith.truncf %84 : vector<8x8xf32> to vector<8x8xbf16>
    %86 = vector.extract_strided_slice %23 {offsets = [0, 24], sizes = [8, 8], strides = [1, 1]} : vector<8x32xbf16> to vector<8x8xbf16>
    %cst_24 = arith.constant dense<0.000000e+00> : vector<8x8xf32>
    %87 = tpu.matmul %85, %86, %cst_24 {dimension_numbers = #tpu.dot_dimension_numbers<[1], [0], [0], [1], [0, 0, 1, 1], [], []>} : vector<8x8xbf16>, vector<8x8xbf16>, vector<8x8xf32> -> vector<8x8xf32>
    %88 = tpu.concatenate %39, %55, %71, %87 in 1 : vector<8x8xf32>, vector<8x8xf32>, vector<8x8xf32>, vector<8x8xf32> -> vector<8x32xf32>
    %89 = vector.extract_strided_slice %18 {offsets = [8, 0], sizes = [8, 32], strides = [1, 1]} : vector<16x32xbf16> to vector<8x32xbf16>
    %90 = vector.extract_strided_slice %19 {offsets = [8, 0], sizes = [8, 32], strides = [1, 1]} : vector<16x32xbf16> to vector<8x32xbf16>
    %91 = vector.extract_strided_slice %20 {offsets = [8, 0], sizes = [8, 32], strides = [1, 1]} : vector<16x32xbf16> to vector<8x32xbf16>
    %92 = vector.extract_strided_slice %89 {offsets = [0, 0], sizes = [8, 8], strides = [1, 1]} : vector<8x32xbf16> to vector<8x8xbf16>
    %93 = vector.extract_strided_slice %90 {offsets = [0, 0], sizes = [8, 8], strides = [1, 1]} : vector<8x32xbf16> to vector<8x8xbf16>
    %cst_25 = arith.constant dense<0.000000e+00> : vector<8x8xf32>
    %94 = tpu.matmul %92, %93, %cst_25 {dimension_numbers = #tpu.dot_dimension_numbers<[1], [1], [0], [0], [0, 0, 1, 0], [], []>} : vector<8x8xbf16>, vector<8x8xbf16>, vector<8x8xf32> -> vector<8x8xf32>
    %cst_26 = arith.constant dense<0xFF800000> : vector<8xf32>
    %95 = vector.multi_reduction <maximumf>, %94, %cst_26 [1] : vector<8x8xf32> to vector<8xf32>
    %96 = vector.shape_cast %95 : vector<8xf32> to vector<8x1xf32>
    %97 = vector.broadcast %96 : vector<8x1xf32> to vector<8x8xf32>
    %98 = arith.subf %94, %97 : vector<8x8xf32>
    %99 = math.exp %98 : vector<8x8xf32>
    %cst_27 = arith.constant dense<0.000000e+00> : vector<8xf32>
    %100 = vector.multi_reduction <add>, %99, %cst_27 [1] : vector<8x8xf32> to vector<8xf32>
    %101 = vector.shape_cast %100 : vector<8xf32> to vector<8x1xf32>
    %102 = tpu.reciprocal %101 {approx = true} : vector<8x1xf32> -> vector<8x1xf32>
    %103 = vector.broadcast %102 : vector<8x1xf32> to vector<8x8xf32>
    %104 = arith.mulf %99, %103 : vector<8x8xf32>
    %105 = arith.truncf %104 : vector<8x8xf32> to vector<8x8xbf16>
    %106 = vector.extract_strided_slice %91 {offsets = [0, 0], sizes = [8, 8], strides = [1, 1]} : vector<8x32xbf16> to vector<8x8xbf16>
    %cst_28 = arith.constant dense<0.000000e+00> : vector<8x8xf32>
    %107 = tpu.matmul %105, %106, %cst_28 {dimension_numbers = #tpu.dot_dimension_numbers<[1], [0], [0], [1], [0, 0, 1, 1], [], []>} : vector<8x8xbf16>, vector<8x8xbf16>, vector<8x8xf32> -> vector<8x8xf32>
    %108 = vector.extract_strided_slice %89 {offsets = [0, 8], sizes = [8, 8], strides = [1, 1]} : vector<8x32xbf16> to vector<8x8xbf16>
    %109 = vector.extract_strided_slice %90 {offsets = [0, 8], sizes = [8, 8], strides = [1, 1]} : vector<8x32xbf16> to vector<8x8xbf16>
    %cst_29 = arith.constant dense<0.000000e+00> : vector<8x8xf32>
    %110 = tpu.matmul %108, %109, %cst_29 {dimension_numbers = #tpu.dot_dimension_numbers<[1], [1], [0], [0], [0, 0, 1, 0], [], []>} : vector<8x8xbf16>, vector<8x8xbf16>, vector<8x8xf32> -> vector<8x8xf32>
    %cst_30 = arith.constant dense<0xFF800000> : vector<8xf32>
    %111 = vector.multi_reduction <maximumf>, %110, %cst_30 [1] : vector<8x8xf32> to vector<8xf32>
    %112 = vector.shape_cast %111 : vector<8xf32> to vector<8x1xf32>
    %113 = vector.broadcast %112 : vector<8x1xf32> to vector<8x8xf32>
    %114 = arith.subf %110, %113 : vector<8x8xf32>
    %115 = math.exp %114 : vector<8x8xf32>
    %cst_31 = arith.constant dense<0.000000e+00> : vector<8xf32>
    %116 = vector.multi_reduction <add>, %115, %cst_31 [1] : vector<8x8xf32> to vector<8xf32>
    %117 = vector.shape_cast %116 : vector<8xf32> to vector<8x1xf32>
    %118 = tpu.reciprocal %117 {approx = true} : vector<8x1xf32> -> vector<8x1xf32>
    %119 = vector.broadcast %118 : vector<8x1xf32> to vector<8x8xf32>
    %120 = arith.mulf %115, %119 : vector<8x8xf32>
    %121 = arith.truncf %120 : vector<8x8xf32> to vector<8x8xbf16>
    %122 = vector.extract_strided_slice %91 {offsets = [0, 8], sizes = [8, 8], strides = [1, 1]} : vector<8x32xbf16> to vector<8x8xbf16>
    %cst_32 = arith.constant dense<0.000000e+00> : vector<8x8xf32>
    %123 = tpu.matmul %121, %122, %cst_32 {dimension_numbers = #tpu.dot_dimension_numbers<[1], [0], [0], [1], [0, 0, 1, 1], [], []>} : vector<8x8xbf16>, vector<8x8xbf16>, vector<8x8xf32> -> vector<8x8xf32>
    %124 = vector.extract_strided_slice %89 {offsets = [0, 16], sizes = [8, 8], strides = [1, 1]} : vector<8x32xbf16> to vector<8x8xbf16>
    %125 = vector.extract_strided_slice %90 {offsets = [0, 16], sizes = [8, 8], strides = [1, 1]} : vector<8x32xbf16> to vector<8x8xbf16>
    %cst_33 = arith.constant dense<0.000000e+00> : vector<8x8xf32>
    %126 = tpu.matmul %124, %125, %cst_33 {dimension_numbers = #tpu.dot_dimension_numbers<[1], [1], [0], [0], [0, 0, 1, 0], [], []>} : vector<8x8xbf16>, vector<8x8xbf16>, vector<8x8xf32> -> vector<8x8xf32>
    %cst_34 = arith.constant dense<0xFF800000> : vector<8xf32>
    %127 = vector.multi_reduction <maximumf>, %126, %cst_34 [1] : vector<8x8xf32> to vector<8xf32>
    %128 = vector.shape_cast %127 : vector<8xf32> to vector<8x1xf32>
    %129 = vector.broadcast %128 : vector<8x1xf32> to vector<8x8xf32>
    %130 = arith.subf %126, %129 : vector<8x8xf32>
    %131 = math.exp %130 : vector<8x8xf32>
    %cst_35 = arith.constant dense<0.000000e+00> : vector<8xf32>
    %132 = vector.multi_reduction <add>, %131, %cst_35 [1] : vector<8x8xf32> to vector<8xf32>
    %133 = vector.shape_cast %132 : vector<8xf32> to vector<8x1xf32>
    %134 = tpu.reciprocal %133 {approx = true} : vector<8x1xf32> -> vector<8x1xf32>
    %135 = vector.broadcast %134 : vector<8x1xf32> to vector<8x8xf32>
    %136 = arith.mulf %131, %135 : vector<8x8xf32>
    %137 = arith.truncf %136 : vector<8x8xf32> to vector<8x8xbf16>
    %138 = vector.extract_strided_slice %91 {offsets = [0, 16], sizes = [8, 8], strides = [1, 1]} : vector<8x32xbf16> to vector<8x8xbf16>
    %cst_36 = arith.constant dense<0.000000e+00> : vector<8x8xf32>
    %139 = tpu.matmul %137, %138, %cst_36 {dimension_numbers = #tpu.dot_dimension_numbers<[1], [0], [0], [1], [0, 0, 1, 1], [], []>} : vector<8x8xbf16>, vector<8x8xbf16>, vector<8x8xf32> -> vector<8x8xf32>
    %140 = vector.extract_strided_slice %89 {offsets = [0, 24], sizes = [8, 8], strides = [1, 1]} : vector<8x32xbf16> to vector<8x8xbf16>
    %141 = vector.extract_strided_slice %90 {offsets = [0, 24], sizes = [8, 8], strides = [1, 1]} : vector<8x32xbf16> to vector<8x8xbf16>
    %cst_37 = arith.constant dense<0.000000e+00> : vector<8x8xf32>
    %142 = tpu.matmul %140, %141, %cst_37 {dimension_numbers = #tpu.dot_dimension_numbers<[1], [1], [0], [0], [0, 0, 1, 0], [], []>} : vector<8x8xbf16>, vector<8x8xbf16>, vector<8x8xf32> -> vector<8x8xf32>
    %cst_38 = arith.constant dense<0xFF800000> : vector<8xf32>
    %143 = vector.multi_reduction <maximumf>, %142, %cst_38 [1] : vector<8x8xf32> to vector<8xf32>
    %144 = vector.shape_cast %143 : vector<8xf32> to vector<8x1xf32>
    %145 = vector.broadcast %144 : vector<8x1xf32> to vector<8x8xf32>
    %146 = arith.subf %142, %145 : vector<8x8xf32>
    %147 = math.exp %146 : vector<8x8xf32>
    %cst_39 = arith.constant dense<0.000000e+00> : vector<8xf32>
    %148 = vector.multi_reduction <add>, %147, %cst_39 [1] : vector<8x8xf32> to vector<8xf32>
    %149 = vector.shape_cast %148 : vector<8xf32> to vector<8x1xf32>
    %150 = tpu.reciprocal %149 {approx = true} : vector<8x1xf32> -> vector<8x1xf32>
    %151 = vector.broadcast %150 : vector<8x1xf32> to vector<8x8xf32>
    %152 = arith.mulf %147, %151 : vector<8x8xf32>
    %153 = arith.truncf %152 : vector<8x8xf32> to vector<8x8xbf16>
    %154 = vector.extract_strided_slice %91 {offsets = [0, 24], sizes = [8, 8], strides = [1, 1]} : vector<8x32xbf16> to vector<8x8xbf16>
    %cst_40 = arith.constant dense<0.000000e+00> : vector<8x8xf32>
    %155 = tpu.matmul %153, %154, %cst_40 {dimension_numbers = #tpu.dot_dimension_numbers<[1], [0], [0], [1], [0, 0, 1, 1], [], []>} : vector<8x8xbf16>, vector<8x8xbf16>, vector<8x8xf32> -> vector<8x8xf32>
    %156 = tpu.concatenate %107, %123, %139, %155 in 1 : vector<8x8xf32>, vector<8x8xf32>, vector<8x8xf32>, vector<8x8xf32> -> vector<8x32xf32>
    %157 = tpu.concatenate %88, %156 in 0 : vector<8x32xf32>, vector<8x32xf32> -> vector<16x32xf32>
    %158 = arith.truncf %157 : vector<16x32xf32> to vector<16x32xbf16>
    %cst_41 = arith.constant dense<0.000000e+00> : vector<16x32xf32>
    %159 = tpu.matmul %158, %16, %cst_41 {dimension_numbers = #tpu.dot_dimension_numbers<[1], [0], [0], [1], [0, 0, 1, 1], [], []>} : vector<16x32xbf16>, vector<32x32xbf16>, vector<16x32xf32> -> vector<16x32xf32>
    %160 = vector.broadcast %17 : vector<1x32xf32> to vector<16x32xf32>
    %161 = arith.addf %159, %160 : vector<16x32xf32>
    %162 = arith.addf %6, %161 : vector<16x32xf32>
    %163 = vector.extract_strided_slice %0 {offsets = [2, 0], sizes = [1, 32], strides = [1, 1]} : vector<16x128xf32> to vector<1x32xf32>
    %164 = vector.extract_strided_slice %0 {offsets = [3, 0], sizes = [1, 32], strides = [1, 1]} : vector<16x128xf32> to vector<1x32xf32>
    %cst_42 = arith.constant dense<0.000000e+00> : vector<16xf32>
    %165 = vector.multi_reduction <add>, %162, %cst_42 [1] : vector<16x32xf32> to vector<16xf32>
    %166 = vector.shape_cast %165 : vector<16xf32> to vector<16x1xf32>
    %cst_43 = arith.constant 3.200000e+01 : f32
    %167 = vector.broadcast %cst_43 : f32 to vector<16x1xf32>
    %168 = arith.divf %166, %167 : vector<16x1xf32>
    %169 = vector.broadcast %168 : vector<16x1xf32> to vector<16x32xf32>
    %170 = arith.subf %162, %169 : vector<16x32xf32>
    %171 = arith.mulf %170, %170 : vector<16x32xf32>
    %cst_44 = arith.constant dense<0.000000e+00> : vector<16xf32>
    %172 = vector.multi_reduction <add>, %171, %cst_44 [1] : vector<16x32xf32> to vector<16xf32>
    %173 = vector.shape_cast %172 : vector<16xf32> to vector<16x1xf32>
    %cst_45 = arith.constant 3.200000e+01 : f32
    %174 = vector.broadcast %cst_45 : f32 to vector<16x1xf32>
    %175 = arith.divf %173, %174 : vector<16x1xf32>
    %cst_46 = arith.constant 9.99999974E-6 : f32
    %176 = vector.broadcast %cst_46 : f32 to vector<16x1xf32>
    %177 = arith.addf %175, %176 : vector<16x1xf32>
    %178 = math.rsqrt %177 : vector<16x1xf32>
    %179 = vector.broadcast %178 : vector<16x1xf32> to vector<16x32xf32>
    %180 = arith.mulf %170, %179 : vector<16x32xf32>
    %181 = vector.broadcast %163 : vector<1x32xf32> to vector<16x32xf32>
    %182 = arith.mulf %180, %181 : vector<16x32xf32>
    %183 = vector.broadcast %164 : vector<1x32xf32> to vector<16x32xf32>
    %184 = arith.addf %182, %183 : vector<16x32xf32>
    %185 = arith.truncf %184 : vector<16x32xf32> to vector<16x32xbf16>
    %c0_47 = arith.constant 0 : index
    %c256 = arith.constant 256 : index
    %186 = vector.load %arg4[%c0_47, %c256] : memref<32x896xbf16, #tpu.memory_space<vmem>>, vector<32x32xbf16>
    %cst_48 = arith.constant dense<0.000000e+00> : vector<16x32xf32>
    %187 = tpu.matmul %185, %186, %cst_48 {dimension_numbers = #tpu.dot_dimension_numbers<[1], [0], [0], [1], [0, 0, 1, 1], [], []>} : vector<16x32xbf16>, vector<32x32xbf16>, vector<16x32xf32> -> vector<16x32xf32>
    %188 = vector.extract_strided_slice %0 {offsets = [4, 0], sizes = [1, 32], strides = [1, 1]} : vector<16x128xf32> to vector<1x32xf32>
    %189 = vector.broadcast %188 : vector<1x32xf32> to vector<16x32xf32>
    %190 = arith.addf %187, %189 : vector<16x32xf32>
    %c0_49 = arith.constant 0 : index
    %c0_50 = arith.constant 0 : index
    %191 = vector.load %arg10[%c0_49, %c0_50] : memref<32x64xf32, #tpu.memory_space<vmem>>, vector<32x64xf32>
    %192 = vector.extract_strided_slice %191 {offsets = [0, 0], sizes = [32, 32], strides = [1, 1]} : vector<32x64xf32> to vector<32x32xf32>
    %193 = vector.extract_strided_slice %191 {offsets = [0, 32], sizes = [32, 32], strides = [1, 1]} : vector<32x64xf32> to vector<32x32xf32>
    %c0_51 = arith.constant 0 : index
    %c512 = arith.constant 512 : index
    %194 = vector.load %arg4[%c0_51, %c512] : memref<32x896xbf16, #tpu.memory_space<vmem>>, vector<32x32xbf16>
    %195 = vector.extract_strided_slice %0 {offsets = [6, 0], sizes = [1, 32], strides = [1, 1]} : vector<16x128xf32> to vector<1x32xf32>
    %196 = arith.truncf %190 : vector<16x32xf32> to vector<16x32xbf16>
    %197 = arith.truncf %192 : vector<32x32xf32> to vector<32x32xbf16>
    %198 = arith.truncf %193 : vector<32x32xf32> to vector<32x32xbf16>
    %199 = vector.extract_strided_slice %196 {offsets = [0, 0], sizes = [8, 32], strides = [1, 1]} : vector<16x32xbf16> to vector<8x32xbf16>
    %200 = vector.extract_strided_slice %197 {offsets = [0, 0], sizes = [16, 32], strides = [1, 1]} : vector<32x32xbf16> to vector<16x32xbf16>
    %201 = vector.extract_strided_slice %198 {offsets = [0, 0], sizes = [16, 32], strides = [1, 1]} : vector<32x32xbf16> to vector<16x32xbf16>
    %202 = vector.extract_strided_slice %199 {offsets = [0, 0], sizes = [8, 8], strides = [1, 1]} : vector<8x32xbf16> to vector<8x8xbf16>
    %203 = vector.extract_strided_slice %200 {offsets = [0, 0], sizes = [16, 8], strides = [1, 1]} : vector<16x32xbf16> to vector<16x8xbf16>
    %cst_52 = arith.constant dense<0.000000e+00> : vector<8x16xf32>
    %204 = tpu.matmul %202, %203, %cst_52 {dimension_numbers = #tpu.dot_dimension_numbers<[1], [1], [0], [0], [0, 0, 1, 0], [], []>} : vector<8x8xbf16>, vector<16x8xbf16>, vector<8x16xf32> -> vector<8x16xf32>
    %cst_53 = arith.constant dense<0xFF800000> : vector<8xf32>
    %205 = vector.multi_reduction <maximumf>, %204, %cst_53 [1] : vector<8x16xf32> to vector<8xf32>
    %206 = vector.shape_cast %205 : vector<8xf32> to vector<8x1xf32>
    %207 = vector.broadcast %206 : vector<8x1xf32> to vector<8x16xf32>
    %208 = arith.subf %204, %207 : vector<8x16xf32>
    %209 = math.exp %208 : vector<8x16xf32>
    %cst_54 = arith.constant dense<0.000000e+00> : vector<8xf32>
    %210 = vector.multi_reduction <add>, %209, %cst_54 [1] : vector<8x16xf32> to vector<8xf32>
    %211 = vector.shape_cast %210 : vector<8xf32> to vector<8x1xf32>
    %212 = tpu.reciprocal %211 {approx = true} : vector<8x1xf32> -> vector<8x1xf32>
    %213 = vector.broadcast %212 : vector<8x1xf32> to vector<8x16xf32>
    %214 = arith.mulf %209, %213 : vector<8x16xf32>
    %215 = arith.truncf %214 : vector<8x16xf32> to vector<8x16xbf16>
    %216 = vector.extract_strided_slice %201 {offsets = [0, 0], sizes = [16, 8], strides = [1, 1]} : vector<16x32xbf16> to vector<16x8xbf16>
    %cst_55 = arith.constant dense<0.000000e+00> : vector<8x8xf32>
    %217 = tpu.matmul %215, %216, %cst_55 {dimension_numbers = #tpu.dot_dimension_numbers<[1], [0], [0], [1], [0, 0, 1, 1], [], []>} : vector<8x16xbf16>, vector<16x8xbf16>, vector<8x8xf32> -> vector<8x8xf32>
    %218 = vector.extract_strided_slice %199 {offsets = [0, 8], sizes = [8, 8], strides = [1, 1]} : vector<8x32xbf16> to vector<8x8xbf16>
    %219 = vector.extract_strided_slice %200 {offsets = [0, 8], sizes = [16, 8], strides = [1, 1]} : vector<16x32xbf16> to vector<16x8xbf16>
    %cst_56 = arith.constant dense<0.000000e+00> : vector<8x16xf32>
    %220 = tpu.matmul %218, %219, %cst_56 {dimension_numbers = #tpu.dot_dimension_numbers<[1], [1], [0], [0], [0, 0, 1, 0], [], []>} : vector<8x8xbf16>, vector<16x8xbf16>, vector<8x16xf32> -> vector<8x16xf32>
    %cst_57 = arith.constant dense<0xFF800000> : vector<8xf32>
    %221 = vector.multi_reduction <maximumf>, %220, %cst_57 [1] : vector<8x16xf32> to vector<8xf32>
    %222 = vector.shape_cast %221 : vector<8xf32> to vector<8x1xf32>
    %223 = vector.broadcast %222 : vector<8x1xf32> to vector<8x16xf32>
    %224 = arith.subf %220, %223 : vector<8x16xf32>
    %225 = math.exp %224 : vector<8x16xf32>
    %cst_58 = arith.constant dense<0.000000e+00> : vector<8xf32>
    %226 = vector.multi_reduction <add>, %225, %cst_58 [1] : vector<8x16xf32> to vector<8xf32>
    %227 = vector.shape_cast %226 : vector<8xf32> to vector<8x1xf32>
    %228 = tpu.reciprocal %227 {approx = true} : vector<8x1xf32> -> vector<8x1xf32>
    %229 = vector.broadcast %228 : vector<8x1xf32> to vector<8x16xf32>
    %230 = arith.mulf %225, %229 : vector<8x16xf32>
    %231 = arith.truncf %230 : vector<8x16xf32> to vector<8x16xbf16>
    %232 = vector.extract_strided_slice %201 {offsets = [0, 8], sizes = [16, 8], strides = [1, 1]} : vector<16x32xbf16> to vector<16x8xbf16>
    %cst_59 = arith.constant dense<0.000000e+00> : vector<8x8xf32>
    %233 = tpu.matmul %231, %232, %cst_59 {dimension_numbers = #tpu.dot_dimension_numbers<[1], [0], [0], [1], [0, 0, 1, 1], [], []>} : vector<8x16xbf16>, vector<16x8xbf16>, vector<8x8xf32> -> vector<8x8xf32>
    %234 = vector.extract_strided_slice %199 {offsets = [0, 16], sizes = [8, 8], strides = [1, 1]} : vector<8x32xbf16> to vector<8x8xbf16>
    %235 = vector.extract_strided_slice %200 {offsets = [0, 16], sizes = [16, 8], strides = [1, 1]} : vector<16x32xbf16> to vector<16x8xbf16>
    %cst_60 = arith.constant dense<0.000000e+00> : vector<8x16xf32>
    %236 = tpu.matmul %234, %235, %cst_60 {dimension_numbers = #tpu.dot_dimension_numbers<[1], [1], [0], [0], [0, 0, 1, 0], [], []>} : vector<8x8xbf16>, vector<16x8xbf16>, vector<8x16xf32> -> vector<8x16xf32>
    %cst_61 = arith.constant dense<0xFF800000> : vector<8xf32>
    %237 = vector.multi_reduction <maximumf>, %236, %cst_61 [1] : vector<8x16xf32> to vector<8xf32>
    %238 = vector.shape_cast %237 : vector<8xf32> to vector<8x1xf32>
    %239 = vector.broadcast %238 : vector<8x1xf32> to vector<8x16xf32>
    %240 = arith.subf %236, %239 : vector<8x16xf32>
    %241 = math.exp %240 : vector<8x16xf32>
    %cst_62 = arith.constant dense<0.000000e+00> : vector<8xf32>
    %242 = vector.multi_reduction <add>, %241, %cst_62 [1] : vector<8x16xf32> to vector<8xf32>
    %243 = vector.shape_cast %242 : vector<8xf32> to vector<8x1xf32>
    %244 = tpu.reciprocal %243 {approx = true} : vector<8x1xf32> -> vector<8x1xf32>
    %245 = vector.broadcast %244 : vector<8x1xf32> to vector<8x16xf32>
    %246 = arith.mulf %241, %245 : vector<8x16xf32>
    %247 = arith.truncf %246 : vector<8x16xf32> to vector<8x16xbf16>
    %248 = vector.extract_strided_slice %201 {offsets = [0, 16], sizes = [16, 8], strides = [1, 1]} : vector<16x32xbf16> to vector<16x8xbf16>
    %cst_63 = arith.constant dense<0.000000e+00> : vector<8x8xf32>
    %249 = tpu.matmul %247, %248, %cst_63 {dimension_numbers = #tpu.dot_dimension_numbers<[1], [0], [0], [1], [0, 0, 1, 1], [], []>} : vector<8x16xbf16>, vector<16x8xbf16>, vector<8x8xf32> -> vector<8x8xf32>
    %250 = vector.extract_strided_slice %199 {offsets = [0, 24], sizes = [8, 8], strides = [1, 1]} : vector<8x32xbf16> to vector<8x8xbf16>
    %251 = vector.extract_strided_slice %200 {offsets = [0, 24], sizes = [16, 8], strides = [1, 1]} : vector<16x32xbf16> to vector<16x8xbf16>
    %cst_64 = arith.constant dense<0.000000e+00> : vector<8x16xf32>
    %252 = tpu.matmul %250, %251, %cst_64 {dimension_numbers = #tpu.dot_dimension_numbers<[1], [1], [0], [0], [0, 0, 1, 0], [], []>} : vector<8x8xbf16>, vector<16x8xbf16>, vector<8x16xf32> -> vector<8x16xf32>
    %cst_65 = arith.constant dense<0xFF800000> : vector<8xf32>
    %253 = vector.multi_reduction <maximumf>, %252, %cst_65 [1] : vector<8x16xf32> to vector<8xf32>
    %254 = vector.shape_cast %253 : vector<8xf32> to vector<8x1xf32>
    %255 = vector.broadcast %254 : vector<8x1xf32> to vector<8x16xf32>
    %256 = arith.subf %252, %255 : vector<8x16xf32>
    %257 = math.exp %256 : vector<8x16xf32>
    %cst_66 = arith.constant dense<0.000000e+00> : vector<8xf32>
    %258 = vector.multi_reduction <add>, %257, %cst_66 [1] : vector<8x16xf32> to vector<8xf32>
    %259 = vector.shape_cast %258 : vector<8xf32> to vector<8x1xf32>
    %260 = tpu.reciprocal %259 {approx = true} : vector<8x1xf32> -> vector<8x1xf32>
    %261 = vector.broadcast %260 : vector<8x1xf32> to vector<8x16xf32>
    %262 = arith.mulf %257, %261 : vector<8x16xf32>
    %263 = arith.truncf %262 : vector<8x16xf32> to vector<8x16xbf16>
    %264 = vector.extract_strided_slice %201 {offsets = [0, 24], sizes = [16, 8], strides = [1, 1]} : vector<16x32xbf16> to vector<16x8xbf16>
    %cst_67 = arith.constant dense<0.000000e+00> : vector<8x8xf32>
    %265 = tpu.matmul %263, %264, %cst_67 {dimension_numbers = #tpu.dot_dimension_numbers<[1], [0], [0], [1], [0, 0, 1, 1], [], []>} : vector<8x16xbf16>, vector<16x8xbf16>, vector<8x8xf32> -> vector<8x8xf32>
    %266 = tpu.concatenate %217, %233, %249, %265 in 1 : vector<8x8xf32>, vector<8x8xf32>, vector<8x8xf32>, vector<8x8xf32> -> vector<8x32xf32>
    %267 = vector.extract_strided_slice %196 {offsets = [8, 0], sizes = [8, 32], strides = [1, 1]} : vector<16x32xbf16> to vector<8x32xbf16>
    %268 = vector.extract_strided_slice %197 {offsets = [16, 0], sizes = [16, 32], strides = [1, 1]} : vector<32x32xbf16> to vector<16x32xbf16>
    %269 = vector.extract_strided_slice %198 {offsets = [16, 0], sizes = [16, 32], strides = [1, 1]} : vector<32x32xbf16> to vector<16x32xbf16>
    %270 = vector.extract_strided_slice %267 {offsets = [0, 0], sizes = [8, 8], strides = [1, 1]} : vector<8x32xbf16> to vector<8x8xbf16>
    %271 = vector.extract_strided_slice %268 {offsets = [0, 0], sizes = [16, 8], strides = [1, 1]} : vector<16x32xbf16> to vector<16x8xbf16>
    %cst_68 = arith.constant dense<0.000000e+00> : vector<8x16xf32>
    %272 = tpu.matmul %270, %271, %cst_68 {dimension_numbers = #tpu.dot_dimension_numbers<[1], [1], [0], [0], [0, 0, 1, 0], [], []>} : vector<8x8xbf16>, vector<16x8xbf16>, vector<8x16xf32> -> vector<8x16xf32>
    %cst_69 = arith.constant dense<0xFF800000> : vector<8xf32>
    %273 = vector.multi_reduction <maximumf>, %272, %cst_69 [1] : vector<8x16xf32> to vector<8xf32>
    %274 = vector.shape_cast %273 : vector<8xf32> to vector<8x1xf32>
    %275 = vector.broadcast %274 : vector<8x1xf32> to vector<8x16xf32>
    %276 = arith.subf %272, %275 : vector<8x16xf32>
    %277 = math.exp %276 : vector<8x16xf32>
    %cst_70 = arith.constant dense<0.000000e+00> : vector<8xf32>
    %278 = vector.multi_reduction <add>, %277, %cst_70 [1] : vector<8x16xf32> to vector<8xf32>
    %279 = vector.shape_cast %278 : vector<8xf32> to vector<8x1xf32>
    %280 = tpu.reciprocal %279 {approx = true} : vector<8x1xf32> -> vector<8x1xf32>
    %281 = vector.broadcast %280 : vector<8x1xf32> to vector<8x16xf32>
    %282 = arith.mulf %277, %281 : vector<8x16xf32>
    %283 = arith.truncf %282 : vector<8x16xf32> to vector<8x16xbf16>
    %284 = vector.extract_strided_slice %269 {offsets = [0, 0], sizes = [16, 8], strides = [1, 1]} : vector<16x32xbf16> to vector<16x8xbf16>
    %cst_71 = arith.constant dense<0.000000e+00> : vector<8x8xf32>
    %285 = tpu.matmul %283, %284, %cst_71 {dimension_numbers = #tpu.dot_dimension_numbers<[1], [0], [0], [1], [0, 0, 1, 1], [], []>} : vector<8x16xbf16>, vector<16x8xbf16>, vector<8x8xf32> -> vector<8x8xf32>
    %286 = vector.extract_strided_slice %267 {offsets = [0, 8], sizes = [8, 8], strides = [1, 1]} : vector<8x32xbf16> to vector<8x8xbf16>
    %287 = vector.extract_strided_slice %268 {offsets = [0, 8], sizes = [16, 8], strides = [1, 1]} : vector<16x32xbf16> to vector<16x8xbf16>
    %cst_72 = arith.constant dense<0.000000e+00> : vector<8x16xf32>
    %288 = tpu.matmul %286, %287, %cst_72 {dimension_numbers = #tpu.dot_dimension_numbers<[1], [1], [0], [0], [0, 0, 1, 0], [], []>} : vector<8x8xbf16>, vector<16x8xbf16>, vector<8x16xf32> -> vector<8x16xf32>
    %cst_73 = arith.constant dense<0xFF800000> : vector<8xf32>
    %289 = vector.multi_reduction <maximumf>, %288, %cst_73 [1] : vector<8x16xf32> to vector<8xf32>
    %290 = vector.shape_cast %289 : vector<8xf32> to vector<8x1xf32>
    %291 = vector.broadcast %290 : vector<8x1xf32> to vector<8x16xf32>
    %292 = arith.subf %288, %291 : vector<8x16xf32>
    %293 = math.exp %292 : vector<8x16xf32>
    %cst_74 = arith.constant dense<0.000000e+00> : vector<8xf32>
    %294 = vector.multi_reduction <add>, %293, %cst_74 [1] : vector<8x16xf32> to vector<8xf32>
    %295 = vector.shape_cast %294 : vector<8xf32> to vector<8x1xf32>
    %296 = tpu.reciprocal %295 {approx = true} : vector<8x1xf32> -> vector<8x1xf32>
    %297 = vector.broadcast %296 : vector<8x1xf32> to vector<8x16xf32>
    %298 = arith.mulf %293, %297 : vector<8x16xf32>
    %299 = arith.truncf %298 : vector<8x16xf32> to vector<8x16xbf16>
    %300 = vector.extract_strided_slice %269 {offsets = [0, 8], sizes = [16, 8], strides = [1, 1]} : vector<16x32xbf16> to vector<16x8xbf16>
    %cst_75 = arith.constant dense<0.000000e+00> : vector<8x8xf32>
    %301 = tpu.matmul %299, %300, %cst_75 {dimension_numbers = #tpu.dot_dimension_numbers<[1], [0], [0], [1], [0, 0, 1, 1], [], []>} : vector<8x16xbf16>, vector<16x8xbf16>, vector<8x8xf32> -> vector<8x8xf32>
    %302 = vector.extract_strided_slice %267 {offsets = [0, 16], sizes = [8, 8], strides = [1, 1]} : vector<8x32xbf16> to vector<8x8xbf16>
    %303 = vector.extract_strided_slice %268 {offsets = [0, 16], sizes = [16, 8], strides = [1, 1]} : vector<16x32xbf16> to vector<16x8xbf16>
    %cst_76 = arith.constant dense<0.000000e+00> : vector<8x16xf32>
    %304 = tpu.matmul %302, %303, %cst_76 {dimension_numbers = #tpu.dot_dimension_numbers<[1], [1], [0], [0], [0, 0, 1, 0], [], []>} : vector<8x8xbf16>, vector<16x8xbf16>, vector<8x16xf32> -> vector<8x16xf32>
    %cst_77 = arith.constant dense<0xFF800000> : vector<8xf32>
    %305 = vector.multi_reduction <maximumf>, %304, %cst_77 [1] : vector<8x16xf32> to vector<8xf32>
    %306 = vector.shape_cast %305 : vector<8xf32> to vector<8x1xf32>
    %307 = vector.broadcast %306 : vector<8x1xf32> to vector<8x16xf32>
    %308 = arith.subf %304, %307 : vector<8x16xf32>
    %309 = math.exp %308 : vector<8x16xf32>
    %cst_78 = arith.constant dense<0.000000e+00> : vector<8xf32>
    %310 = vector.multi_reduction <add>, %309, %cst_78 [1] : vector<8x16xf32> to vector<8xf32>
    %311 = vector.shape_cast %310 : vector<8xf32> to vector<8x1xf32>
    %312 = tpu.reciprocal %311 {approx = true} : vector<8x1xf32> -> vector<8x1xf32>
    %313 = vector.broadcast %312 : vector<8x1xf32> to vector<8x16xf32>
    %314 = arith.mulf %309, %313 : vector<8x16xf32>
    %315 = arith.truncf %314 : vector<8x16xf32> to vector<8x16xbf16>
    %316 = vector.extract_strided_slice %269 {offsets = [0, 16], sizes = [16, 8], strides = [1, 1]} : vector<16x32xbf16> to vector<16x8xbf16>
    %cst_79 = arith.constant dense<0.000000e+00> : vector<8x8xf32>
    %317 = tpu.matmul %315, %316, %cst_79 {dimension_numbers = #tpu.dot_dimension_numbers<[1], [0], [0], [1], [0, 0, 1, 1], [], []>} : vector<8x16xbf16>, vector<16x8xbf16>, vector<8x8xf32> -> vector<8x8xf32>
    %318 = vector.extract_strided_slice %267 {offsets = [0, 24], sizes = [8, 8], strides = [1, 1]} : vector<8x32xbf16> to vector<8x8xbf16>
    %319 = vector.extract_strided_slice %268 {offsets = [0, 24], sizes = [16, 8], strides = [1, 1]} : vector<16x32xbf16> to vector<16x8xbf16>
    %cst_80 = arith.constant dense<0.000000e+00> : vector<8x16xf32>
    %320 = tpu.matmul %318, %319, %cst_80 {dimension_numbers = #tpu.dot_dimension_numbers<[1], [1], [0], [0], [0, 0, 1, 0], [], []>} : vector<8x8xbf16>, vector<16x8xbf16>, vector<8x16xf32> -> vector<8x16xf32>
    %cst_81 = arith.constant dense<0xFF800000> : vector<8xf32>
    %321 = vector.multi_reduction <maximumf>, %320, %cst_81 [1] : vector<8x16xf32> to vector<8xf32>
    %322 = vector.shape_cast %321 : vector<8xf32> to vector<8x1xf32>
    %323 = vector.broadcast %322 : vector<8x1xf32> to vector<8x16xf32>
    %324 = arith.subf %320, %323 : vector<8x16xf32>
    %325 = math.exp %324 : vector<8x16xf32>
    %cst_82 = arith.constant dense<0.000000e+00> : vector<8xf32>
    %326 = vector.multi_reduction <add>, %325, %cst_82 [1] : vector<8x16xf32> to vector<8xf32>
    %327 = vector.shape_cast %326 : vector<8xf32> to vector<8x1xf32>
    %328 = tpu.reciprocal %327 {approx = true} : vector<8x1xf32> -> vector<8x1xf32>
    %329 = vector.broadcast %328 : vector<8x1xf32> to vector<8x16xf32>
    %330 = arith.mulf %325, %329 : vector<8x16xf32>
    %331 = arith.truncf %330 : vector<8x16xf32> to vector<8x16xbf16>
    %332 = vector.extract_strided_slice %269 {offsets = [0, 24], sizes = [16, 8], strides = [1, 1]} : vector<16x32xbf16> to vector<16x8xbf16>
    %cst_83 = arith.constant dense<0.000000e+00> : vector<8x8xf32>
    %333 = tpu.matmul %331, %332, %cst_83 {dimension_numbers = #tpu.dot_dimension_numbers<[1], [0], [0], [1], [0, 0, 1, 1], [], []>} : vector<8x16xbf16>, vector<16x8xbf16>, vector<8x8xf32> -> vector<8x8xf32>
    %334 = tpu.concatenate %285, %301, %317, %333 in 1 : vector<8x8xf32>, vector<8x8xf32>, vector<8x8xf32>, vector<8x8xf32> -> vector<8x32xf32>
    %335 = tpu.concatenate %266, %334 in 0 : vector<8x32xf32>, vector<8x32xf32> -> vector<16x32xf32>
    %336 = arith.truncf %335 : vector<16x32xf32> to vector<16x32xbf16>
    %cst_84 = arith.constant dense<0.000000e+00> : vector<16x32xf32>
    %337 = tpu.matmul %336, %194, %cst_84 {dimension_numbers = #tpu.dot_dimension_numbers<[1], [0], [0], [1], [0, 0, 1, 1], [], []>} : vector<16x32xbf16>, vector<32x32xbf16>, vector<16x32xf32> -> vector<16x32xf32>
    %338 = vector.broadcast %195 : vector<1x32xf32> to vector<16x32xf32>
    %339 = arith.addf %337, %338 : vector<16x32xf32>
    %340 = arith.addf %184, %339 : vector<16x32xf32>
    %341 = vector.extract_strided_slice %0 {offsets = [7, 0], sizes = [1, 32], strides = [1, 1]} : vector<16x128xf32> to vector<1x32xf32>
    %342 = vector.extract_strided_slice %0 {offsets = [8, 0], sizes = [1, 32], strides = [1, 1]} : vector<16x128xf32> to vector<1x32xf32>
    %cst_85 = arith.constant dense<0.000000e+00> : vector<16xf32>
    %343 = vector.multi_reduction <add>, %340, %cst_85 [1] : vector<16x32xf32> to vector<16xf32>
    %344 = vector.shape_cast %343 : vector<16xf32> to vector<16x1xf32>
    %cst_86 = arith.constant 3.200000e+01 : f32
    %345 = vector.broadcast %cst_86 : f32 to vector<16x1xf32>
    %346 = arith.divf %344, %345 : vector<16x1xf32>
    %347 = vector.broadcast %346 : vector<16x1xf32> to vector<16x32xf32>
    %348 = arith.subf %340, %347 : vector<16x32xf32>
    %349 = arith.mulf %348, %348 : vector<16x32xf32>
    %cst_87 = arith.constant dense<0.000000e+00> : vector<16xf32>
    %350 = vector.multi_reduction <add>, %349, %cst_87 [1] : vector<16x32xf32> to vector<16xf32>
    %351 = vector.shape_cast %350 : vector<16xf32> to vector<16x1xf32>
    %cst_88 = arith.constant 3.200000e+01 : f32
    %352 = vector.broadcast %cst_88 : f32 to vector<16x1xf32>
    %353 = arith.divf %351, %352 : vector<16x1xf32>
    %cst_89 = arith.constant 9.99999974E-6 : f32
    %354 = vector.broadcast %cst_89 : f32 to vector<16x1xf32>
    %355 = arith.addf %353, %354 : vector<16x1xf32>
    %356 = math.rsqrt %355 : vector<16x1xf32>
    %357 = vector.broadcast %356 : vector<16x1xf32> to vector<16x32xf32>
    %358 = arith.mulf %348, %357 : vector<16x32xf32>
    %359 = vector.broadcast %341 : vector<1x32xf32> to vector<16x32xf32>
    %360 = arith.mulf %358, %359 : vector<16x32xf32>
    %361 = vector.broadcast %342 : vector<1x32xf32> to vector<16x32xf32>
    %362 = arith.addf %360, %361 : vector<16x32xf32>
    %363 = arith.truncf %362 : vector<16x32xf32> to vector<16x32xbf16>
    %c0_90 = arith.constant 0 : index
    %c640 = arith.constant 640 : index
    %364 = vector.load %arg4[%c0_90, %c640] : memref<32x896xbf16, #tpu.memory_space<vmem>>, vector<32x64xbf16>
    %cst_91 = arith.constant dense<0.000000e+00> : vector<16x64xf32>
    %365 = tpu.matmul %363, %364, %cst_91 {dimension_numbers = #tpu.dot_dimension_numbers<[1], [0], [0], [1], [0, 0, 1, 1], [], []>} : vector<16x32xbf16>, vector<32x64xbf16>, vector<16x64xf32> -> vector<16x64xf32>
    %366 = vector.extract_strided_slice %0 {offsets = [9, 0], sizes = [1, 64], strides = [1, 1]} : vector<16x128xf32> to vector<1x64xf32>
    %367 = vector.broadcast %366 : vector<1x64xf32> to vector<16x64xf32>
    %368 = arith.addf %365, %367 : vector<16x64xf32>
    %cst_92 = arith.constant 0.000000e+00 : f32
    %369 = vector.broadcast %cst_92 : f32 to vector<16x64xf32>
    %370 = arith.maximumf %368, %369 : vector<16x64xf32>
    %371 = arith.truncf %370 : vector<16x64xf32> to vector<16x64xbf16>
    %c0_93 = arith.constant 0 : index
    %c0_94 = arith.constant 0 : index
    %372 = vector.load %arg5[%c0_93, %c0_94] : memref<64x32xbf16, #tpu.memory_space<vmem>>, vector<64x32xbf16>
    %cst_95 = arith.constant dense<0.000000e+00> : vector<16x32xf32>
    %373 = tpu.matmul %371, %372, %cst_95 {dimension_numbers = #tpu.dot_dimension_numbers<[1], [0], [0], [1], [0, 0, 1, 1], [], []>} : vector<16x64xbf16>, vector<64x32xbf16>, vector<16x32xf32> -> vector<16x32xf32>
    %374 = vector.extract_strided_slice %0 {offsets = [10, 0], sizes = [1, 32], strides = [1, 1]} : vector<16x128xf32> to vector<1x32xf32>
    %375 = vector.broadcast %374 : vector<1x32xf32> to vector<16x32xf32>
    %376 = arith.addf %373, %375 : vector<16x32xf32>
    %377 = arith.addf %362, %376 : vector<16x32xf32>
    %378 = vector.extract_strided_slice %0 {offsets = [11, 0], sizes = [1, 32], strides = [1, 1]} : vector<16x128xf32> to vector<1x32xf32>
    %379 = vector.extract_strided_slice %0 {offsets = [12, 0], sizes = [1, 32], strides = [1, 1]} : vector<16x128xf32> to vector<1x32xf32>
    %cst_96 = arith.constant dense<0.000000e+00> : vector<16xf32>
    %380 = vector.multi_reduction <add>, %377, %cst_96 [1] : vector<16x32xf32> to vector<16xf32>
    %381 = vector.shape_cast %380 : vector<16xf32> to vector<16x1xf32>
    %cst_97 = arith.constant 3.200000e+01 : f32
    %382 = vector.broadcast %cst_97 : f32 to vector<16x1xf32>
    %383 = arith.divf %381, %382 : vector<16x1xf32>
    %384 = vector.broadcast %383 : vector<16x1xf32> to vector<16x32xf32>
    %385 = arith.subf %377, %384 : vector<16x32xf32>
    %386 = arith.mulf %385, %385 : vector<16x32xf32>
    %cst_98 = arith.constant dense<0.000000e+00> : vector<16xf32>
    %387 = vector.multi_reduction <add>, %386, %cst_98 [1] : vector<16x32xf32> to vector<16xf32>
    %388 = vector.shape_cast %387 : vector<16xf32> to vector<16x1xf32>
    %cst_99 = arith.constant 3.200000e+01 : f32
    %389 = vector.broadcast %cst_99 : f32 to vector<16x1xf32>
    %390 = arith.divf %388, %389 : vector<16x1xf32>
    %cst_100 = arith.constant 9.99999974E-6 : f32
    %391 = vector.broadcast %cst_100 : f32 to vector<16x1xf32>
    %392 = arith.addf %390, %391 : vector<16x1xf32>
    %393 = math.rsqrt %392 : vector<16x1xf32>
    %394 = vector.broadcast %393 : vector<16x1xf32> to vector<16x32xf32>
    %395 = arith.mulf %385, %394 : vector<16x32xf32>
    %396 = vector.broadcast %378 : vector<1x32xf32> to vector<16x32xf32>
    %397 = arith.mulf %395, %396 : vector<16x32xf32>
    %398 = vector.broadcast %379 : vector<1x32xf32> to vector<16x32xf32>
    %399 = arith.addf %397, %398 : vector<16x32xf32>
    %c0_101 = arith.constant 0 : index
    %c0_102 = arith.constant 0 : index
    %400 = vector.load %arg9[%c0_101, %c0_102] : memref<16x32xf32, #tpu.memory_space<vmem>>, vector<16x32xf32>
    tpu.vector_store %arg9[%c0_101, %c0_102], %399 {strides = array<i32>} : memref<16x32xf32, #tpu.memory_space<vmem>>, vector<16x32xf32>,
    %c1_i32 = arith.constant 1 : i32
    %401 = arith.cmpi eq, %arg0, %c1_i32 : i32
    %402 = arith.extui %401 : i1 to i32
    %c0_i32_103 = arith.constant 0 : i32
    %403 = arith.cmpi ne, %402, %c0_i32_103 : i32
    scf.if %403 {
      %404 = arith.truncf %399 : vector<16x32xf32> to vector<16x32xbf16>
      %c0_104 = arith.constant 0 : index
      %c768 = arith.constant 768 : index
      %405 = vector.load %arg4[%c0_104, %c768] : memref<32x896xbf16, #tpu.memory_space<vmem>>, vector<32x128xbf16>
      %cst_105 = arith.constant dense<0.000000e+00> : vector<16x128xf32>
      %406 = tpu.matmul %404, %405, %cst_105 {dimension_numbers = #tpu.dot_dimension_numbers<[1], [0], [0], [1], [0, 0, 1, 1], [], []>} : vector<16x32xbf16>, vector<32x128xbf16>, vector<16x128xf32> -> vector<16x128xf32>
      %407 = vector.extract_strided_slice %0 {offsets = [13, 0], sizes = [1, 128], strides = [1, 1]} : vector<16x128xf32> to vector<1x128xf32>
      %408 = vector.broadcast %407 : vector<1x128xf32> to vector<16x128xf32>
      %409 = arith.addf %406, %408 : vector<16x128xf32>
      %c0_106 = arith.constant 0 : index
      %c0_107 = arith.constant 0 : index
      %410 = vector.load %arg7[%c0_106, %c0_107] : memref<16x128xf32, #tpu.memory_space<vmem>>, vector<16x128xf32>
      tpu.vector_store %arg7[%c0_106, %c0_107], %409 {strides = array<i32>} : memref<16x128xf32, #tpu.memory_space<vmem>>, vector<16x128xf32>,
      %c0_108 = arith.constant 0 : index
      %c0_109 = arith.constant 0 : index
      %411 = vector.load %arg3[%c0_108, %c0_109] : memref<32x128xf32, #tpu.memory_space<vmem>>, vector<32x128xf32>
      %412 = arith.truncf %411 : vector<32x128xf32> to vector<32x128xbf16>
      %413 = vector.extract_strided_slice %404 {offsets = [0, 0], sizes = [8, 32], strides = [1, 1]} : vector<16x32xbf16> to vector<8x32xbf16>
      %414 = vector.extract_strided_slice %412 {offsets = [0, 0], sizes = [16, 32], strides = [1, 1]} : vector<32x128xbf16> to vector<16x32xbf16>
      %cst_110 = arith.constant dense<0.000000e+00> : vector<8x16xf32>
      %415 = tpu.matmul %413, %414, %cst_110 {dimension_numbers = #tpu.dot_dimension_numbers<[1], [1], [0], [0], [0, 0, 1, 0], [], []>} : vector<8x32xbf16>, vector<16x32xbf16>, vector<8x16xf32> -> vector<8x16xf32>
      %416 = vector.extract_strided_slice %412 {offsets = [0, 32], sizes = [16, 32], strides = [1, 1]} : vector<32x128xbf16> to vector<16x32xbf16>
      %cst_111 = arith.constant dense<0.000000e+00> : vector<8x16xf32>
      %417 = tpu.matmul %413, %416, %cst_111 {dimension_numbers = #tpu.dot_dimension_numbers<[1], [1], [0], [0], [0, 0, 1, 0], [], []>} : vector<8x32xbf16>, vector<16x32xbf16>, vector<8x16xf32> -> vector<8x16xf32>
      %418 = vector.extract_strided_slice %412 {offsets = [0, 64], sizes = [16, 32], strides = [1, 1]} : vector<32x128xbf16> to vector<16x32xbf16>
      %cst_112 = arith.constant dense<0.000000e+00> : vector<8x16xf32>
      %419 = tpu.matmul %413, %418, %cst_112 {dimension_numbers = #tpu.dot_dimension_numbers<[1], [1], [0], [0], [0, 0, 1, 0], [], []>} : vector<8x32xbf16>, vector<16x32xbf16>, vector<8x16xf32> -> vector<8x16xf32>
      %420 = vector.extract_strided_slice %412 {offsets = [0, 96], sizes = [16, 32], strides = [1, 1]} : vector<32x128xbf16> to vector<16x32xbf16>
      %cst_113 = arith.constant dense<0.000000e+00> : vector<8x16xf32>
      %421 = tpu.matmul %413, %420, %cst_113 {dimension_numbers = #tpu.dot_dimension_numbers<[1], [1], [0], [0], [0, 0, 1, 0], [], []>} : vector<8x32xbf16>, vector<16x32xbf16>, vector<8x16xf32> -> vector<8x16xf32>
      %cst_114 = arith.constant 0.000000e+00 : f32
      %422 = vector.broadcast %cst_114 : f32 to vector<8x64xf32>
      %423 = tpu.concatenate %415, %417, %419, %421, %422 in 1 : vector<8x16xf32>, vector<8x16xf32>, vector<8x16xf32>, vector<8x16xf32>, vector<8x64xf32> -> vector<8x128xf32>
      %c0_115 = arith.constant 0 : index
      %c0_116 = arith.constant 0 : index
      %424 = vector.load %arg8[%c0_115, %c0_116] : memref<16x128xf32, #tpu.memory_space<vmem>>, vector<8x128xf32>
      tpu.vector_store %arg8[%c0_115, %c0_116], %423 {strides = array<i32>} : memref<16x128xf32, #tpu.memory_space<vmem>>, vector<8x128xf32>,
      %425 = vector.extract_strided_slice %404 {offsets = [8, 0], sizes = [8, 32], strides = [1, 1]} : vector<16x32xbf16> to vector<8x32xbf16>
      %426 = vector.extract_strided_slice %412 {offsets = [16, 0], sizes = [16, 32], strides = [1, 1]} : vector<32x128xbf16> to vector<16x32xbf16>
      %cst_117 = arith.constant dense<0.000000e+00> : vector<8x16xf32>
      %427 = tpu.matmul %425, %426, %cst_117 {dimension_numbers = #tpu.dot_dimension_numbers<[1], [1], [0], [0], [0, 0, 1, 0], [], []>} : vector<8x32xbf16>, vector<16x32xbf16>, vector<8x16xf32> -> vector<8x16xf32>
      %428 = vector.extract_strided_slice %412 {offsets = [16, 32], sizes = [16, 32], strides = [1, 1]} : vector<32x128xbf16> to vector<16x32xbf16>
      %cst_118 = arith.constant dense<0.000000e+00> : vector<8x16xf32>
      %429 = tpu.matmul %425, %428, %cst_118 {dimension_numbers = #tpu.dot_dimension_numbers<[1], [1], [0], [0], [0, 0, 1, 0], [], []>} : vector<8x32xbf16>, vector<16x32xbf16>, vector<8x16xf32> -> vector<8x16xf32>
      %430 = vector.extract_strided_slice %412 {offsets = [16, 64], sizes = [16, 32], strides = [1, 1]} : vector<32x128xbf16> to vector<16x32xbf16>
      %cst_119 = arith.constant dense<0.000000e+00> : vector<8x16xf32>
      %431 = tpu.matmul %425, %430, %cst_119 {dimension_numbers = #tpu.dot_dimension_numbers<[1], [1], [0], [0], [0, 0, 1, 0], [], []>} : vector<8x32xbf16>, vector<16x32xbf16>, vector<8x16xf32> -> vector<8x16xf32>
      %432 = vector.extract_strided_slice %412 {offsets = [16, 96], sizes = [16, 32], strides = [1, 1]} : vector<32x128xbf16> to vector<16x32xbf16>
      %cst_120 = arith.constant dense<0.000000e+00> : vector<8x16xf32>
      %433 = tpu.matmul %425, %432, %cst_120 {dimension_numbers = #tpu.dot_dimension_numbers<[1], [1], [0], [0], [0, 0, 1, 0], [], []>} : vector<8x32xbf16>, vector<16x32xbf16>, vector<8x16xf32> -> vector<8x16xf32>
      %cst_121 = arith.constant 0.000000e+00 : f32
      %434 = vector.broadcast %cst_121 : f32 to vector<8x64xf32>
      %435 = tpu.concatenate %427, %429, %431, %433, %434 in 1 : vector<8x16xf32>, vector<8x16xf32>, vector<8x16xf32>, vector<8x16xf32>, vector<8x64xf32> -> vector<8x128xf32>
      %c8 = arith.constant 8 : index
      %c0_122 = arith.constant 0 : index
      %436 = vector.load %arg8[%c8, %c0_122] : memref<16x128xf32, #tpu.memory_space<vmem>>, vector<8x128xf32>
      tpu.vector_store %arg8[%c8, %c0_122], %435 {strides = array<i32>} : memref<16x128xf32, #tpu.memory_space<vmem>>, vector<8x128xf32>,
    } else {
    }
    return
  }
  func.func @transform_0(%arg0: i32) -> (i32, i32) {
    %c0_i32 = arith.constant 0 : i32
    %c0_i32_0 = arith.constant 0 : i32
    %c0_i32_1 = arith.constant 0 : i32
    return %c0_i32, %c0_i32_0 : i32, i32
  }
  func.func @transform_1(%arg0: i32) -> (i32, i32) {
    %c0_i32 = arith.constant 0 : i32
    %c0_i32_0 = arith.constant 0 : i32
    %c0_i32_1 = arith.constant 0 : i32
    return %c0_i32, %c0_i32_0 : i32, i32
  }
  func.func @transform_2(%arg0: i32) -> (i32, i32) {
    %c0_i32 = arith.constant 0 : i32
    %c0_i32_0 = arith.constant 0 : i32
    %c0_i32_1 = arith.constant 0 : i32
    return %c0_i32, %c0_i32_0 : i32, i32
  }
  func.func @transform_3(%arg0: i32) -> (i32, i32) {
    %c0_i32 = arith.constant 0 : i32
    %c0_i32_0 = arith.constant 0 : i32
    %c0_i32_1 = arith.constant 0 : i32
    return %c0_i32, %c0_i32_0 : i32, i32
  }
  func.func @transform_4(%arg0: i32) -> (i32, i32) {
    %c0_i32 = arith.constant 0 : i32
    %c0_i32_0 = arith.constant 0 : i32
    %c0_i32_1 = arith.constant 0 : i32
    return %c0_i32, %c0_i32_0 : i32, i32
  }
  func.func @transform_5(%arg0: i32) -> (i32, i32) {
    %c0_i32 = arith.constant 0 : i32
    %c0_i32_0 = arith.constant 0 : i32
    %c0_i32_1 = arith.constant 0 : i32
    return %c0_i32, %c0_i32_0 : i32, i32
  }
  func.func @transform_6(%arg0: i32) -> (i32, i32) {
    %c0_i32 = arith.constant 0 : i32
    %c0_i32_0 = arith.constant 0 : i32
    %c0_i32_1 = arith.constant 0 : i32
    return %c0_i32, %c0_i32_0 : i32, i32
  }
  func.func @transform_7(%arg0: i32) -> (i32, i32) {
    %c0_i32 = arith.constant 0 : i32
    %c0_i32_0 = arith.constant 0 : i32
    %c0_i32_1 = arith.constant 0 : i32
    return %c0_i32, %c0_i32_0 : i32, i32
  }
}

</mosaic_0001>

<bundles_post_ra>
// kernel: detr_forward.3
= control target key start
LH: loop header
LB: loop body
LE: loop exit
PB: predicated region body
PF: predicated region fallthrough
CT: control target
= control target key end

     0   :  { %v512_v0 = vmov 0   ;;  %vm139_vm0 = vcmask 523264   ;;  %v63_v28 = vlaneseq  ;;  %vm221_vm1 = vcmask 261120   ;;  %s677_s1 = inlined_call_operand.vmem [shape: bf16[192,32], index: 1, kind: input, shape index: {}]   ;;  %s678_s0 = inlined_call_operand.vmem [shape: f32[32,192], index: 0, kind: input, shape index: {}]   ;;  %s679_s2 = inlined_call_operand.vmem [shape: bf16[32,128], index: 2, kind: input, shape index: {}]   ;;  %s680_s3 = inlined_call_operand.vmem [shape: bf16[32,16], index: 3, kind: input, shape index: {}]   ;;  %s681_s5 = inlined_call_operand.vmem [shape: f32[8,128], index: 5, kind: input, shape index: {}]   ;;  %s682_s4 = inlined_call_operand.vmem [shape: bf16[16,32], index: 4, kind: input, shape index: {}]   ;;  %s683_s7 = inlined_call_operand.vmem [shape: f32[32,128], index: 7, kind: output, shape index: {1}]   ;;  %s684_s6 = inlined_call_operand.vmem [shape: f32[32,32], index: 6, kind: output, shape index: {0}]  }
   0x1   :  { %146 = vmatprep.subr.bf16.mxu0 %v512_v0  ;;  %v495_v1 = vld [vmem:[%s677_s1 + $0x38] sm:$0xff]   ;;  %v496_v2 = vld [vmem:[%s677_s1 + $0x30] sm:$0xff]   ;;  %v497_v3 = vld [vmem:[%s677_s1 + $0x28] sm:$0xff]   ;;  %vm368_vm2 = vcmask 130048  }
   0x2   :  { %147 = vmatpush1.bf16.msra.mxu0 %v495_v1  ;;  %v498_v4 = vld [vmem:[%s677_s1 + $0x20] sm:$0xff]   ;;  %v28_v5 = vld [vmem:[%s678_s0 + $0x8] sm:$0xff]  ;;  %v30_v6 = vld [vmem:[%s678_s0 + $0x18] sm:$0xff]  ;;  %v624_v29 = vshrl.u32 %v63_v28, 7 }
   0x3   :  { %148 = vmatprep.subr.bf16.mxu0 %v512_v0  ;;  %v36_v7 = vpack.c.bf16 %v30_v6, %v28_v5  ;;  %v499_v8 = vld [vmem:[%s677_s1 + $0x18] sm:$0xff]   ;;  %v500_v9 = vld [vmem:[%s677_s1 + $0x10] sm:$0xff]   ;;  %v501_v10 = vld [vmem:[%s677_s1 + $0x8] sm:$0xff]  }
   0x4   :  { %v502_v11 = vld [vmem:[%s677_s1] sm:$0xff]   ;;  %v503_v12 = vld [vmem:[%s677_s1 + $0x58] sm:$0xff]   ;;  %v504_v13 = vld [vmem:[%s677_s1 + $0x50] sm:$0xff]   ;;  %v65_v30 = vsub.s32 0, %v624_v29  ;;  %v207_v53 = vsub.s32 1, %v624_v29  ;;  %v287_v62 = vsub.s32 2, %v624_v29 }
   0x5   :  { %448 = vmatprep.mubr.msk.bf16.mxu0 %vm139_vm0, %v36_v7  ;;  %v505_v14 = vld [vmem:[%s677_s1 + $0x48] sm:$0xff]   ;;  %v506_v15 = vld [vmem:[%s677_s1 + $0x40] sm:$0xff]   ;;  %v29_v17 = vld [vmem:[%s678_s0 + $0x10] sm:$0xff] }
   0x6   :  { %149 = vmatpush1.bf16.msra.mxu0 %v496_v2  ;;  %v27_v16 = vld [vmem:[%s678_s0] sm:$0xff]  ;;  %v32_v18 = vld [vmem:[%s678_s0 + $0x28] sm:$0xff]  ;;  %v34_v19 = vld [vmem:[%s678_s0 + $0x38] sm:$0xff] }
   0x7   :  { %150 = vmatprep.subr.bf16.mxu0 %v512_v0  ;;  %v35_v20 = vpack.c.bf16 %v29_v17, %v27_v16  ;;  %v38_v21 = vpack.c.bf16 %v34_v19, %v32_v18  ;;  %v31_v22 = vld [vmem:[%s678_s0 + $0x20] sm:$0xff]  ;;  %v33_v23 = vld [vmem:[%s678_s0 + $0x30] sm:$0xff]  ;;  %v507_v25 = vld [vmem:[%s679_s2 + $0x8] sm:$0xff]  }
   0x8   :  { %v37_v24 = vpack.c.bf16 %v33_v23, %v31_v22  ;;  %472 = vmatprep.subr.bf16.mxu1 %v507_v25  ;;  %v508_v26 = vld [vmem:[%s679_s2] sm:$0xff]   ;;  %v509_v27 = vld [vmem:[%s680_s3 + $0x8] sm:$0xff]  }
   0x9   :  { %473 = vmatpush3.bf16.msra.mxu1 %v507_v25  ;;  %v630_v31 = vld [vmem:[%s681_s5] sm:$0xff] }
   0xa   :  { %151 = vmatpush1.bf16.msra.mxu0 %v497_v3  ;;  %474 = vmatprep.subr.bf16.mxu1 %v508_v26  ;;  %v66_v32 = vrot.slane %v630_v31, %v65_v30  ;;  %v510_v51 = vld [vmem:[%s680_s3] sm:$0xff]   ;;  %v208_v54 = vrot.slane %v630_v31, %v207_v53  ;;  %v288_v1 = vrot.slane %v630_v31, %v287_v62 }
   0xb   :  { %152 = vmatprep.subr.bf16.mxu0 %v512_v0  ;;  %v511_v52 = vld [vmem:[%s682_s4] sm:$0xff]  }
   0xd   :  { %475 = vmatpush3.bf16.msra.mxu1 %v508_v26 }
   0xe   :  { %153 = vmatpush1.bf16.msra.mxu0 %v498_v4  ;;  %480 = vmatprep.subr.bf16.mxu1 %v509_v27 }
   0xf   :  { %154 = vmatprep.subr.bf16.mxu0 %v512_v0 }
  0x12   :  { %155 = vmatpush1.bf16.msra.mxu0 %v499_v8 }
  0x13   :  { %156 = vmatprep.subr.bf16.mxu0 %v512_v0 }
  0x16   :  { %157 = vmatpush1.bf16.msra.mxu0 %v500_v9 }
  0x17   :  { %158 = vmatprep.subr.bf16.mxu0 %v512_v0 }
  0x1a   :  { %159 = vmatpush1.bf16.msra.mxu0 %v501_v10 }
  0x1b   :  { %160 = vmatprep.subr.bf16.mxu0 %v512_v0 }
  0x1e   :  { %161 = vmatpush1.bf16.msra.mxu0 %v502_v11 }
  0x1f   :  { %170 = vmatprep.subr.bf16.mxu0 %v512_v0 }
  0x22   :  { %171 = vmatpush2.bf16.msra.mxu0 %v503_v12 }
  0x23   :  { %172 = vmatprep.subr.bf16.mxu0 %v512_v0 }
  0x26   :  { %173 = vmatpush2.bf16.msra.mxu0 %v504_v13 }
  0x27   :  { %174 = vmatprep.subr.bf16.mxu0 %v512_v0 }
  0x2a   :  { %175 = vmatpush2.bf16.msra.mxu0 %v505_v14 }
  0x2b   :  { %176 = vmatprep.subr.bf16.mxu0 %v512_v0 }
  0x2e   :  { %177 = vmatpush2.bf16.msra.mxu0 %v506_v15  ;;  %v360_v15 = vsub.s32 3, %v624_v29 }
  0x30   :  { %v361_v16 = vrot.slane %v630_v31, %v360_v15 }
  0x31   :  { %179 = vmatmul.mubr.bf16.vlgmr.msra.gmra.mxu0 %v35_v20 }
  0x32   :  { %449 = vmatprep.mubr.msk.bf16.mxu0 %vm139_vm0, %v38_v21 }
  0x39   :  { %187 = vmatmul.mubr.bf16.gmra.mxu0 %v37_v24 }
  0xf1   :  { %v180_v33 = vpop.f32.mrf.mxu0 }
  0xf2   :  { %v181_v35 = vadd.f32 %v180_v33, %v66_v32 }
  0xf3   :  { %v182_v34 = vpop.f32.mrf.mxu0 }
  0xf4   :  { %v195_v39 = vmax.f32 %v181_v35, 0.0 }
  0xf5   :  { %v183_v36 = vpop.f32.mrf.mxu0 }
  0xf6   :  { %v184_v37 = vadd.f32 %v183_v36, %v66_v32 }
  0xf7   :  { %v185_v38 = vpop.f32.mrf.mxu0 }
  0xf8   :  { %v196_v40 = vmax.f32 %v184_v37, 0.0 }
  0xf9   :  { %v188_v41 = vpop.f32.mrf.mxu0 }
  0xfa   :  { %v199_v42 = vpack.c.bf16 %v196_v40, %v195_v39  ;;  %v189_v44 = vadd.f32 %v188_v41, %v66_v32 }
  0xfb   :  { %v190_v43 = vpop.f32.mrf.mxu0 }
  0xfc   :  { %476 = vmatprep.mubr.msk.bf16.mxu1 %vm221_vm1, %v199_v42  ;;  %v197_v48 = vmax.f32 %v189_v44, 0.0 }
  0xfd   :  { %v191_v45 = vpop.f32.mrf.mxu0 }
  0xfe   :  { %v192_v46 = vadd.f32 %v191_v45, %v66_v32 }
  0xff   :  { %v193_v47 = vpop.f32.mrf.mxu0 }
 0x100   :  { %v198_v49 = vmax.f32 %v192_v46, 0.0 }
 0x102   :  { %v200_v50 = vpack.c.bf16 %v198_v49, %v197_v48 }
 0x104   :  { %477 = vmatmul.mubr.msk.bf16.vlgmr.msra.gmra.mxu1 %vm221_vm1, %v200_v50 }
 0x105   :  { %481 = vmatpush3.bf16.msra.mxu1 %v509_v27  ;;  %484 = vmatprep.mubr.msk.bf16.mxu1 %vm221_vm1, %v199_v42 }
 0x106   :  { %482 = vmatprep.subr.bf16.mxu1 %v510_v51 }
 0x109   :  { %483 = vmatpush3.bf16.msra.mxu1 %v510_v51 }
 0x10a   :  { %488 = vmatprep.subr.bf16.mxu1 %v511_v52 }
 0x10c   :  { %485 = vmatmul.mubr.msk.bf16.vlgmr.msra.gmra.mxu1 %vm221_vm1, %v200_v50 }
 0x10d   :  { %489 = vmatpush3.bf16.msra.mxu1 %v511_v52 }
 0x1c4   :  { %v478_v55 = vpop.f32.mrf.mxu1 }
 0x1c5   :  { %v271_v56 = vadd.f32 %v478_v55, %v208_v54 }
 0x1c6   :  { %v262_v57 = vpop.f32.mrf.mxu1 }
 0x1c7   :  { %279 = vst [vmem:[%s683_s7 + $0x10] sm:$0xff] %v271_v56  ;;  %v263_v58 = vadd.f32 %v262_v57, %v208_v54 }
 0x1c8   :  { %v479_v59 = vpop.f32.mrf.mxu1 }
 0x1c9   :  { %277 = vst [vmem:[%s683_s7] sm:$0xff] %v263_v58  ;;  %v274_v60 = vadd.f32 %v479_v59, %v208_v54 }
 0x1ca   :  { %v265_v61 = vpop.f32.mrf.mxu1 }
 0x1cb   :  { %280 = vst [vmem:[%s683_s7 + $0x18] sm:$0xff] %v274_v60  ;;  %v266_v63 = vadd.f32 %v265_v61, %v208_v54 }
 0x1cc   :  { %v486_v0 = vpop.f32.mrf.mxu1 }
 0x1cd   :  { %278 = vst [vmem:[%s683_s7 + $0x8] sm:$0xff] %v266_v63  ;;  %v344_v6 = vadd.f32 %v486_v0, %v288_v1 }
 0x1ce   :  { %v335_v2 = vpop.f32.mrf.mxu1 }
 0x1cf   :  { %v336_v4 = vadd.f32 %v335_v2, %v288_v1  ;;  %v352_v12 = vmax.f32 %v344_v6, 0.0 }
 0x1d0   :  { %v487_v3 = vpop.f32.mrf.mxu1 }
 0x1d1   :  { %v347_v5 = vadd.f32 %v487_v3, %v288_v1  ;;  %v350_v10 = vmax.f32 %v336_v4, 0.0 }
 0x1d2   :  { %v338_v7 = vpop.f32.mrf.mxu1 }
 0x1d3   :  { %v339_v8 = vadd.f32 %v338_v7, %v288_v1  ;;  %v353_v9 = vmax.f32 %v347_v5, 0.0 }
 0x1d5   :  { %v351_v11 = vmax.f32 %v339_v8, 0.0  ;;  %v355_v14 = vpack.c.bf16 %v353_v9, %v352_v12 }
 0x1d7   :  { %v354_v13 = vpack.c.bf16 %v351_v11, %v350_v10 }
 0x1d9   :  { %490 = vmatprep.mubr.msk.bf16.mxu1 %vm368_vm2, %v354_v13 }
 0x1da   :  { %491 = vmatmul.mubr.msk.bf16.vlgmr.msra.gmra.mxu1 %vm368_vm2, %v355_v14 }
 0x29a   :  { %v492_v17 = vpop.f32.mrf.mxu1 }
 0x29b   :  { %v418_v18 = vadd.f32 %v492_v17, %v361_v16 }
 0x29c   :  { %v409_v19 = vpop.f32.mrf.mxu1 }
 0x29d   :  { %426 = vst.msk [vmem:[%s684_s6 + $0x10] sm:$0xff] %vm221_vm1, %v418_v18  ;;  %v410_v20 = vadd.f32 %v409_v19, %v361_v16 }
 0x29e   :  { %v493_v21 = vpop.f32.mrf.mxu1 }
 0x29f   :  { %424 = vst.msk [vmem:[%s684_s6] sm:$0xff] %vm221_vm1, %v410_v20  ;;  %v421_v22 = vadd.f32 %v493_v21, %v361_v16 }
 0x2a0   :  { %v412_v23 = vpop.f32.mrf.mxu1 }
 0x2a1   :  { %427 = vst.msk [vmem:[%s684_s6 + $0x18] sm:$0xff] %vm221_vm1, %v421_v22  ;;  %v413_v24 = vadd.f32 %v412_v23, %v361_v16 }
 0x2a3   :  { %425 = vst.msk [vmem:[%s684_s6 + $0x8] sm:$0xff] %vm221_vm1, %v413_v24 }

// kernel: detr_forward.4
= control target key start
LH: loop header
LB: loop body
LE: loop exit
PB: predicated region body
PF: predicated region fallthrough
CT: control target
= control target key end

     0   :  { %s2163_s18 = smov 0   ;;  %s2610_s0 = inlined_call_operand.vmem [shape: f32[32,32], index: 0, kind: input, shape index: {}]   ;;  %s2611_s1 = inlined_call_operand.vmem [shape: f32[32,32], index: 1, kind: input, shape index: {}]   ;;  %s2612_s2 = inlined_call_operand.vmem [shape: bf16[32,384], index: 2, kind: input, shape index: {}]   ;;  %s2613_s3 = inlined_call_operand.vmem [shape: bf16[64,32], index: 3, kind: input, shape index: {}]   ;;  %s2614_s4 = inlined_call_operand.vmem [shape: f32[8,128], index: 4, kind: input, shape index: {}]   ;;  %s2615_s5 = inlined_call_operand.vmem [shape: f32[32,32], index: 5, kind: output, shape index: {}]  }
   0x1 LB: > { %s1743_s19 = sadd.s32 4294967295, %s2115_s18   ;;  %p1745_p0 = scmp.ge.s32.totalorder %s2115_s18, 1  ;;  %s2115_s18 = sphi %s2163_s18, %s15_s18  }
   0x2   : > { %p172_p1 = scmp.lt.s32.totalorder %s2115_s18, 3 }
   0x4   : > { %p173_p2 = pnand %p1745_p0, %p172_p1 }
   0x5   : > { %p1746_p3 = scmp.ne.s32.totalorder (!%p173_p2), %s1743_s19, 0 }
   0x6   : > { %176 = sbr.rel (%p173_p2) target bundleno = 2515 (0x9d3), region = 40 }
   0xb   : > { %v2174_v0 = vld [vmem:[%s2614_s4] sm:$0xff]  ;;  %195 = sbr.rel (%p1746_p3) target bundleno = 19 (0x13), region = 44 }
  0x10   : > { %v196_v1 = vld [vmem:[%s2610_s0] sm:$0xff]  ;;  %vm200_vm0 = vcmask 261120   ;;  %v197_v2 = vld [vmem:[%s2610_s0 + $0x8] sm:$0xff]  ;;  %v198_v3 = vld [vmem:[%s2610_s0 + $0x10] sm:$0xff] }
  0x11   : > { %201 = vst.msk [vmem:[%s2615_s5] sm:$0xff] %vm200_vm0, %v196_v1  ;;  %202 = vst.msk [vmem:[%s2615_s5 + $0x8] sm:$0xff] %vm200_vm0, %v197_v2  ;;  %v199_v4 = vld [vmem:[%s2610_s0 + $0x18] sm:$0xff] }
  0x12   : > { %203 = vst.msk [vmem:[%s2615_s5 + $0x10] sm:$0xff] %vm200_vm0, %v198_v3  ;;  %204 = vst.msk [vmem:[%s2615_s5 + $0x18] sm:$0xff] %vm200_vm0, %v199_v4 }
  0x13 PF: > { %v2019_v5 = vld [vmem:[%s2612_s2 + $0x18] ss:$12 sps:$4 sm:$0xff]   ;;  %v2020_v6 = vld [vmem:[%s2612_s2] ss:$12 sps:$4 sm:$0xff]   ;;  %vm239_vm1 = vcmask 261120   ;;  %v211_v15 = vld [vmem:[%s2611_s1 + $0x10] sm:$0xff]  ;;  %v223_v21 = vlaneseq }
  0x14   : > { %1833 = vmatprep.subr.bf16.mxu0 %v2019_v5  ;;  %v209_v9 = vld [vmem:[%s2611_s1] sm:$0xff]  ;;  %v210_v10 = vld [vmem:[%s2611_s1 + $0x8] sm:$0xff]  ;;  %v212_v16 = vld [vmem:[%s2611_s1 + $0x18] sm:$0xff]  ;;  %v2117_v23 = vmov 0.0   ;;  %vm2118_vm2 = vmmov 0   ;;  %s2119_s9 = smov 120  }
  0x15   : > { %1834 = vmatpush3.bf16.msra.mxu0 %v2019_v5  ;;  %v2244_v22 = vshrl.u32 %v223_v21, 7  ;;  %1841 = vmatprep.subr.bf16.mxu1 %v2117_v23  ;;  %s2120_s10 = smov 96   ;;  %s2121_s11 = smov 80   ;;  %vm304_vm3 = vcmask 64512   ;;  %vm352_vm4 = vcmask 130048   ;;  %vm814_vm5 = vcmask 195584  }
  0x16   : > { %1835 = vmatprep.subr.bf16.mxu0 %v2020_v6  ;;  %1843 = vmatprep.mubr.msk.bf16.mxu1 %vm2118_vm2, %v2117_v23  ;;  %s2122_s12 = smov 88   ;;  %s2123_s13 = smov 72   ;;  %vm1595_vm6 = vcmask 523264  }
  0x17   : > { %v225_v25 = vsub.s32 0, %v2244_v22  ;;  %s2124_s14 = smov 112   ;;  %s2125_s15 = smov 104  }
  0x18   : > { %v205_v7 = vld [vmem:[%s2615_s5] sm:$0xff]  ;;  %v206_v8 = vld [vmem:[%s2615_s5 + $0x8] sm:$0xff]  ;;  %s2126_s16 = smov 64   ;;  %s2127_s17 = smov 48  }
  0x19   : > { %v2218_v11 = vadd.f32 %v209_v9, %v205_v7  ;;  %v207_v12 = vld [vmem:[%s2615_s5 + $0x10] sm:$0xff]  ;;  %v208_v13 = vld [vmem:[%s2615_s5 + $0x18] sm:$0xff]  ;;  %v2226_v14 = vadd.f32 %v210_v10, %v206_v8  ;;  %1836 = vmatpush3.bf16.msra.mxu0 %v2020_v6  ;;  %v226_v28 = vrot.slane %v2174_v0, %v225_v25  ;;  %s2128_s19 = smov 56   ;;  %s2129_s20 = smov 40  }
  0x1a   : > { %v2234_v17 = vadd.f32 %v211_v15, %v207_v12  ;;  %v2236_v18 = vadd.f32 %v212_v16, %v208_v13  ;;  %1847 = vmatprep.subr.bf16.mxu0 %v2117_v23  ;;  %s2130_s21 = smov 8   ;;  %s2131_s22 = smov 16  }
  0x1b   : > { %v217_v19 = vpack.c.bf16 %v2226_v14, %v2218_v11  ;;  %s2132_s23 = smov 24  }
  0x1c   : > { %v218_v20 = vpack.c.bf16 %v2236_v18, %v2234_v17 }
  0x1d   : > { %1837 = vmatprep.mubr.msk.bf16.mxu0 %vm239_vm1, %v217_v19 }
  0x1e   : > { %1838 = vmatmul.mubr.msk.bf16.vlgmr.msra.gmra.mxu0 %vm239_vm1, %v218_v20 }
  0x1f   : > { %1849 = vmatprep.mubr.msk.bf16.mxu0 %vm2118_vm2, %v2117_v23 }
  0xde   : > { %v1839_v24 = vpop.f32.mrf.mxu0 }
  0xdf   : > { %v289_v34 = vadd.f32 %v1839_v24, %v226_v28 }
  0xe0   : > { %v280_v26 = vpop.f32.mrf.mxu0 }
  0xe1   : > { %v281_v30 = vadd.f32 %v280_v26, %v226_v28 }
  0xe2   : > { %v1840_v27 = vpop.f32.mrf.mxu0 }
  0xe3   : > { %v292_v33 = vadd.f32 %v1840_v27, %v226_v28 }
  0xe4   : > { %v283_v29 = vpop.f32.mrf.mxu0 }
  0xe5   : > { %v284_v31 = vadd.f32 %v283_v29, %v226_v28  ;;  %v2262_v35 = vpack.c.bf16 %v292_v33, %v289_v34 }
  0xe7   : > { %v2254_v32 = vpack.c.bf16 %v284_v31, %v281_v30 }
  0xe9   : > { %423 = vrot.lane.b32.xlu1 %v2254_v32, %s2119_s9  ;;  %302 = vrot.lane.b32.xlu0 %v2254_v32, %s2120_s10 }
  0xed   : > { %546 = vrot.lane.b32.xlu1 %v2254_v32, %s2121_s11  ;;  %425 = vrot.lane.b32.xlu0 %v2254_v32, %s2122_s12 }
  0xf1   : > { %667 = vrot.lane.b32.xlu1 %v2254_v32, %s2123_s13  ;;  %544 = vrot.lane.b32.xlu0 %v2254_v32, %s2124_s14 }
  0xf5   : > { %818 = vrot.lane.b32.xlu1 %v2262_v35, %s2120_s10  ;;  %665 = vrot.lane.b32.xlu0 %v2254_v32, %s2125_s15 }
  0xf9   : > { %937 = vrot.lane.b32.xlu1 %v2262_v35, %s2119_s9  ;;  %939 = vrot.lane.b32.xlu0 %v2262_v35, %s2122_s12 }
  0xfd   : > { %1058 = vrot.lane.b32.xlu1 %v2262_v35, %s2124_s14  ;;  %1060 = vrot.lane.b32.xlu0 %v2262_v35, %s2121_s11 }
 0x101   : > { %1179 = vrot.lane.b32.xlu1 %v2262_v35, %s2125_s15  ;;  %1181 = vrot.lane.b32.xlu0 %v2262_v35, %s2123_s13 }
 0x105   : > { %376 = vrot.lane.b32.xlu1 %v2254_v32, %s2126_s16 }
 0x15b   : > { %v424_v36 = vpop.permute.xlu1 %423  ;;  %v303_v37 = vpop.permute.xlu0 %302 }
 0x15c   : > { %v309_v38 = vsel %vm304_vm3, %v303_v37, 0 }
 0x15d   : > { %1842 = vmatpush3.bf16.xpose.msra.mxu1 %v309_v38 }
 0x15e   : > { %1853 = vmatprep.subr.bf16.mxu1 %v2117_v23 }
 0x15f   : > { %v547_v39 = vpop.permute.xlu1 %546  ;;  %v426_v40 = vpop.permute.xlu0 %425 }
 0x160   : > { %v431_v42 = vsel %vm304_vm3, %v426_v40, 0  ;;  %v552_v45 = vsel %vm304_vm3, %v547_v39, 0 }
 0x163   : > { %v668_v41 = vpop.permute.xlu1 %667  ;;  %v545_v47 = vpop.permute.xlu0 %544 }
 0x164   : > { %1844 = vmatmul.mubr.msk.bf16.vlgmr.msra.gmra.mxu1 %vm304_vm3, %v2254_v32  ;;  %v673_v49 = vsel %vm304_vm3, %v668_v41, 0 }
 0x165   : > { %1854 = vmatpush3.bf16.xpose.msra.mxu1 %v431_v42  ;;  %1855 = vmatprep.mubr.msk.bf16.mxu1 %vm2118_vm2, %v2117_v23 }
 0x166   : > { %1865 = vmatprep.subr.bf16.mxu1 %v2117_v23 }
 0x167   : > { %v819_v43 = vpop.permute.xlu1 %818  ;;  %v666_v51 = vpop.permute.xlu0 %665 }
 0x168   : > { %v824_v52 = vsel %vm304_vm3, %v819_v43, 0 }
 0x16b   : > { %v938_v44 = vpop.permute.xlu1 %937  ;;  %v940_v53 = vpop.permute.xlu0 %939 }
 0x16c   : > { %1856 = vmatmul.mubr.msk.bf16.vlgmr.msra.gmra.mxu1 %vm304_vm3, %v424_v36  ;;  %v945_v54 = vsel %vm304_vm3, %v940_v53, 0 }
 0x16d   : > { %1866 = vmatpush3.bf16.xpose.msra.mxu1 %v552_v45  ;;  %1867 = vmatprep.mubr.msk.bf16.mxu1 %vm2118_vm2, %v2117_v23 }
 0x16e   : > { %1877 = vmatprep.subr.bf16.mxu1 %v2117_v23 }
 0x16f   : > { %v1059_v46 = vpop.permute.xlu1 %1058  ;;  %v1061_v55 = vpop.permute.xlu0 %1060 }
 0x170   : > { %v1066_v56 = vsel %vm304_vm3, %v1061_v55, 0 }
 0x173   : > { %v1180_v48 = vpop.permute.xlu1 %1179  ;;  %v1182_v57 = vpop.permute.xlu0 %1181 }
 0x174   : > { %1868 = vmatmul.mubr.msk.bf16.vlgmr.msra.gmra.mxu1 %vm304_vm3, %v545_v47  ;;  %v1187_v58 = vsel %vm304_vm3, %v1182_v57, 0 }
 0x175   : > { %1878 = vmatpush3.bf16.xpose.msra.mxu1 %v673_v49  ;;  %1879 = vmatprep.mubr.msk.bf16.mxu1 %vm2118_vm2, %v2117_v23 }
 0x176   : > { %1889 = vmatprep.subr.bf16.mxu1 %v2117_v23 }
 0x177   : > { %v377_v50 = vpop.permute.xlu1 %376 }
 0x178   : > { %1848 = vmatpush3.bf16.msra.mxu0 %v377_v50 }
 0x179   : > { %1859 = vmatprep.subr.bf16.mxu0 %v2117_v23 }
 0x17c   : > { %1880 = vmatmul.mubr.msk.bf16.vlgmr.msra.gmra.mxu1 %vm304_vm3, %v666_v51 }
 0x17d   : > { %1890 = vmatpush3.bf16.xpose.msra.mxu1 %v824_v52  ;;  %1891 = vmatprep.mubr.msk.bf16.mxu1 %vm2118_vm2, %v2117_v23 }
 0x17e   : > { %1901 = vmatprep.subr.bf16.mxu1 %v2117_v23 }
 0x184   : > { %1892 = vmatmul.mubr.msk.bf16.vlgmr.msra.gmra.mxu1 %vm304_vm3, %v2262_v35 }
 0x185   : > { %1902 = vmatpush3.bf16.xpose.msra.mxu1 %v945_v54  ;;  %1903 = vmatprep.mubr.msk.bf16.mxu1 %vm2118_vm2, %v2117_v23 }
 0x186   : > { %1913 = vmatprep.subr.bf16.mxu1 %v2117_v23 }
 0x18c   : > { %1904 = vmatmul.mubr.msk.bf16.vlgmr.msra.gmra.mxu1 %vm304_vm3, %v938_v44 }
 0x18d   : > { %1914 = vmatpush3.bf16.xpose.msra.mxu1 %v1066_v56  ;;  %1915 = vmatprep.mubr.msk.bf16.mxu1 %vm2118_vm2, %v2117_v23 }
 0x18e   : > { %1925 = vmatprep.subr.bf16.mxu1 %v2117_v23 }
 0x194   : > { %1916 = vmatmul.mubr.msk.bf16.vlgmr.msra.gmra.mxu1 %vm304_vm3, %v1059_v46 }
 0x195   : > { %1926 = vmatpush3.bf16.xpose.msra.mxu1 %v1187_v58  ;;  %1927 = vmatprep.mubr.msk.bf16.mxu1 %vm2118_vm2, %v2117_v23 }
 0x19c   : > { %1928 = vmatmul.mubr.msk.bf16.vlgmr.msra.gmra.mxu1 %vm304_vm3, %v1180_v48 }
 0x224   : > { %v2314_v59 = vpop.f32.mrf.mxu1 }
 0x225   : > { %v353_v60 = vsel %vm352_vm4, %v2314_v59, -inf }
 0x226   : > { %354 = vmax.xlane.f32.xlu0 %v353_v60  ;;  %v1845_v61 = vpop.f32.mrf.mxu1 }
 0x228   : > { %v2318_v62 = vpop.f32.mrf.mxu1 }
 0x229   : > { %v356_v63 = vsel %vm352_vm4, %v2318_v62, -inf }
 0x22a   : > { %357 = vmax.xlane.f32.xlu1 %v356_v63  ;;  %v1846_v1 = vpop.f32.mrf.mxu1 }
 0x22c   : > { %v2322_v2 = vpop.f32.mrf.mxu1 }
 0x22d   : > { %v474_v3 = vsel %vm352_vm4, %v2322_v2, -inf }
 0x22e   : > { %475 = vmax.xlane.f32.xlu0 %v474_v3  ;;  %v1857_v4 = vpop.f32.mrf.mxu1 }
 0x230   : > { %v2326_v5 = vpop.f32.mrf.mxu1 }
 0x231   : > { %v477_v6 = vsel %vm352_vm4, %v2326_v5, -inf }
 0x232   : > { %478 = vmax.xlane.f32.xlu0 %v477_v6  ;;  %v1858_v7 = vpop.f32.mrf.mxu1 }
 0x234   : > { %v2330_v8 = vpop.f32.mrf.mxu1 }
 0x235   : > { %v595_v9 = vsel %vm352_vm4, %v2330_v8, -inf }
 0x236   : > { %596 = vmax.xlane.f32.xlu1 %v595_v9  ;;  %v1869_v10 = vpop.f32.mrf.mxu1 }
 0x238   : > { %v2334_v12 = vpop.f32.mrf.mxu1 }
 0x239   : > { %v598_v13 = vsel %vm352_vm4, %v2334_v12, -inf }
 0x23a   : > { %599 = vmax.xlane.f32.xlu0 %v598_v13  ;;  %v1870_v15 = vpop.f32.mrf.mxu1 }
 0x23c   : > { %v2338_v16 = vpop.f32.mrf.mxu1 }
 0x23d   : > { %v716_v19 = vsel %vm352_vm4, %v2338_v16, -inf }
 0x23e   : > { %717 = vmax.xlane.f32.xlu1 %v716_v19  ;;  %v1881_v20 = vpop.f32.mrf.mxu1 }
 0x240   : > { %v2342_v21 = vpop.f32.mrf.mxu1 }
 0x241   : > { %v719_v24 = vsel %vm352_vm4, %v2342_v21, -inf }
 0x242   : > { %720 = vmax.xlane.f32.xlu0 %v719_v24  ;;  %v1882_v25 = vpop.f32.mrf.mxu1 }
 0x244   : > { %v2346_v26 = vpop.f32.mrf.mxu1 }
 0x245   : > { %v867_v27 = vsel %vm352_vm4, %v2346_v26, -inf }
 0x246   : > { %868 = vmax.xlane.f32.xlu1 %v867_v27  ;;  %v1893_v28 = vpop.f32.mrf.mxu1 }
 0x248   : > { %v2350_v29 = vpop.f32.mrf.mxu1 }
 0x249   : > { %v870_v30 = vsel %vm352_vm4, %v2350_v29, -inf }
 0x24a   : > { %871 = vmax.xlane.f32.xlu0 %v870_v30  ;;  %v1894_v31 = vpop.f32.mrf.mxu1 }
 0x24c   : > { %v2354_v33 = vpop.f32.mrf.mxu1 }
 0x24d   : > { %v988_v34 = vsel %vm352_vm4, %v2354_v33, -inf }
 0x24e   : > { %989 = vmax.xlane.f32.xlu1 %v988_v34  ;;  %v1905_v36 = vpop.f32.mrf.mxu1 }
 0x250   : > { %v2358_v37 = vpop.f32.mrf.mxu1 }
 0x251   : > { %v991_v38 = vsel %vm352_vm4, %v2358_v37, -inf }
 0x252   : > { %992 = vmax.xlane.f32.xlu0 %v991_v38  ;;  %v1906_v39 = vpop.f32.mrf.mxu1 }
 0x254   : > { %v2362_v40 = vpop.f32.mrf.mxu1 }
 0x255   : > { %v1109_v41 = vsel %vm352_vm4, %v2362_v40, -inf }
 0x256   : > { %1110 = vmax.xlane.f32.xlu1 %v1109_v41  ;;  %v1917_v42 = vpop.f32.mrf.mxu1 }
 0x258   : > { %v2366_v43 = vpop.f32.mrf.mxu1 }
 0x259   : > { %v1112_v44 = vsel %vm352_vm4, %v2366_v43, -inf }
 0x25a   : > { %1113 = vmax.xlane.f32.xlu0 %v1112_v44  ;;  %v1918_v45 = vpop.f32.mrf.mxu1 }
 0x25c   : > { %v2370_v46 = vpop.f32.mrf.mxu1 }
 0x25d   : > { %v1230_v47 = vsel %vm352_vm4, %v2370_v46, -inf }
 0x25e   : > { %1231 = vmax.xlane.f32.xlu1 %v1230_v47  ;;  %v1929_v48 = vpop.f32.mrf.mxu1 }
 0x260   : > { %v2374_v49 = vpop.f32.mrf.mxu1 }
 0x261   : > { %v1233_v50 = vsel %vm352_vm4, %v2374_v49, -inf }
 0x262   : > { %1234 = vmax.xlane.f32.xlu0 %v1233_v50  ;;  %v1930_v51 = vpop.f32.mrf.mxu1 }
 0x26f   : > { %618 = vrot.lane.b32.xlu1 %v2254_v32, %s2127_s17 }
 0x278   : > { %497 = vrot.lane.b32.xlu0 %v2254_v32, %s2128_s19 }
 0x2af   : > { %v355_v52 = vpop.xlane.xlu0 %354 }
 0x2b0   : > { %v359_v53 = vsub.f32 %v2314_v59, %v355_v52 }
 0x2b2   : > { %v361_v54 = vmul.f32 1.442695, %v359_v53 }
 0x2b3   : > { %v358_v55 = vpop.xlane.xlu1 %357 }
 0x2b4   : > { %2029 = vpow2.f32 %v361_v54  ;;  %v360_v56 = vsub.f32 %v2318_v62, %v358_v55 }
 0x2b6   : > { %v363_v57 = vmul.f32 1.442695, %v360_v56 }
 0x2b7   : > { %v476_v58 = vpop.xlane.xlu0 %475 }
 0x2b8   : > { %2031 = vpow2.f32 %v363_v57  ;;  %v480_v60 = vsub.f32 %v2322_v2, %v476_v58 }
 0x2ba   : > { %v482_v61 = vmul.f32 1.442695, %v480_v60 }
 0x2bb   : > { %v479_v63 = vpop.xlane.xlu0 %478 }
 0x2bc   : > { %2033 = vpow2.f32 %v482_v61  ;;  %v481_v1 = vsub.f32 %v2326_v5, %v479_v63 }
 0x2be   : > { %v484_v3 = vmul.f32 1.442695, %v481_v1 }
 0x2bf   : > { %v597_v4 = vpop.xlane.xlu1 %596 }
 0x2c0   : > { %2035 = vpow2.f32 %v484_v3  ;;  %v601_v59 = vsub.f32 %v2330_v8, %v597_v4 }
 0x2c1   : > { %v2387_v6 = vpop.eup %2029 }
 0x2c2   : > { %v603_v7 = vmul.f32 1.442695, %v601_v59  ;;  %v365_v62 = vsel %vm352_vm4, %v2387_v6, 0.0 }
 0x2c3   : > { %366 = vadd.xlane.f32.xlu1 %v365_v62  ;;  %v600_v9 = vpop.xlane.xlu0 %599 }
 0x2c4   : > { %2037 = vpow2.f32 %v603_v7  ;;  %v602_v2 = vsub.f32 %v2334_v12, %v600_v9 }
 0x2c5   : > { %v2392_v10 = vpop.eup %2031 }
 0x2c6   : > { %v605_v13 = vmul.f32 1.442695, %v602_v2  ;;  %v368_v5 = vsel %vm352_vm4, %v2392_v10, 0.0 }
 0x2c7   : > { %v718_v15 = vpop.xlane.xlu1 %717  ;;  %369 = vadd.xlane.f32.xlu0 %v368_v5 }
 0x2c8   : > { %2039 = vpow2.f32 %v605_v13  ;;  %v722_v8 = vsub.f32 %v2338_v16, %v718_v15 }
 0x2c9   : > { %v2397_v19 = vpop.eup %2033 }
 0x2ca   : > { %v724_v20 = vmul.f32 1.442695, %v722_v8  ;;  %v486_v24 = vsel %vm352_vm4, %v2397_v19, 0.0 }
 0x2cb   : > { %487 = vadd.xlane.f32.xlu1 %v486_v24  ;;  %v721_v25 = vpop.xlane.xlu0 %720 }
 0x2cc   : > { %2041 = vpow2.f32 %v724_v20  ;;  %v723_v12 = vsub.f32 %v2342_v21, %v721_v25 }
 0x2cd   : > { %v2402_v27 = vpop.eup %2035 }
 0x2ce   : > { %v726_v28 = vmul.f32 1.442695, %v723_v12  ;;  %v489_v30 = vsel %vm352_vm4, %v2402_v27, 0.0 }
 0x2cf   : > { %v869_v31 = vpop.xlane.xlu1 %868  ;;  %490 = vadd.xlane.f32.xlu0 %v489_v30 }
 0x2d0   : > { %2043 = vpow2.f32 %v726_v28  ;;  %v873_v16 = vsub.f32 %v2346_v26, %v869_v31 }
 0x2d1   : > { %v2407_v34 = vpop.eup %2037 }
 0x2d2   : > { %v875_v36 = vmul.f32 1.442695, %v873_v16  ;;  %v607_v38 = vsel %vm352_vm4, %v2407_v34, 0.0 }
 0x2d3   : > { %608 = vadd.xlane.f32.xlu1 %v607_v38  ;;  %v872_v39 = vpop.xlane.xlu0 %871 }
 0x2d4   : > { %2045 = vpow2.f32 %v875_v36  ;;  %v874_v21 = vsub.f32 %v2350_v29, %v872_v39 }
 0x2d5   : > { %v2412_v41 = vpop.eup %2039 }
 0x2d6   : > { %v877_v42 = vmul.f32 1.442695, %v874_v21  ;;  %v610_v44 = vsel %vm352_vm4, %v2412_v41, 0.0 }
 0x2d7   : > { %v990_v45 = vpop.xlane.xlu1 %989  ;;  %611 = vadd.xlane.f32.xlu0 %v610_v44 }
 0x2d8   : > { %2047 = vpow2.f32 %v877_v42  ;;  %v994_v26 = vsub.f32 %v2354_v33, %v990_v45 }
 0x2d9   : > { %v2417_v47 = vpop.eup %2041 }
 0x2da   : > { %v996_v48 = vmul.f32 1.442695, %v994_v26  ;;  %v728_v50 = vsel %vm352_vm4, %v2417_v47, 0.0 }
 0x2db   : > { %729 = vadd.xlane.f32.xlu1 %v728_v50  ;;  %v993_v51 = vpop.xlane.xlu0 %992 }
 0x2dc   : > { %2049 = vpow2.f32 %v996_v48  ;;  %v995_v29 = vsub.f32 %v2358_v37, %v993_v51 }
 0x2dd   : > { %v2422_v52 = vpop.eup %2043 }
 0x2de   : > { %v998_v53 = vmul.f32 1.442695, %v995_v29  ;;  %v731_v54 = vsel %vm352_vm4, %v2422_v52, 0.0 }
 0x2df   : > { %v1111_v55 = vpop.xlane.xlu1 %1110  ;;  %732 = vadd.xlane.f32.xlu0 %v731_v54 }
 0x2e0   : > { %2051 = vpow2.f32 %v998_v53  ;;  %v1115_v33 = vsub.f32 %v2362_v40, %v1111_v55 }
 0x2e1   : > { %v2427_v56 = vpop.eup %2045 }
 0x2e2   : > { %v1117_v57 = vmul.f32 1.442695, %v1115_v33  ;;  %v879_v58 = vsel %vm352_vm4, %v2427_v56, 0.0 }
 0x2e3   : > { %880 = vadd.xlane.f32.xlu0 %v879_v58  ;;  %v1114_v60 = vpop.xlane.xlu0 %1113 }
 0x2e4   : > { %2053 = vpow2.f32 %v1117_v57  ;;  %v1116_v37 = vsub.f32 %v2366_v43, %v1114_v60 }
 0x2e5   : > { %v2432_v61 = vpop.eup %2047 }
 0x2e6   : > { %v1119_v63 = vmul.f32 1.442695, %v1116_v37  ;;  %v882_v1 = vsel %vm352_vm4, %v2432_v61, 0.0 }
 0x2e7   : > { %v1232_v3 = vpop.xlane.xlu1 %1231  ;;  %883 = vadd.xlane.f32.xlu0 %v882_v1 }
 0x2e8   : > { %2055 = vpow2.f32 %v1119_v63  ;;  %v1236_v40 = vsub.f32 %v2370_v46, %v1232_v3 }
 0x2e9   : > { %v2437_v4 = vpop.eup %2049 }
 0x2ea   : > { %v1238_v59 = vmul.f32 1.442695, %v1236_v40  ;;  %v1000_v7 = vsel %vm352_vm4, %v2437_v4, 0.0 }
 0x2eb   : > { %1001 = vadd.xlane.f32.xlu1 %v1000_v7  ;;  %v1235_v8 = vpop.xlane.xlu0 %1234 }
 0x2ec   : > { %2057 = vpow2.f32 %v1238_v59  ;;  %v1237_v20 = vsub.f32 %v2374_v49, %v1235_v8  ;;  %v619_v49 = vpop.permute.xlu1 %618 }
 0x2ed   : > { %v2441_v43 = vpop.eup %2051 }
 0x2ee   : > { %v1003_v62 = vsel %vm352_vm4, %v2441_v43, 0.0  ;;  %v1240_v24 = vmul.f32 1.442695, %v1237_v20 }
 0x2ef   : > { %1004 = vadd.xlane.f32.xlu0 %v1003_v62  ;;  %v498_v12 = vpop.permute.xlu0 %497 }
 0x2f0   : > { %2059 = vpow2.f32 %v1240_v24 }
 0x2f1   : > { %v2445_v9 = vpop.eup %2053 }
 0x2f2   : > { %v1121_v2 = vsel %vm352_vm4, %v2445_v9, 0.0 }
 0x2f3   : > { %1122 = vadd.xlane.f32.xlu0 %v1121_v2 }
 0x2f5   : > { %v2449_v46 = vpop.eup %2055 }
 0x2f6   : > { %v1124_v13 = vsel %vm352_vm4, %v2449_v46, 0.0 }
 0x2f7   : > { %1125 = vadd.xlane.f32.xlu0 %v1124_v13 }
 0x2f9   : > { %v2453_v5 = vpop.eup %2057 }
 0x2fa   : > { %v1242_v15 = vsel %vm352_vm4, %v2453_v5, 0.0 }
 0x2fb   : > { %1243 = vadd.xlane.f32.xlu0 %v1242_v15 }
 0x2fc   : > { %739 = vrot.lane.b32.xlu1 %v2254_v32, %s2129_s20 }
 0x2fd   : > { %v2465_v25 = vpop.eup %2059 }
 0x2fe   : > { %v1245_v32 = vsel %vm352_vm4, %v2465_v25, 0.0 }
 0x311   : > { %890 = vrot.lane.b32.xlu0 %v2262_v35, %s2126_s16 }
 0x315   : > { %1011 = vrot.lane.b32.xlu0 %v2262_v35, %s2128_s19 }
 0x319   : > { %1132 = vrot.lane.b32.xlu0 %v2262_v35, %s2127_s17 }
 0x31d   : > { %1253 = vrot.lane.b32.xlu0 %v2262_v35, %s2129_s20 }
 0x320   : > { %1246 = vadd.xlane.f32.xlu1 %v1245_v32 }
 0x34c   : > { %v367_v28 = vpop.xlane.xlu1 %366 }
 0x34d   : > { %2061 = vrcp.f32 %v367_v28 }
 0x350   : > { %v370_v30 = vpop.xlane.xlu0 %369 }
 0x351   : > { %2063 = vrcp.f32 %v370_v30 }
 0x354   : > { %v488_v31 = vpop.xlane.xlu1 %487 }
 0x355   : > { %2065 = vrcp.f32 %v488_v31 }
 0x358   : > { %v491_v16 = vpop.xlane.xlu0 %490 }
 0x359   : > { %2067 = vrcp.f32 %v491_v16 }
 0x35a   : > { %v2062_v36 = vpop.eup %2061 }
 0x35b   : > { %v373_v35 = vmul.f32 %v2062_v36, %v2387_v6 }
 0x35c   : > { %v609_v38 = vpop.xlane.xlu1 %608 }
 0x35d   : > { %2069 = vrcp.f32 %v609_v38 }
 0x35e   : > { %v2064_v39 = vpop.eup %2063 }
 0x35f   : > { %v374_v21 = vmul.f32 %v2064_v39, %v2392_v10 }
 0x360   : > { %v612_v42 = vpop.xlane.xlu0 %611 }
 0x361   : > { %2071 = vrcp.f32 %v612_v42  ;;  %v375_v44 = vpack.c.bf16 %v374_v21, %v373_v35 }
 0x362   : > { %v2066_v45 = vpop.eup %2065 }
 0x363   : > { %1850 = vmatmul.mubr.msk.bf16.vlgmr.msra.gmra.mxu0 %vm352_vm4, %v375_v44  ;;  %v494_v50 = vmul.f32 %v2066_v45, %v2397_v19 }
 0x364   : > { %1860 = vmatpush3.bf16.msra.mxu0 %v498_v12  ;;  %v730_v26 = vpop.xlane.xlu1 %729  ;;  %1861 = vmatprep.mubr.msk.bf16.mxu0 %vm2118_vm2, %v2117_v23 }
 0x365   : > { %1871 = vmatprep.subr.bf16.mxu0 %v2117_v23  ;;  %2073 = vrcp.f32 %v730_v26 }
 0x366   : > { %v2068_v48 = vpop.eup %2067 }
 0x367   : > { %v495_v6 = vmul.f32 %v2068_v48, %v2402_v27 }
 0x368   : > { %v733_v10 = vpop.xlane.xlu0 %732 }
 0x369   : > { %2075 = vrcp.f32 %v733_v10  ;;  %v496_v51 = vpack.c.bf16 %v495_v6, %v494_v50 }
 0x36a   : > { %v2070_v29 = vpop.eup %2069 }
 0x36b   : > { %1862 = vmatmul.mubr.msk.bf16.vlgmr.msra.gmra.mxu0 %vm352_vm4, %v496_v51  ;;  %v615_v55 = vmul.f32 %v2070_v29, %v2407_v34 }
 0x36c   : > { %1872 = vmatpush3.bf16.msra.mxu0 %v619_v49  ;;  %1873 = vmatprep.mubr.msk.bf16.mxu0 %vm2118_vm2, %v2117_v23  ;;  %v881_v53 = vpop.xlane.xlu0 %880 }
 0x36d   : > { %1883 = vmatprep.subr.bf16.mxu0 %v2117_v23 }
 0x36e   : > { %v2072_v54 = vpop.eup %2071 }
 0x36f   : > { %v616_v19 = vmul.f32 %v2072_v54, %v2412_v41 }
 0x370   : > { %v884_v27 = vpop.xlane.xlu0 %883 }
 0x371   : > { %v617_v33 = vpack.c.bf16 %v616_v19, %v615_v55  ;;  %2077 = vrcp.f32 %v884_v27 }
 0x372   : > { %v2074_v57 = vpop.eup %2073  ;;  %2079 = vrcp.f32 %v881_v53 }
 0x373   : > { %1874 = vmatmul.mubr.msk.bf16.vlgmr.msra.gmra.mxu0 %vm352_vm4, %v617_v33  ;;  %v736_v37 = vmul.f32 %v2074_v57, %v2417_v47 }
 0x374   : > { %v1002_v58 = vpop.xlane.xlu1 %1001  ;;  %1885 = vmatprep.mubr.msk.bf16.mxu0 %vm2118_vm2, %v2117_v23 }
 0x376   : > { %v2076_v60 = vpop.eup %2075 }
 0x377   : > { %v737_v63 = vmul.f32 %v2076_v60, %v2422_v52 }
 0x378   : > { %v740_v1 = vpop.permute.xlu1 %739  ;;  %v1005_v34 = vpop.xlane.xlu0 %1004 }
 0x379   : > { %1884 = vmatpush3.bf16.msra.mxu0 %v740_v1  ;;  %v738_v41 = vpack.c.bf16 %v737_v63, %v736_v37  ;;  %2081 = vrcp.f32 %v1005_v34  ;;  %v2021_v63 = vld [vmem:[%s2612_s2 + $0x1c] ss:$12 sps:$4 sm:$0xff]  }
 0x37a   : > { %1895 = vmatprep.subr.bf16.mxu0 %v2117_v23  ;;  %2083 = vrcp.f32 %v1002_v58  ;;  %1937 = vmatprep.subr.bf16.mxu1 %v2021_v63 }
 0x37b   : > { %1938 = vmatpush3.bf16.msra.mxu1 %v2021_v63 }
 0x37c   : > { %1886 = vmatmul.mubr.msk.bf16.vlgmr.msra.gmra.mxu0 %vm352_vm4, %v738_v41  ;;  %v1123_v3 = vpop.xlane.xlu0 %1122 }
 0x37d   : > { %1897 = vmatprep.mubr.msk.bf16.mxu0 %vm2118_vm2, %v2117_v23 }
 0x37e   : > { %v2078_v59 = vpop.eup %2077 }
 0x37f   : > { %v2080_v7 = vpop.eup %2079  ;;  %v888_v52 = vmul.f32 %v2078_v59, %v2432_v61 }
 0x380   : > { %v1126_v40 = vpop.xlane.xlu0 %1125  ;;  %v887_v2 = vmul.f32 %v2080_v7, %v2427_v56  ;;  %v2022_v7 = vld [vmem:[%s2612_s2 + $0x4] ss:$12 sps:$4 sm:$0xff]  }
 0x381   : > { %2085 = vrcp.f32 %v1126_v40  ;;  %1939 = vmatprep.subr.bf16.mxu1 %v2022_v7 }
 0x382   : > { %2087 = vrcp.f32 %v1123_v3  ;;  %v889_v13 = vpack.c.bf16 %v888_v52, %v887_v2  ;;  %1940 = vmatpush3.bf16.msra.mxu1 %v2022_v7 }
 0x384   : > { %v1244_v47 = vpop.xlane.xlu0 %1243 }
 0x385   : > { %2089 = vrcp.f32 %v1244_v47 }
 0x386   : > { %v2082_v15 = vpop.eup %2081 }
 0x387   : > { %v2084_v20 = vpop.eup %2083  ;;  %v1009_v61 = vmul.f32 %v2082_v15, %v2441_v43 }
 0x388   : > { %v891_v62 = vpop.permute.xlu0 %890  ;;  %v1008_v24 = vmul.f32 %v2084_v20, %v2437_v4 }
 0x389   : > { %1896 = vmatpush3.bf16.msra.mxu0 %v891_v62 }
 0x38a   : > { %1907 = vmatprep.subr.bf16.mxu0 %v2117_v23  ;;  %v1010_v56 = vpack.c.bf16 %v1009_v61, %v1008_v24 }
 0x38c   : > { %1898 = vmatmul.mubr.msk.bf16.vlgmr.msra.gmra.mxu0 %vm352_vm4, %v889_v13  ;;  %v1012_v8 = vpop.permute.xlu0 %1011 }
 0x38d   : > { %1908 = vmatpush3.bf16.msra.mxu0 %v1012_v8  ;;  %1909 = vmatprep.mubr.msk.bf16.mxu0 %vm2118_vm2, %v2117_v23 }
 0x38e   : > { %1919 = vmatprep.subr.bf16.mxu0 %v2117_v23  ;;  %v2086_v32 = vpop.eup %2085 }
 0x38f   : > { %v2088_v12 = vpop.eup %2087  ;;  %v1130_v28 = vmul.f32 %v2086_v32, %v2449_v46 }
 0x390   : > { %v1133_v49 = vpop.permute.xlu0 %1132  ;;  %v1129_v30 = vmul.f32 %v2088_v12, %v2445_v9 }
 0x392   : > { %v1131_v31 = vpack.c.bf16 %v1130_v28, %v1129_v30  ;;  %v2090_v16 = vpop.eup %2089 }
 0x393   : > { %v1250_v38 = vmul.f32 %v2090_v16, %v2453_v5 }
 0x394   : > { %1910 = vmatmul.mubr.msk.bf16.vlgmr.msra.gmra.mxu0 %vm352_vm4, %v1010_v56  ;;  %v1254_v43 = vpop.permute.xlu0 %1253 }
 0x395   : > { %1920 = vmatpush3.bf16.msra.mxu0 %v1133_v49  ;;  %1921 = vmatprep.mubr.msk.bf16.mxu0 %vm2118_vm2, %v2117_v23 }
 0x396   : > { %1931 = vmatprep.subr.bf16.mxu0 %v2117_v23 }
 0x39c   : > { %1922 = vmatmul.mubr.msk.bf16.vlgmr.msra.gmra.mxu0 %vm352_vm4, %v1131_v31 }
 0x39d   : > { %1932 = vmatpush3.bf16.msra.mxu0 %v1254_v43  ;;  %1933 = vmatprep.mubr.msk.bf16.mxu0 %vm2118_vm2, %v2117_v23 }
 0x3a9   : > { %v1247_v4 = vpop.xlane.xlu1 %1246 }
 0x3aa   : > { %2091 = vrcp.f32 %v1247_v4 }
 0x3b7   : > { %v2092_v36 = vpop.eup %2091 }
 0x3b8   : > { %v1251_v39 = vmul.f32 %v2092_v36, %v2465_v25 }
 0x3ba   : > { %v1252_v46 = vpack.c.bf16 %v1251_v39, %v1250_v38 }
 0x3bc   : > { %1934 = vmatmul.mubr.msk.bf16.vlgmr.msra.gmra.mxu0 %vm352_vm4, %v1252_v46 }
 0x423   : > { %v2514_v9 = vpop.f32.mrf.mxu0 }
 0x425   : > { %v1851_v35 = vpop.f32.mrf.mxu0 }
 0x427   : > { %v419_v21 = vpop.f32.mrf.mxu0 }
 0x429   : > { %v1852_v42 = vpop.f32.mrf.mxu0 }
 0x42b   : > { %v537_v44 = vpop.f32.mrf.mxu0 }
 0x42d   : > { %v1863_v45 = vpop.f32.mrf.mxu0 }
 0x42f   : > { %v540_v23 = vpop.f32.mrf.mxu0 }
 0x430   : > { %v1989_v26 = vpack.i.bf16 %v540_v23, %v537_v44 }
 0x431   : > { %v1864_v48 = vpop.f32.mrf.mxu0 }
 0x432   : > { %1990 = vrot.lane.b32.xlu0 %v1989_v26, %s2130_s21 }
 0x433   : > { %v658_v50 = vpop.f32.mrf.mxu0 }
 0x435   : > { %v1875_v6 = vpop.f32.mrf.mxu0 }
 0x437   : > { %v661_v5 = vpop.f32.mrf.mxu0 }
 0x438   : > { %v1994_v10 = vpack.i.bf16 %v661_v5, %v658_v50 }
 0x439   : > { %v1876_v25 = vpop.f32.mrf.mxu0 }
 0x43a   : > { %1995 = vrot.lane.b32.xlu1 %v1994_v10, %s2131_s22 }
 0x43c   : > { %v779_v51 = vpop.f32.mrf.mxu0 }
 0x43e   : > { %v1887_v29 = vpop.f32.mrf.mxu0 }
 0x440   : > { %v782_v53 = vpop.f32.mrf.mxu0 }
 0x441   : > { %v1999_v54 = vpack.i.bf16 %v782_v53, %v779_v51  ;;  %v1334_v51 = vsub.s32 1, %v2244_v22 }
 0x442   : > { %v1888_v55 = vpop.f32.mrf.mxu0 }
 0x443   : > { %2000 = vrot.lane.b32.xlu0 %v1999_v54, %s2132_s23  ;;  %v1335_v53 = vrot.slane %v2174_v0, %v1334_v51 }
 0x44c   : > { %v930_v19 = vpop.f32.mrf.mxu0 }
 0x44e   : > { %v1899_v33 = vpop.f32.mrf.mxu0 }
 0x450   : > { %v933_v27 = vpop.f32.mrf.mxu0 }
 0x452   : > { %v1900_v57 = vpop.f32.mrf.mxu0 }
 0x454   : > { %v1051_v58 = vpop.f32.mrf.mxu0 }
 0x456   : > { %v1911_v60 = vpop.f32.mrf.mxu0 }
 0x458   : > { %v1054_v37 = vpop.f32.mrf.mxu0 }
 0x459   : > { %v2004_v1 = vpack.i.bf16 %v1054_v37, %v1051_v58 }
 0x45a   : > { %v1912_v34 = vpop.f32.mrf.mxu0 }
 0x45b   : > { %2005 = vrot.lane.b32.xlu0 %v2004_v1, %s2130_s21 }
 0x45c   : > { %v1172_v41 = vpop.f32.mrf.mxu0 }
 0x45e   : > { %v1923_v3 = vpop.f32.mrf.mxu0 }
 0x460   : > { %v1175_v40 = vpop.f32.mrf.mxu0 }
 0x461   : > { %v2009_v59 = vpack.i.bf16 %v1175_v40, %v1172_v41 }
 0x462   : > { %v1924_v47 = vpop.f32.mrf.mxu0 }
 0x463   : > { %2010 = vrot.lane.b32.xlu0 %v2009_v59, %s2131_s22 }
 0x47c   : > { %v1293_v52 = vpop.f32.mrf.mxu0 }
 0x47e   : > { %v1935_v62 = vpop.f32.mrf.mxu0 }
 0x480   : > { %v1296_v2 = vpop.f32.mrf.mxu0 }
 0x481   : > { %v2014_v13 = vpack.i.bf16 %v1296_v2, %v1293_v52 }
 0x482   : > { %v1936_v15 = vpop.f32.mrf.mxu0 }
 0x483   : > { %2015 = vrot.lane.b32.xlu0 %v2014_v13, %s2132_s23 }
 0x4a4   : > { %v1991_v8 = vpop.permute.xlu0 %1990 }
 0x4a5   : > { %v1993_v61 = vunpack.i.h.bf16 %v1991_v8  ;;  %v1992_v24 = vunpack.i.l.bf16 %v1991_v8 }
 0x4a7   : > { %v811_v12 = vsel %vm304_vm3, %v419_v21, %v1993_v61  ;;  %v810_v28 = vsel %vm304_vm3, %v2514_v9, %v1992_v24 }
 0x4ac   : > { %v1996_v20 = vpop.permute.xlu1 %1995 }
 0x4ad   : > { %v1998_v56 = vunpack.i.h.bf16 %v1996_v20  ;;  %v1997_v32 = vunpack.i.l.bf16 %v1996_v20 }
 0x4af   : > { %v812_v43 = vsel %vm352_vm4, %v810_v28, %v1997_v32  ;;  %v813_v4 = vsel %vm352_vm4, %v811_v12, %v1998_v56  ;;  %v2023_v28 = vld [vmem:[%s2612_s2 + $0x20] ss:$12 sps:$4 sm:$0xff]  }
 0x4b0   : > { %1945 = vmatprep.subr.bf16.mxu0 %v2023_v28 }
 0x4b1   : > { %1946 = vmatpush3.bf16.msra.mxu0 %v2023_v28 }
 0x4b5   : > { %v2001_v49 = vpop.permute.xlu0 %2000 }
 0x4b6   : > { %v2003_v30 = vunpack.i.h.bf16 %v2001_v49  ;;  %v2002_v31 = vunpack.i.l.bf16 %v2001_v49 }
 0x4b8   : > { %v815_v16 = vsel %vm814_vm5, %v812_v43, %v2002_v31  ;;  %v816_v36 = vsel %vm814_vm5, %v813_v4, %v2003_v30  ;;  %v2024_v30 = vld [vmem:[%s2612_s2 + $0x8] ss:$12 sps:$4 sm:$0xff]   ;;  %v2025_v31 = vld [vmem:[%s2613_s3 + $0x18] sm:$0xff]  }
 0x4b9   : > { %v1330_v38 = vpack.c.bf16 %v816_v36, %v815_v16  ;;  %1947 = vmatprep.subr.bf16.mxu0 %v2024_v30  ;;  %1953 = vmatprep.subr.bf16.mxu1 %v2025_v31 }
 0x4ba   : > { %1948 = vmatpush3.bf16.msra.mxu0 %v2024_v30 }
 0x4bb   : > { %1941 = vmatprep.mubr.msk.bf16.mxu1 %vm239_vm1, %v1330_v38 }
 0x4cd   : > { %v2006_v39 = vpop.permute.xlu0 %2005 }
 0x4ce   : > { %v2008_v35 = vunpack.i.h.bf16 %v2006_v39  ;;  %v2007_v21 = vunpack.i.l.bf16 %v2006_v39 }
 0x4d0   : > { %v1325_v45 = vsel %vm304_vm3, %v933_v27, %v2008_v35  ;;  %v1324_v23 = vsel %vm304_vm3, %v930_v19, %v2007_v21 }
 0x4d5   : > { %v2011_v46 = vpop.permute.xlu0 %2010 }
 0x4d6   : > { %v2013_v42 = vunpack.i.h.bf16 %v2011_v46  ;;  %v2012_v44 = vunpack.i.l.bf16 %v2011_v46 }
 0x4d8   : > { %v1326_v50 = vsel %vm352_vm4, %v1324_v23, %v2012_v44  ;;  %v1327_v6 = vsel %vm352_vm4, %v1325_v45, %v2013_v42  ;;  %v1462_v45 = vsub.s32 2, %v2244_v22 }
 0x4f5   : > { %v2016_v9 = vpop.permute.xlu0 %2015 }
 0x4f6   : > { %v2018_v26 = vunpack.i.h.bf16 %v2016_v9  ;;  %v2017_v48 = vunpack.i.l.bf16 %v2016_v9 }
 0x4f8   : > { %v1328_v5 = vsel %vm814_vm5, %v1326_v50, %v2017_v48  ;;  %v1329_v10 = vsel %vm814_vm5, %v1327_v6, %v2018_v26  ;;  %v1463_v48 = vrot.slane %v2174_v0, %v1462_v45  ;;  %v1470_v50 = vsub.s32 3, %v2244_v22 }
 0x4f9   : > { %v1331_v25 = vpack.c.bf16 %v1329_v10, %v1328_v5 }
 0x4fb   : > { %1942 = vmatmul.mubr.msk.bf16.vlgmr.msra.gmra.mxu1 %vm239_vm1, %v1331_v25  ;;  %v1471_v25 = vrot.slane %v2174_v0, %v1470_v50 }
 0x4fc   : > { %1954 = vmatpush3.bf16.msra.mxu1 %v2025_v31 }
 0x5bb   : > { %v1943_v29 = vpop.f32.mrf.mxu1 }
 0x5bc   : > { %v1397_v58 = vadd.f32 %v1943_v29, %v1335_v53 }
 0x5bd   : > { %v1388_v54 = vpop.f32.mrf.mxu1 }
 0x5be   : > { %v1389_v55 = vadd.f32 %v1388_v54, %v1335_v53  ;;  %v1405_v3 = vadd.f32 %v1397_v58, %v2234_v17 }
 0x5bf   : > { %v1944_v19 = vpop.f32.mrf.mxu1 }
 0x5c0   : > { %v1400_v33 = vadd.f32 %v1944_v19, %v1335_v53  ;;  %v1403_v27 = vadd.f32 %v1389_v55, %v2218_v11  ;;  %v1413_v11 = vsel %vm239_vm1, %v1405_v3, 0.0 }
 0x5c1   : > { %v1391_v57 = vpop.f32.mrf.mxu1 }
 0x5c2   : > { %v1392_v60 = vadd.f32 %v1391_v57, %v1335_v53  ;;  %v1407_v37 = vsel %vm239_vm1, %v1403_v27, 0.0  ;;  %v1406_v63 = vadd.f32 %v1400_v33, %v2236_v18 }
 0x5c3   : > { %1408 = vadd.xlane.f32.xlu1 %v1407_v37 }
 0x5c4   : > { %v1404_v1 = vadd.f32 %v1392_v60, %v2226_v14  ;;  %v1416_v41 = vsel %vm239_vm1, %v1406_v63, 0.0 }
 0x5c6   : > { %v1410_v34 = vsel %vm239_vm1, %v1404_v1, 0.0 }
 0x5c7   : > { %1411 = vadd.xlane.f32.xlu0 %v1410_v34  ;;  %1417 = vadd.xlane.f32.xlu1 %v1416_v41  ;;  %v2027_v34 = vld [vmem:[%s2613_s3 + $0x8] sm:$0xff]   ;;  %v2028_v41 = vld [vmem:[%s2613_s3] sm:$0xff]  }
 0x5cb   : > { %1414 = vadd.xlane.f32.xlu0 %v1413_v11 }
 0x64c   : > { %v1409_v40 = vpop.xlane.xlu1 %1408 }
 0x64d   : > { %v1420_v59 = vmul.f32 0.03125, %v1409_v40 }
 0x64f   : > { %v1424_v47 = vsub.f32 %v1403_v27, %v1420_v59 }
 0x650   : > { %v1412_v7 = vpop.xlane.xlu0 %1411  ;;  %v1418_v52 = vpop.xlane.xlu1 %1417 }
 0x651   : > { %v1421_v18 = vmul.f32 0.03125, %v1412_v7  ;;  %v1423_v62 = vmul.f32 0.03125, %v1418_v52  ;;  %v1428_v2 = vmul.f32 %v1424_v47, %v1424_v47 }
 0x653   : > { %v1425_v14 = vsub.f32 %v1404_v1, %v1421_v18  ;;  %v1427_v13 = vsub.f32 %v1406_v63, %v1423_v62  ;;  %v1432_v15 = vsel %vm239_vm1, %v1428_v2, 0.0  ;;  %v2026_v1 = vld [vmem:[%s2613_s3 + $0x10] sm:$0xff]  }
 0x654   : > { %v1415_v8 = vpop.xlane.xlu0 %1414  ;;  %1433 = vadd.xlane.f32.xlu0 %v1432_v15  ;;  %1955 = vmatprep.subr.bf16.mxu1 %v2026_v1 }
 0x655   : > { %v1422_v17 = vmul.f32 0.03125, %v1415_v8  ;;  %v1429_v20 = vmul.f32 %v1425_v14, %v1425_v14  ;;  %v1431_v56 = vmul.f32 %v1427_v13, %v1427_v13  ;;  %1956 = vmatpush3.bf16.msra.mxu1 %v2026_v1 }
 0x656   : > { %1957 = vmatprep.subr.bf16.mxu1 %v2027_v34 }
 0x657   : > { %v1426_v61 = vsub.f32 %v1405_v3, %v1422_v17  ;;  %v1435_v24 = vsel %vm239_vm1, %v1429_v20, 0.0  ;;  %v1441_v12 = vsel %vm239_vm1, %v1431_v56, 0.0  ;;  %v1484_v3 = vsub.s32 4, %v2244_v22 }
 0x658   : > { %1436 = vadd.xlane.f32.xlu1 %v1435_v24 }
 0x659   : > { %v1430_v32 = vmul.f32 %v1426_v61, %v1426_v61  ;;  %1958 = vmatpush3.bf16.msra.mxu1 %v2027_v34  ;;  %v1485_v40 = vrot.slane %v2174_v0, %v1484_v3 }
 0x65a   : > { %1959 = vmatprep.subr.bf16.mxu1 %v2028_v41 }
 0x65b   : > { %v1438_v49 = vsel %vm239_vm1, %v1430_v32, 0.0 }
 0x65c   : > { %1439 = vadd.xlane.f32.xlu0 %v1438_v49  ;;  %1442 = vadd.xlane.f32.xlu1 %v1441_v12 }
 0x65d   : > { %1960 = vmatpush3.bf16.msra.mxu1 %v2028_v41 }
 0x6dd   : > { %v1434_v43 = vpop.xlane.xlu0 %1433 }
 0x6de   : > { %v1444_v4 = vmul.f32 0.03125, %v1434_v43 }
 0x6e0   : > { %v1448_v16 = vadd.f32 1e-05, %v1444_v4 }
 0x6e1   : > { %v1437_v36 = vpop.xlane.xlu1 %1436 }
 0x6e2   : > { %2093 = vrsqrt.f32 %v1448_v16  ;;  %v1445_v38 = vmul.f32 0.03125, %v1437_v36 }
 0x6e4   : > { %v1449_v39 = vadd.f32 1e-05, %v1445_v38 }
 0x6e5   : > { %v1440_v46 = vpop.xlane.xlu0 %1439  ;;  %v1443_v35 = vpop.xlane.xlu1 %1442 }
 0x6e6   : > { %2095 = vrsqrt.f32 %v1449_v39  ;;  %v1446_v21 = vmul.f32 0.03125, %v1440_v46  ;;  %v1447_v42 = vmul.f32 0.03125, %v1443_v35 }
 0x6e8   : > { %v1450_v44 = vadd.f32 1e-05, %v1446_v21  ;;  %v1451_v9 = vadd.f32 1e-05, %v1447_v42 }
 0x6ea   : > { %2097 = vrsqrt.f32 %v1450_v44 }
 0x6eb   : > { %2099 = vrsqrt.f32 %v1451_v9 }
 0x6ef   : > { %v2094_v23 = vpop.eup %2093 }
 0x6f0   : > { %v1456_v26 = vmul.f32 %v2094_v23, %v1424_v47 }
 0x6f2   : > { %v1464_v10 = vmul.f32 %v1463_v48, %v1456_v26 }
 0x6f3   : > { %v2096_v6 = vpop.eup %2095 }
 0x6f4   : > { %v1457_v5 = vmul.f32 %v2096_v6, %v1425_v14  ;;  %v1472_v55 = vadd.f32 %v1471_v25, %v1464_v10 }
 0x6f6   : > { %v1465_v51 = vmul.f32 %v1463_v48, %v1457_v5 }
 0x6f7   : > { %v2098_v29 = vpop.eup %2097 }
 0x6f8   : > { %v2100_v53 = vpop.eup %2099  ;;  %v1458_v54 = vmul.f32 %v2098_v29, %v1426_v61  ;;  %v1473_v19 = vadd.f32 %v1471_v25, %v1465_v51  ;;  %v1569_v61 = vsub.s32 5, %v2244_v22 }
 0x6f9   : > { %v1459_v33 = vmul.f32 %v2100_v53, %v1427_v13 }
 0x6fa   : > { %v1476_v27 = vpack.c.bf16 %v1473_v19, %v1472_v55  ;;  %v1466_v57 = vmul.f32 %v1463_v48, %v1458_v54  ;;  %v1570_v24 = vrot.slane %v2174_v0, %v1569_v61 }
 0x6fb   : > { %v1467_v58 = vmul.f32 %v1463_v48, %v1459_v33 }
 0x6fc   : > { %1949 = vmatprep.mubr.msk.bf16.mxu0 %vm239_vm1, %v1476_v27  ;;  %v1474_v60 = vadd.f32 %v1471_v25, %v1466_v57 }
 0x6fd   : > { %v1475_v37 = vadd.f32 %v1471_v25, %v1467_v58 }
 0x6ff   : > { %v1477_v63 = vpack.c.bf16 %v1475_v37, %v1474_v60 }
 0x701   : > { %1950 = vmatmul.mubr.msk.bf16.vlgmr.msra.gmra.mxu0 %vm239_vm1, %v1477_v63 }
 0x7c1   : > { %v1951_v11 = vpop.f32.mrf.mxu0 }
 0x7c2   : > { %v1547_v18 = vadd.f32 %v1951_v11, %v1485_v40 }
 0x7c3   : > { %v1538_v59 = vpop.f32.mrf.mxu0 }
 0x7c4   : > { %v1539_v7 = vadd.f32 %v1538_v59, %v1485_v40  ;;  %v1555_v8 = vmax.f32 %v1547_v18, 0.0 }
 0x7c5   : > { %v1952_v47 = vpop.f32.mrf.mxu0 }
 0x7c6   : > { %v1550_v52 = vadd.f32 %v1952_v47, %v1485_v40  ;;  %v1553_v13 = vmax.f32 %v1539_v7, 0.0  ;;  %v1709_v47 = vsub.s32 6, %v2244_v22  ;;  %v1717_v7 = vsub.s32 7, %v2244_v22 }
 0x7c7   : > { %v1541_v62 = vpop.f32.mrf.mxu0 }
 0x7c8   : > { %v1542_v2 = vadd.f32 %v1541_v62, %v1485_v40  ;;  %v1556_v14 = vmax.f32 %v1550_v52, 0.0  ;;  %v1710_v52 = vrot.slane %v2174_v0, %v1709_v47  ;;  %v1718_v62 = vrot.slane %v2174_v0, %v1717_v7 }
 0x7ca   : > { %v1554_v15 = vmax.f32 %v1542_v2, 0.0  ;;  %v1558_v20 = vpack.c.bf16 %v1556_v14, %v1555_v8 }
 0x7cc   : > { %v1557_v17 = vpack.c.bf16 %v1554_v15, %v1553_v13 }
 0x7ce   : > { %1961 = vmatprep.mubr.msk.bf16.mxu1 %vm1595_vm6, %v1557_v17 }
 0x7cf   : > { %1962 = vmatmul.mubr.msk.bf16.vlgmr.msra.gmra.mxu1 %vm1595_vm6, %v1558_v20 }
 0x88f   : > { %v1963_v56 = vpop.f32.mrf.mxu1 }
 0x890   : > { %v1645_v49 = vadd.f32 %v1963_v56, %v1570_v24 }
 0x891   : > { %v1636_v32 = vpop.f32.mrf.mxu1 }
 0x892   : > { %v1637_v12 = vadd.f32 %v1636_v32, %v1570_v24  ;;  %v1653_v36 = vadd.f32 %v1645_v49, %v1474_v60 }
 0x893   : > { %v1964_v28 = vpop.f32.mrf.mxu1 }
 0x894   : > { %v1651_v30 = vadd.f32 %v1637_v12, %v1472_v55  ;;  %v1648_v43 = vadd.f32 %v1964_v28, %v1570_v24  ;;  %v1661_v46 = vsel %vm239_vm1, %v1653_v36, 0.0 }
 0x895   : > { %v1639_v31 = vpop.f32.mrf.mxu1 }
 0x896   : > { %v1640_v4 = vadd.f32 %v1639_v31, %v1570_v24  ;;  %v1655_v16 = vsel %vm239_vm1, %v1651_v30, 0.0  ;;  %v1654_v35 = vadd.f32 %v1648_v43, %v1475_v37 }
 0x897   : > { %1656 = vadd.xlane.f32.xlu0 %v1655_v16 }
 0x898   : > { %v1652_v38 = vadd.f32 %v1640_v4, %v1473_v19  ;;  %v1664_v21 = vsel %vm239_vm1, %v1654_v35, 0.0 }
 0x89a   : > { %v1658_v39 = vsel %vm239_vm1, %v1652_v38, 0.0 }
 0x89b   : > { %1659 = vadd.xlane.f32.xlu1 %v1658_v39  ;;  %1662 = vadd.xlane.f32.xlu0 %v1661_v46 }
 0x89f   : > { %1665 = vadd.xlane.f32.xlu1 %v1664_v21 }
 0x920   : > { %v1657_v42 = vpop.xlane.xlu0 %1656 }
 0x921   : > { %v1667_v44 = vmul.f32 0.03125, %v1657_v42 }
 0x923   : > { %v1671_v9 = vsub.f32 %v1651_v30, %v1667_v44 }
 0x924   : > { %v1660_v45 = vpop.xlane.xlu1 %1659  ;;  %v1663_v23 = vpop.xlane.xlu0 %1662 }
 0x925   : > { %v1668_v26 = vmul.f32 0.03125, %v1660_v45  ;;  %v1669_v48 = vmul.f32 0.03125, %v1663_v23  ;;  %v1675_v50 = vmul.f32 %v1671_v9, %v1671_v9 }
 0x927   : > { %v1672_v6 = vsub.f32 %v1652_v38, %v1668_v26  ;;  %v1673_v5 = vsub.f32 %v1653_v36, %v1669_v48  ;;  %v1679_v10 = vsel %vm239_vm1, %v1675_v50, 0.0 }
 0x928   : > { %v1666_v25 = vpop.xlane.xlu1 %1665  ;;  %1680 = vadd.xlane.f32.xlu0 %v1679_v10 }
 0x929   : > { %v1670_v51 = vmul.f32 0.03125, %v1666_v25  ;;  %v1676_v29 = vmul.f32 %v1672_v6, %v1672_v6  ;;  %v1677_v53 = vmul.f32 %v1673_v5, %v1673_v5 }
 0x92b   : > { %v1674_v54 = vsub.f32 %v1654_v35, %v1670_v51  ;;  %v1682_v55 = vsel %vm239_vm1, %v1676_v29, 0.0  ;;  %v1685_v19 = vsel %vm239_vm1, %v1677_v53, 0.0 }
 0x92c   : > { %1683 = vadd.xlane.f32.xlu1 %v1682_v55  ;;  %1686 = vadd.xlane.f32.xlu0 %v1685_v19 }
 0x92d   : > { %v1678_v33 = vmul.f32 %v1674_v54, %v1674_v54 }
 0x92f   : > { %v1688_v27 = vsel %vm239_vm1, %v1678_v33, 0.0 }
 0x930   : > { %1689 = vadd.xlane.f32.xlu1 %v1688_v27 }
 0x9b1   : > { %v1681_v57 = vpop.xlane.xlu0 %1680 }
 0x9b2   : > { %v1691_v58 = vmul.f32 0.03125, %v1681_v57 }
 0x9b4   : > { %v1695_v60 = vadd.f32 1e-05, %v1691_v58 }
 0x9b5   : > { %v1684_v37 = vpop.xlane.xlu1 %1683  ;;  %v1687_v63 = vpop.xlane.xlu0 %1686 }
 0x9b6   : > { %2101 = vrsqrt.f32 %v1695_v60  ;;  %v1692_v1 = vmul.f32 0.03125, %v1684_v37  ;;  %v1693_v34 = vmul.f32 0.03125, %v1687_v63 }
 0x9b8   : > { %v1696_v41 = vadd.f32 1e-05, %v1692_v1  ;;  %v1697_v3 = vadd.f32 1e-05, %v1693_v34 }
 0x9b9   : > { %v1690_v11 = vpop.xlane.xlu1 %1689 }
 0x9ba   : > { %2103 = vrsqrt.f32 %v1696_v41  ;;  %v1694_v40 = vmul.f32 0.03125, %v1690_v11 }
 0x9bb   : > { %2105 = vrsqrt.f32 %v1697_v3 }
 0x9bc   : > { %v1698_v59 = vadd.f32 1e-05, %v1694_v40 }
 0x9be   : > { %2107 = vrsqrt.f32 %v1698_v59 }
 0x9c3   : > { %v2102_v18 = vpop.eup %2101 }
 0x9c4   : > { %v1703_v2 = vmul.f32 %v2102_v18, %v1671_v9 }
 0x9c6   : > { %v1711_v14 = vmul.f32 %v1710_v52, %v1703_v2 }
 0x9c7   : > { %v2104_v13 = vpop.eup %2103 }
 0x9c8   : > { %v2106_v15 = vpop.eup %2105  ;;  %v1719_v8 = vadd.f32 %v1718_v62, %v1711_v14  ;;  %v1704_v17 = vmul.f32 %v2104_v13, %v1672_v6 }
 0x9c9   : > { %v1705_v20 = vmul.f32 %v2106_v15, %v1673_v5 }
 0x9ca   : > { %1723 = vst.msk [vmem:[%s2615_s5] sm:$0xff] %vm239_vm1, %v1719_v8  ;;  %v1712_v61 = vmul.f32 %v1710_v52, %v1704_v17 }
 0x9cb   : > { %v2108_v24 = vpop.eup %2107  ;;  %v1713_v22 = vmul.f32 %v1710_v52, %v1705_v20 }
 0x9cc   : > { %v1720_v56 = vadd.f32 %v1718_v62, %v1712_v61  ;;  %v1706_v32 = vmul.f32 %v2108_v24, %v1674_v54 }
 0x9cd   : > { %v1721_v49 = vadd.f32 %v1718_v62, %v1713_v22 }
 0x9ce   : > { %1724 = vst.msk [vmem:[%s2615_s5 + $0x8] sm:$0xff] %vm239_vm1, %v1720_v56  ;;  %v1714_v0 = vmul.f32 %v1710_v52, %v1706_v32 }
 0x9cf   : > { %1725 = vst.msk [vmem:[%s2615_s5 + $0x10] sm:$0xff] %vm239_vm1, %v1721_v49 }
 0x9d0   : > { %v1722_v12 = vadd.f32 %v1718_v62, %v1714_v0 }
 0x9d2   : > { %1726 = vst.msk [vmem:[%s2615_s5 + $0x18] sm:$0xff] %vm239_vm1, %v1722_v12 }
 0x9d3 PF: > { %s15_s18 = sadd.s32 1, %s2115_s18  }
 0x9d4   : > { %p12_p4 = scmp.ge.s32.totalorder %s15_s18, 4  }
 0x9d6   :  { %14 = sbr.rel (!%p12_p4) target bundleno = 1 (0x1), region = 67 }

// kernel: detr_forward.5
= control target key start
LH: loop header
LB: loop body
LE: loop exit
PB: predicated region body
PF: predicated region fallthrough
CT: control target
= control target key end

     0   :  { %s3901_s24 = smov 0   ;;  %s4560_s0 = inlined_call_operand.vmem [shape: f32[16,32], index: 0, kind: input, shape index: {}]   ;;  %s4561_s1 = inlined_call_operand.vmem [shape: f32[32,32], index: 1, kind: input, shape index: {}]   ;;  %s4562_s2 = inlined_call_operand.vmem [shape: f32[32,128], index: 2, kind: input, shape index: {}]   ;;  %s4563_s3 = inlined_call_operand.vmem [shape: bf16[32,896], index: 3, kind: input, shape index: {}]   ;;  %s4564_s4 = inlined_call_operand.vmem [shape: bf16[64,32], index: 4, kind: input, shape index: {}]   ;;  %s4565_s5 = inlined_call_operand.vmem [shape: f32[16,128], index: 5, kind: input, shape index: {}]   ;;  %s4566_s6 = inlined_call_operand.vmem [shape: f32[16,128], index: 6, kind: output, shape index: {0}]   ;;  %s4567_s7 = inlined_call_operand.vmem [shape: f32[16,128], index: 7, kind: output, shape index: {1}]  }
   0x1 LB: > { %s3184_s25 = sadd.s32 4294967295, %s3835_s24   ;;  %p3186_p0 = scmp.ge.s32.totalorder %s3835_s24, 1  ;;  %s3835_s24 = sphi %s3901_s24, %s18_s24  }
   0x2   : > { %p220_p1 = scmp.lt.s32.totalorder %s3835_s24, 3 }
   0x4   : > { %p221_p2 = pnand %p3186_p0, %p220_p1 }
   0x5   : > { %p3187_p3 = scmp.ne.s32.totalorder (!%p221_p2), %s3184_s25, 0 }
   0x6   : > { %224 = sbr.rel (%p221_p2) target bundleno = 4926 (0x133e), region = 44 }
   0xb   : > { %v3912_v0 = vld [vmem:[%s4565_s5] sm:$0xff]  ;;  %v3917_v1 = vld [vmem:[%s4565_s5 + $0x8] sm:$0xff]  ;;  %248 = sbr.rel (%p3187_p3) target bundleno = 227 (0xe3), region = 48 }
  0x10   : > { %v3705_v2 = vld [vmem:[%s4563_s3 + $0x44] ss:$28 sps:$4 sm:$0xff]   ;;  %v3706_v3 = vld [vmem:[%s4563_s3 + $0xc] ss:$28 sps:$4 sm:$0xff]   ;;  %vm249_vm0 = vcmask 261120   ;;  %v3837_v6 = vmov 0.0   ;;  %v262_v11 = vlaneseq }
  0x11   : > { %3365 = vmatprep.subr.bf16.mxu0 %v3705_v2  ;;  %v252_v4 = vld [vmem:[%s4561_s1] sm:$0xff]  ;;  %v253_v5 = vld [vmem:[%s4561_s1 + $0x8] sm:$0xff]  ;;  %250 = vst.msk [vmem:[#allocation2] sm:$0xff] %vm249_vm0, %v3837_v6  ;;  %251 = vst.msk [vmem:[#allocation2 + $0x8] sm:$0xff] %vm249_vm0, %v3837_v6  ;;  %vm333_vm1 = vcmask 523264  }
  0x12   : > { %3366 = vmatpush3.bf16.msra.mxu0 %v3705_v2  ;;  %v256_v7 = vpack.c.bf16 %v253_v5, %v252_v4  ;;  %v254_v8 = vld [vmem:[%s4561_s1 + $0x10] sm:$0xff]  ;;  %v255_v9 = vld [vmem:[%s4561_s1 + $0x18] sm:$0xff]  ;;  %v263_v12 = vshrl.u32 %v262_v11, 7 }
  0x13   : > { %3367 = vmatprep.subr.bf16.mxu0 %v3706_v3  ;;  %v257_v10 = vpack.c.bf16 %v255_v9, %v254_v8 }
  0x14   : > { %3369 = vmatprep.mubr.msk.bf16.mxu0 %vm249_vm0, %v256_v7  ;;  %v264_v13 = vsub.s32 5, %v263_v12 }
  0x16   : > { %3368 = vmatpush3.bf16.msra.mxu0 %v3706_v3  ;;  %v265_v14 = vrot.slane %v3912_v0, %v264_v13 }
  0x19   : > { %3370 = vmatmul.mubr.msk.bf16.vlgmr.msra.gmra.mxu0 %vm249_vm0, %v257_v10 }
  0xd9   : > { %v3371_v15 = vpop.f32.mrf.mxu0 }
  0xda   : > { %v327_v16 = vadd.f32 %v3371_v15, %v265_v14 }
  0xdb   : > { %v318_v17 = vpop.f32.mrf.mxu0 }
  0xdc   : > { %336 = vst.msk [vmem:[#allocation3 + $0x10] sm:$0xff] %vm333_vm1, %v327_v16  ;;  %v319_v18 = vadd.f32 %v318_v17, %v265_v14 }
  0xdd   : > { %v3372_v19 = vpop.f32.mrf.mxu0 }
  0xde   : > { %334 = vst.msk [vmem:[#allocation3] sm:$0xff] %vm333_vm1, %v319_v18  ;;  %v330_v20 = vadd.f32 %v3372_v19, %v265_v14 }
  0xdf   : > { %v321_v21 = vpop.f32.mrf.mxu0 }
  0xe0   : > { %337 = vst.msk [vmem:[#allocation3 + $0x18] sm:$0xff] %vm333_vm1, %v330_v20  ;;  %v322_v22 = vadd.f32 %v321_v21, %v265_v14 }
  0xe2   : > { %335 = vst.msk [vmem:[#allocation3 + $0x8] sm:$0xff] %vm333_vm1, %v322_v22 }
  0xe3 PF: > { %v3838_v23 = vmov 0.0   ;;  %v3737_v24 = vld [vmem:[%s4563_s3 + $0x38] ss:$28 sps:$4 sm:$0xff]   ;;  %vm3839_vm2 = vmmov 0   ;;  %v3738_v25 = vld [vmem:[%s4563_s3] ss:$28 sps:$4 sm:$0xff]   ;;  %v349_v33 = vlaneseq }
  0xe4   : > { %3373 = vmatprep.subr.bf16.mxu0 %v3838_v23  ;;  %3377 = vmatprep.mubr.msk.bf16.mxu0 %vm3839_vm2, %v3838_v23  ;;  %v338_v26 = vld [vmem:[#allocation2] sm:$0xff]  ;;  %v339_v27 = vld [vmem:[#allocation2 + $0x8] sm:$0xff]  ;;  %vm365_vm3 = vcmask 261120   ;;  %s3840_s29 = smov 120   ;;  %s3841_s30 = smov 96   ;;  %vm418_vm4 = vcmask 64512  }
  0xe5   : > { %3381 = vmatprep.subr.bf16.mxu1 %v3838_v23  ;;  %3383 = vmatprep.mubr.msk.bf16.mxu1 %vm3839_vm2, %v3838_v23  ;;  %v340_v28 = vld [vmem:[%s4560_s0] sm:$0xff]  ;;  %v341_v29 = vld [vmem:[%s4560_s0 + $0x8] sm:$0xff]  ;;  %v3969_v34 = vshrl.u32 %v349_v33, 7  ;;  %s3842_s8 = smov 80   ;;  %s3843_s9 = smov 88   ;;  %vm482_vm5 = vcmask 1043456  }
  0xe6   : > { %3374 = vmatpush3.bf16.msra.mxu0 %v3737_v24  ;;  %v3959_v30 = vadd.f32 %v340_v28, %v338_v26  ;;  %v3961_v31 = vadd.f32 %v341_v29, %v339_v27  ;;  %s3844_s10 = smov 72   ;;  %s3845_s11 = smov 112   ;;  %vm869_vm6 = vcmask 130048   ;;  %vm871_vm7 = vcmask 195584  }
  0xe7   : > { %3375 = vmatprep.subr.bf16.mxu0 %v3838_v23  ;;  %v351_v35 = vsub.s32 0, %v3969_v34  ;;  %s3846_s12 = smov 104   ;;  %s3847_s13 = smov 56   ;;  %vm2600_vm8 = vcmask 523264  }
  0xe8   : > { %v344_v32 = vpack.c.bf16 %v3961_v31, %v3959_v30  ;;  %s3848_s14 = smov 64   ;;  %s3849_s15 = smov 48  }
  0xe9   : > { %v352_v37 = vrot.slane %v3912_v0, %v351_v35  ;;  %s3850_s16 = smov 40   ;;  %s3851_s19 = smov 8  }
  0xea   : > { %3376 = vmatpush3.bf16.msra.mxu0 %v3738_v25  ;;  %s3852_s22 = smov 16   ;;  %s3853_s23 = smov 24  }
  0xeb   : > { %3387 = vmatprep.subr.bf16.mxu0 %v3838_v23  ;;  %p3244_p4 = scmp.ne.s32.totalorder %s3184_s25, 1 }
  0xec   : > { %s3859_s20 = smov (!%p3244_p4), 16   ;;  %s3860_s21 = smov (!%p3244_p4), 48  }
  0xed   : > { %3378 = vmatmul.mubr.msk.bf16.vlgmr.msra.gmra.mxu0 %vm365_vm3, %v344_v32 }
  0xee   : > { %3389 = vmatprep.mubr.msk.bf16.mxu0 %vm3839_vm2, %v3838_v23 }
 0x1ad   : > { %v403_v36 = vpop.f32.mrf.mxu0 }
 0x1ae   : > { %v404_v40 = vadd.f32 %v403_v36, %v352_v37 }
 0x1af   : > { %v3379_v38 = vpop.f32.mrf.mxu0 }
 0x1b1   : > { %v406_v39 = vpop.f32.mrf.mxu0 }
 0x1b2   : > { %v407_v41 = vadd.f32 %v406_v39, %v352_v37 }
 0x1b3   : > { %v3380_v42 = vpop.f32.mrf.mxu0 }
 0x1b4   : > { %v3975_v43 = vpack.c.bf16 %v407_v41, %v404_v40 }
 0x1b6   : > { %526 = vrot.lane.b32.xlu1 %v3975_v43, %s3840_s29  ;;  %416 = vrot.lane.b32.xlu0 %v3975_v43, %s3841_s30  ;;  %v3990_v44 = vrot.slane %v3975_v43, 4 }
 0x1ba   : > { %638 = vrot.lane.b32.xlu1 %v3975_v43, %s3842_s8  ;;  %528 = vrot.lane.b32.xlu0 %v3975_v43, %s3843_s9 }
 0x1be   : > { %748 = vrot.lane.b32.xlu1 %v3975_v43, %s3844_s10  ;;  %636 = vrot.lane.b32.xlu0 %v3975_v43, %s3845_s11 }
 0x1c2   : > { %746 = vrot.lane.b32.xlu0 %v3975_v43, %s3846_s12  ;;  %874 = vrot.lane.b32.xlu1 %v3990_v44, %s3841_s30 }
 0x1c6   : > { %984 = vrot.lane.b32.xlu0 %v3990_v44, %s3843_s9  ;;  %982 = vrot.lane.b32.xlu1 %v3990_v44, %s3840_s29 }
 0x1ca   : > { %1094 = vrot.lane.b32.xlu0 %v3990_v44, %s3842_s8  ;;  %1092 = vrot.lane.b32.xlu1 %v3990_v44, %s3845_s11 }
 0x1ce   : > { %1204 = vrot.lane.b32.xlu0 %v3990_v44, %s3844_s10  ;;  %1202 = vrot.lane.b32.xlu1 %v3990_v44, %s3846_s12 }
 0x228   : > { %v417_v45 = vpop.permute.xlu0 %416  ;;  %v527_v48 = vpop.permute.xlu1 %526 }
 0x229   : > { %v423_v46 = vsel %vm418_vm4, %v417_v45, 0 }
 0x22a   : > { %3382 = vmatpush3.bf16.xpose.msra.mxu1 %v423_v46 }
 0x22b   : > { %3393 = vmatprep.subr.bf16.mxu1 %v3838_v23 }
 0x22c   : > { %v529_v47 = vpop.permute.xlu0 %528  ;;  %v639_v50 = vpop.permute.xlu1 %638 }
 0x22d   : > { %v534_v49 = vsel %vm418_vm4, %v529_v47, 0  ;;  %v644_v51 = vsel %vm418_vm4, %v639_v50, 0 }
 0x230   : > { %v749_v52 = vpop.permute.xlu1 %748  ;;  %v637_v53 = vpop.permute.xlu0 %636 }
 0x231   : > { %3384 = vmatmul.mubr.msk.bf16.vlgmr.msra.gmra.mxu1 %vm418_vm4, %v3975_v43  ;;  %v754_v54 = vsel %vm418_vm4, %v749_v52, 0 }
 0x232   : > { %3394 = vmatpush3.bf16.xpose.msra.mxu1 %v534_v49  ;;  %3395 = vmatprep.mubr.msk.bf16.mxu1 %vm3839_vm2, %v3838_v23 }
 0x233   : > { %3405 = vmatprep.subr.bf16.mxu1 %v3838_v23 }
 0x234   : > { %v875_v55 = vpop.permute.xlu1 %874  ;;  %v747_v56 = vpop.permute.xlu0 %746 }
 0x235   : > { %v880_v57 = vsel %vm418_vm4, %v875_v55, 0 }
 0x238   : > { %v985_v58 = vpop.permute.xlu0 %984  ;;  %v983_v61 = vpop.permute.xlu1 %982 }
 0x239   : > { %3396 = vmatmul.mubr.msk.bf16.vlgmr.msra.gmra.mxu1 %vm418_vm4, %v527_v48  ;;  %v990_v59 = vsel %vm418_vm4, %v985_v58, 0 }
 0x23a   : > { %3406 = vmatpush3.bf16.xpose.msra.mxu1 %v644_v51  ;;  %3407 = vmatprep.mubr.msk.bf16.mxu1 %vm3839_vm2, %v3838_v23 }
 0x23b   : > { %3417 = vmatprep.subr.bf16.mxu1 %v3838_v23 }
 0x23c   : > { %v1095_v60 = vpop.permute.xlu0 %1094  ;;  %v1093_v2 = vpop.permute.xlu1 %1092 }
 0x23d   : > { %v1100_v62 = vsel %vm418_vm4, %v1095_v60, 0 }
 0x240   : > { %v1205_v63 = vpop.permute.xlu0 %1204  ;;  %v1203_v4 = vpop.permute.xlu1 %1202 }
 0x241   : > { %3408 = vmatmul.mubr.msk.bf16.vlgmr.msra.gmra.mxu1 %vm418_vm4, %v637_v53  ;;  %v1210_v3 = vsel %vm418_vm4, %v1205_v63, 0 }
 0x242   : > { %3418 = vmatpush3.bf16.xpose.msra.mxu1 %v754_v54  ;;  %3419 = vmatprep.mubr.msk.bf16.mxu1 %vm3839_vm2, %v3838_v23 }
 0x243   : > { %3429 = vmatprep.subr.bf16.mxu1 %v3838_v23 }
 0x249   : > { %3420 = vmatmul.mubr.msk.bf16.vlgmr.msra.gmra.mxu1 %vm418_vm4, %v747_v56 }
 0x24a   : > { %3430 = vmatpush3.bf16.xpose.msra.mxu1 %v880_v57  ;;  %3431 = vmatprep.mubr.msk.bf16.mxu1 %vm3839_vm2, %v3838_v23 }
 0x24b   : > { %3441 = vmatprep.subr.bf16.mxu1 %v3838_v23 }
 0x251   : > { %3432 = vmatmul.mubr.msk.bf16.vlgmr.msra.gmra.mxu1 %vm418_vm4, %v3990_v44 }
 0x252   : > { %3442 = vmatpush3.bf16.xpose.msra.mxu1 %v990_v59  ;;  %3443 = vmatprep.mubr.msk.bf16.mxu1 %vm3839_vm2, %v3838_v23 }
 0x253   : > { %3453 = vmatprep.subr.bf16.mxu1 %v3838_v23 }
 0x259   : > { %3444 = vmatmul.mubr.msk.bf16.vlgmr.msra.gmra.mxu1 %vm418_vm4, %v983_v61 }
 0x25a   : > { %3454 = vmatpush3.bf16.xpose.msra.mxu1 %v1100_v62  ;;  %3455 = vmatprep.mubr.msk.bf16.mxu1 %vm3839_vm2, %v3838_v23 }
 0x25b   : > { %3465 = vmatprep.subr.bf16.mxu1 %v3838_v23 }
 0x261   : > { %3456 = vmatmul.mubr.msk.bf16.vlgmr.msra.gmra.mxu1 %vm418_vm4, %v1093_v2 }
 0x262   : > { %3466 = vmatpush3.bf16.xpose.msra.mxu1 %v1210_v3  ;;  %3467 = vmatprep.mubr.msk.bf16.mxu1 %vm3839_vm2, %v3838_v23 }
 0x263   : > { %3477 = vmatprep.subr.bf16.mxu1 %v3838_v23 }
 0x269   : > { %3468 = vmatmul.mubr.msk.bf16.vlgmr.msra.gmra.mxu1 %vm418_vm4, %v1203_v4 }
 0x26a   : > { %3481 = vmatprep.mubr.msk.bf16.mxu1 %vm3839_vm2, %v3838_v23 }
 0x2f1   : > { %v459_v5 = vpop.f32.mrf.mxu1 }
 0x2f2   : > { %v465_v6 = vsel %vm418_vm4, %v459_v5, -inf }
 0x2f3   : > { %v3385_v7 = vpop.f32.mrf.mxu1  ;;  %466 = vmax.xlane.f32.xlu0 %v465_v6 }
 0x2f5   : > { %v462_v8 = vpop.f32.mrf.mxu1 }
 0x2f7   : > { %v3386_v9 = vpop.f32.mrf.mxu1 }
 0x2f9   : > { %v570_v10 = vpop.f32.mrf.mxu1 }
 0x2fa   : > { %v576_v11 = vsel %vm418_vm4, %v570_v10, -inf }
 0x2fb   : > { %v3397_v12 = vpop.f32.mrf.mxu1  ;;  %577 = vmax.xlane.f32.xlu1 %v576_v11 }
 0x2fd   : > { %v573_v13 = vpop.f32.mrf.mxu1 }
 0x2ff   : > { %v3398_v14 = vpop.f32.mrf.mxu1 }
 0x301   : > { %v680_v15 = vpop.f32.mrf.mxu1 }
 0x302   : > { %v686_v16 = vsel %vm418_vm4, %v680_v15, -inf }
 0x303   : > { %v3409_v17 = vpop.f32.mrf.mxu1  ;;  %687 = vmax.xlane.f32.xlu0 %v686_v16 }
 0x305   : > { %v683_v18 = vpop.f32.mrf.mxu1 }
 0x307   : > { %v3410_v19 = vpop.f32.mrf.mxu1 }
 0x309   : > { %v4053_v20 = vpop.f32.mrf.mxu1 }
 0x30a   : > { %v796_v21 = vsel %vm418_vm4, %v4053_v20, -inf }
 0x30b   : > { %v3421_v22 = vpop.f32.mrf.mxu1  ;;  %797 = vmax.xlane.f32.xlu0 %v796_v21 }
 0x30d   : > { %v793_v24 = vpop.f32.mrf.mxu1 }
 0x30f   : > { %v3422_v25 = vpop.f32.mrf.mxu1 }
 0x311   : > { %v4057_v26 = vpop.f32.mrf.mxu1 }
 0x312   : > { %v922_v27 = vsel %vm418_vm4, %v4057_v26, -inf }
 0x313   : > { %923 = vmax.xlane.f32.xlu1 %v922_v27  ;;  %v3433_v28 = vpop.f32.mrf.mxu1 }
 0x315   : > { %v919_v29 = vpop.f32.mrf.mxu1 }
 0x317   : > { %v3434_v32 = vpop.f32.mrf.mxu1 }
 0x319   : > { %v4061_v33 = vpop.f32.mrf.mxu1 }
 0x31a   : > { %v1032_v36 = vsel %vm418_vm4, %v4061_v33, -inf }
 0x31b   : > { %1033 = vmax.xlane.f32.xlu0 %v1032_v36  ;;  %v3445_v37 = vpop.f32.mrf.mxu1 }
 0x31d   : > { %v1029_v38 = vpop.f32.mrf.mxu1 }
 0x31f   : > { %v3446_v39 = vpop.f32.mrf.mxu1 }
 0x321   : > { %v1136_v40 = vpop.f32.mrf.mxu1 }
 0x322   : > { %v1142_v41 = vsel %vm418_vm4, %v1136_v40, -inf }
 0x323   : > { %1143 = vmax.xlane.f32.xlu1 %v1142_v41  ;;  %v3457_v42 = vpop.f32.mrf.mxu1 }
 0x325   : > { %v1139_v45 = vpop.f32.mrf.mxu1 }
 0x327   : > { %v3458_v46 = vpop.f32.mrf.mxu1 }
 0x329   : > { %v4066_v47 = vpop.f32.mrf.mxu1 }
 0x32a   : > { %v1252_v51 = vsel %vm418_vm4, %v4066_v47, -inf }
 0x32b   : > { %v3469_v48 = vpop.f32.mrf.mxu1 }
 0x32d   : > { %v1249_v49 = vpop.f32.mrf.mxu1 }
 0x32f   : > { %v3470_v50 = vpop.f32.mrf.mxu1 }
 0x331   : > { %588 = vrot.lane.b32.xlu0 %v3975_v43, %s3847_s13 }
 0x334   : > { %477 = vrot.lane.b32.xlu1 %v3975_v43, %s3848_s14 }
 0x350   : > { %1253 = vmax.xlane.f32.xlu0 %v1252_v51 }
 0x37c   : > { %v467_v52 = vpop.xlane.xlu0 %466 }
 0x37d   : > { %v468_v53 = vsub.f32 %v459_v5, %v467_v52 }
 0x37f   : > { %v469_v54 = vmul.f32 1.442695, %v468_v53 }
 0x381   : > { %3751 = vpow2.f32 %v469_v54 }
 0x384   : > { %v578_v55 = vpop.xlane.xlu1 %577 }
 0x385   : > { %v579_v56 = vsub.f32 %v570_v10, %v578_v55 }
 0x387   : > { %v580_v57 = vmul.f32 1.442695, %v579_v56 }
 0x389   : > { %3753 = vpow2.f32 %v580_v57 }
 0x38c   : > { %v688_v58 = vpop.xlane.xlu0 %687 }
 0x38d   : > { %v689_v59 = vsub.f32 %v680_v15, %v688_v58 }
 0x38e   : > { %v4074_v60 = vpop.eup %3751 }
 0x38f   : > { %v690_v61 = vmul.f32 1.442695, %v689_v59  ;;  %v471_v62 = vsel %vm418_vm4, %v4074_v60, 0.0 }
 0x390   : > { %472 = vadd.xlane.f32.xlu1 %v471_v62 }
 0x391   : > { %3755 = vpow2.f32 %v690_v61 }
 0x394   : > { %v798_v8 = vpop.xlane.xlu0 %797 }
 0x395   : > { %v799_v10 = vsub.f32 %v4053_v20, %v798_v8 }
 0x396   : > { %v4078_v63 = vpop.eup %3753 }
 0x397   : > { %v582_v2 = vsel %vm418_vm4, %v4078_v63, 0.0  ;;  %v800_v11 = vmul.f32 1.442695, %v799_v10 }
 0x398   : > { %583 = vadd.xlane.f32.xlu0 %v582_v2 }
 0x399   : > { %3757 = vpow2.f32 %v800_v11 }
 0x39c   : > { %v924_v5 = vpop.xlane.xlu1 %923 }
 0x39d   : > { %v925_v12 = vsub.f32 %v4057_v26, %v924_v5 }
 0x39e   : > { %v4082_v3 = vpop.eup %3755 }
 0x39f   : > { %v692_v4 = vsel %vm418_vm4, %v4082_v3, 0.0  ;;  %v926_v15 = vmul.f32 1.442695, %v925_v12 }
 0x3a0   : > { %693 = vadd.xlane.f32.xlu1 %v692_v4 }
 0x3a1   : > { %3759 = vpow2.f32 %v926_v15 }
 0x3a4   : > { %v1034_v13 = vpop.xlane.xlu0 %1033 }
 0x3a5   : > { %v1035_v14 = vsub.f32 %v4061_v33, %v1034_v13 }
 0x3a7   : > { %v1036_v17 = vmul.f32 1.442695, %v1035_v14 }
 0x3a8   : > { %v589_v27 = vpop.permute.xlu0 %588 }
 0x3a9   : > { %3761 = vpow2.f32 %v1036_v17  ;;  %v594_v45 = vsel %vm482_vm5, %v589_v27, 0 }
 0x3ac   : > { %v1144_v6 = vpop.xlane.xlu1 %1143 }
 0x3ad   : > { %v1145_v16 = vsub.f32 %v1136_v40, %v1144_v6 }
 0x3ae   : > { %698 = vrot.lane.b32.xlu0 %v3975_v43, %s3849_s15 }
 0x3af   : > { %v1146_v18 = vmul.f32 1.442695, %v1145_v16 }
 0x3b0   : > { %v478_v7 = vpop.permute.xlu1 %477 }
 0x3b1   : > { %v484_v9 = vsel %vm482_vm5, %v478_v7, 0  ;;  %808 = vrot.lane.b32.xlu1 %v3975_v43, %s3850_s16  ;;  %3763 = vpow2.f32 %v1146_v18  ;;  %v3758_v43 = vpop.eup %3757 }
 0x3b2   : > { %3388 = vmatpush3.bf16.msra.mxu0 %v484_v9  ;;  %v802_v19 = vsel %vm418_vm4, %v3758_v43, 0.0  ;;  %v4096_v21 = vpop.eup %3759 }
 0x3b3   : > { %3399 = vmatprep.subr.bf16.mxu0 %v3838_v23  ;;  %v928_v22 = vsel %vm418_vm4, %v4096_v21, 0.0 }
 0x3b6   : > { %v4098_v20 = vpop.eup %3761 }
 0x3b7   : > { %v1038_v25 = vsel %vm418_vm4, %v4098_v20, 0.0 }
 0x3be   : > { %v4102_v24 = vpop.eup %3763 }
 0x3bf   : > { %v1148_v26 = vsel %vm418_vm4, %v4102_v24, 0.0 }
 0x3cd   : > { %803 = vadd.xlane.f32.xlu0 %v802_v19 }
 0x3d1   : > { %929 = vadd.xlane.f32.xlu0 %v928_v22 }
 0x3d5   : > { %1039 = vadd.xlane.f32.xlu1 %v1038_v25  ;;  %1149 = vadd.xlane.f32.xlu0 %v1148_v26 }
 0x3d9   : > { %v1254_v28 = vpop.xlane.xlu0 %1253 }
 0x3da   : > { %v1255_v29 = vsub.f32 %v4066_v47, %v1254_v28 }
 0x3dc   : > { %v1256_v32 = vmul.f32 1.442695, %v1255_v29 }
 0x3de   : > { %3765 = vpow2.f32 %v1256_v32 }
 0x3e6   : > { %1044 = vrot.lane.b32.xlu1 %v3990_v44, %s3847_s13 }
 0x3ea   : > { %1154 = vrot.lane.b32.xlu1 %v3990_v44, %s3849_s15  ;;  %s3858_s15 = smov (!%p3244_p4), 64  }
 0x3eb   : > { %v4113_v33 = vpop.eup %3765 }
 0x3ec   : > { %v1258_v36 = vsel %vm418_vm4, %v4113_v33, 0.0 }
 0x3ed   : > { %1259 = vadd.xlane.f32.xlu0 %v1258_v36 }
 0x3ee   : > { %1264 = vrot.lane.b32.xlu1 %v3990_v44, %s3850_s16 }
 0x403   : > { %934 = vrot.lane.b32.xlu0 %v3990_v44, %s3848_s14 }
 0x419   : > { %v473_v37 = vpop.xlane.xlu1 %472 }
 0x41a   : > { %3767 = vrcp.f32 %v473_v37 }
 0x421   : > { %v584_v38 = vpop.xlane.xlu0 %583 }
 0x422   : > { %3769 = vrcp.f32 %v584_v38 }
 0x425   : > { %v699_v47 = vpop.permute.xlu0 %698 }
 0x426   : > { %v704_v49 = vsel %vm482_vm5, %v699_v47, 0  ;;  %v3739_v47 = vld [vmem:[%s4563_s3 + $0x3c] ss:$28 sps:$4 sm:$0xff]  }
 0x427   : > { %v3768_v39 = vpop.eup %3767  ;;  %3478 = vmatpush3.bf16.msra.mxu1 %v3739_v47 }
 0x428   : > { %v475_v40 = vmul.f32 %v3768_v39, %v4074_v60  ;;  %3479 = vmatprep.subr.bf16.mxu1 %v3838_v23 }
 0x429   : > { %v694_v41 = vpop.xlane.xlu1 %693 }
 0x42a   : > { %3771 = vrcp.f32 %v694_v41  ;;  %v476_v42 = vpack.c.bf16 %v475_v40, %v475_v40 }
 0x42c   : > { %3390 = vmatmul.mubr.msk.bf16.vlgmr.msra.gmra.mxu0 %vm418_vm4, %v476_v42 }
 0x42d   : > { %3400 = vmatpush3.bf16.msra.mxu0 %v594_v45  ;;  %3401 = vmatprep.mubr.msk.bf16.mxu0 %vm3839_vm2, %v3838_v23  ;;  %v809_v52 = vpop.permute.xlu1 %808 }
 0x42e   : > { %3411 = vmatprep.subr.bf16.mxu0 %v3838_v23  ;;  %v814_v54 = vsel %vm482_vm5, %v809_v52, 0  ;;  %v3740_v52 = vld [vmem:[%s4563_s3 + $0x4] ss:$28 sps:$4 sm:$0xff]  }
 0x42f   : > { %v3770_v44 = vpop.eup %3769  ;;  %3480 = vmatpush3.bf16.msra.mxu1 %v3740_v52 }
 0x430   : > { %v586_v46 = vmul.f32 %v3770_v44, %v4078_v63  ;;  %3493 = vmatprep.subr.bf16.mxu1 %v3838_v23 }
 0x432   : > { %v587_v48 = vpack.c.bf16 %v586_v46, %v586_v46 }
 0x434   : > { %3402 = vmatmul.mubr.msk.bf16.vlgmr.msra.gmra.mxu0 %vm418_vm4, %v587_v48 }
 0x435   : > { %3412 = vmatpush3.bf16.msra.mxu0 %v704_v49  ;;  %3413 = vmatprep.mubr.msk.bf16.mxu0 %vm3839_vm2, %v3838_v23 }
 0x436   : > { %3423 = vmatprep.subr.bf16.mxu0 %v3838_v23 }
 0x437   : > { %v3772_v50 = vpop.eup %3771 }
 0x438   : > { %v696_v51 = vmul.f32 %v3772_v50, %v4082_v3 }
 0x43a   : > { %v697_v53 = vpack.c.bf16 %v696_v51, %v696_v51 }
 0x43c   : > { %3414 = vmatmul.mubr.msk.bf16.vlgmr.msra.gmra.mxu0 %vm418_vm4, %v697_v53 }
 0x43d   : > { %3424 = vmatpush3.bf16.msra.mxu0 %v814_v54  ;;  %3425 = vmatprep.mubr.msk.bf16.mxu0 %vm3839_vm2, %v3838_v23 }
 0x43e   : > { %3435 = vmatprep.subr.bf16.mxu0 %v3838_v23 }
 0x456   : > { %v804_v55 = vpop.xlane.xlu0 %803 }
 0x457   : > { %3773 = vrcp.f32 %v804_v55 }
 0x45a   : > { %v930_v58 = vpop.xlane.xlu0 %929 }
 0x45b   : > { %3775 = vrcp.f32 %v930_v58 }
 0x45e   : > { %v1040_v60 = vpop.xlane.xlu1 %1039  ;;  %v1150_v61 = vpop.xlane.xlu0 %1149 }
 0x45f   : > { %3777 = vrcp.f32 %v1040_v60 }
 0x460   : > { %3779 = vrcp.f32 %v1150_v61 }
 0x462   : > { %v1045_v5 = vpop.permute.xlu1 %1044 }
 0x463   : > { %v1050_v8 = vsel %vm482_vm5, %v1045_v5, 0 }
 0x464   : > { %v3774_v56 = vpop.eup %3773 }
 0x465   : > { %v806_v57 = vmul.f32 %v3774_v56, %v3758_v43 }
 0x466   : > { %v1155_v10 = vpop.permute.xlu1 %1154 }
 0x467   : > { %v807_v59 = vpack.c.bf16 %v806_v57, %v806_v57  ;;  %v1160_v13 = vsel %vm482_vm5, %v1155_v10, 0 }
 0x468   : > { %v3776_v62 = vpop.eup %3775 }
 0x469   : > { %3426 = vmatmul.mubr.msk.bf16.vlgmr.msra.gmra.mxu0 %vm418_vm4, %v807_v59  ;;  %v932_v2 = vmul.f32 %v3776_v62, %v4096_v21 }
 0x46a   : > { %3437 = vmatprep.mubr.msk.bf16.mxu0 %vm3839_vm2, %v3838_v23  ;;  %v1265_v15 = vpop.permute.xlu1 %1264 }
 0x46b   : > { %v933_v6 = vpack.c.bf16 %v932_v2, %v932_v2  ;;  %v1270_v18 = vsel %vm482_vm5, %v1265_v15, 0 }
 0x46c   : > { %v3778_v7 = vpop.eup %3777 }
 0x46d   : > { %v1042_v9 = vmul.f32 %v3778_v7, %v4098_v20  ;;  %v3780_v12 = vpop.eup %3779 }
 0x46e   : > { %v1152_v14 = vmul.f32 %v3780_v12, %v4102_v24 }
 0x46f   : > { %v1043_v11 = vpack.c.bf16 %v1042_v9, %v1042_v9 }
 0x470   : > { %v1153_v16 = vpack.c.bf16 %v1152_v14, %v1152_v14 }
 0x476   : > { %v1260_v63 = vpop.xlane.xlu0 %1259 }
 0x477   : > { %3781 = vrcp.f32 %v1260_v63 }
 0x47a   : > { %v935_v3 = vpop.permute.xlu0 %934 }
 0x47b   : > { %v940_v4 = vsel %vm482_vm5, %v935_v3, 0 }
 0x47c   : > { %3436 = vmatpush3.bf16.msra.mxu0 %v940_v4 }
 0x47d   : > { %3447 = vmatprep.subr.bf16.mxu0 %v3838_v23 }
 0x47f   : > { %3438 = vmatmul.mubr.msk.bf16.vlgmr.msra.gmra.mxu0 %vm418_vm4, %v933_v6 }
 0x480   : > { %3448 = vmatpush3.bf16.msra.mxu0 %v1050_v8  ;;  %3449 = vmatprep.mubr.msk.bf16.mxu0 %vm3839_vm2, %v3838_v23 }
 0x481   : > { %3459 = vmatprep.subr.bf16.mxu0 %v3838_v23 }
 0x484   : > { %v3782_v17 = vpop.eup %3781 }
 0x485   : > { %v1262_v43 = vmul.f32 %v3782_v17, %v4113_v33  ;;  %v1330_v17 = vsub.s32 1, %v3969_v34 }
 0x487   : > { %3450 = vmatmul.mubr.msk.bf16.vlgmr.msra.gmra.mxu0 %vm418_vm4, %v1043_v11  ;;  %v1263_v19 = vpack.c.bf16 %v1262_v43, %v1262_v43 }
 0x488   : > { %3460 = vmatpush3.bf16.msra.mxu0 %v1160_v13  ;;  %3461 = vmatprep.mubr.msk.bf16.mxu0 %vm3839_vm2, %v3838_v23 }
 0x489   : > { %3471 = vmatprep.subr.bf16.mxu0 %v3838_v23 }
 0x48f   : > { %3462 = vmatmul.mubr.msk.bf16.vlgmr.msra.gmra.mxu0 %vm418_vm4, %v1153_v16 }
 0x490   : > { %3472 = vmatpush3.bf16.msra.mxu0 %v1270_v18  ;;  %3473 = vmatprep.mubr.msk.bf16.mxu0 %vm3839_vm2, %v3838_v23  ;;  %v1331_v18 = vrot.slane %v3912_v0, %v1330_v17 }
 0x491   : > { %3485 = vmatprep.subr.bf16.mxu0 %v3838_v23 }
 0x497   : > { %3474 = vmatmul.mubr.msk.bf16.vlgmr.msra.gmra.mxu0 %vm418_vm4, %v1263_v19 }
 0x498   : > { %3489 = vmatprep.mubr.msk.bf16.mxu0 %vm3839_vm2, %v3838_v23 }
 0x4ec   : > { %v520_v21 = vpop.f32.mrf.mxu0 }
 0x4ee   : > { %v3391_v20 = vpop.f32.mrf.mxu0 }
 0x4f0   : > { %v523_v22 = vpop.f32.mrf.mxu0 }
 0x4f2   : > { %v3392_v24 = vpop.f32.mrf.mxu0 }
 0x4f4   : > { %v630_v25 = vpop.f32.mrf.mxu0 }
 0x4f6   : > { %v3403_v26 = vpop.f32.mrf.mxu0 }
 0x4f8   : > { %v633_v27 = vpop.f32.mrf.mxu0 }
 0x4fa   : > { %v3404_v28 = vpop.f32.mrf.mxu0 }
 0x4fc   : > { %v740_v29 = vpop.f32.mrf.mxu0 }
 0x4fe   : > { %v3415_v32 = vpop.f32.mrf.mxu0 }
 0x500   : > { %v743_v36 = vpop.f32.mrf.mxu0 }
 0x502   : > { %v3416_v33 = vpop.f32.mrf.mxu0 }
 0x529   : > { %v850_v37 = vpop.f32.mrf.mxu0 }
 0x52b   : > { %v3427_v38 = vpop.f32.mrf.mxu0 }
 0x52d   : > { %v853_v39 = vpop.f32.mrf.mxu0 }
 0x52f   : > { %v3428_v40 = vpop.f32.mrf.mxu0 }
 0x53f   : > { %v976_v41 = vpop.f32.mrf.mxu0 }
 0x541   : > { %v3439_v42 = vpop.f32.mrf.mxu0 }
 0x542   : > { %v3742_v42 = vld [vmem:[%s4563_s3 + $0x8] ss:$28 sps:$4 sm:$0xff]  }
 0x543   : > { %v979_v45 = vpop.f32.mrf.mxu0 }
 0x545   : > { %v3440_v44 = vpop.f32.mrf.mxu0 }
 0x547   : > { %v1086_v46 = vpop.f32.mrf.mxu0 }
 0x548   : > { %v3707_v48 = vpack.i.bf16 %v1086_v46, %v630_v25 }
 0x549   : > { %v3451_v49 = vpop.f32.mrf.mxu0 }
 0x54a   : > { %3708 = vrot.lane.b32.xlu1 %v3707_v48, %s3851_s19 }
 0x54b   : > { %v1089_v50 = vpop.f32.mrf.mxu0 }
 0x54c   : > { %v1419_v50 = vsub.s32 2, %v3969_v34 }
 0x54d   : > { %v3452_v51 = vpop.f32.mrf.mxu0 }
 0x54f   : > { %v1196_v53 = vpop.f32.mrf.mxu0 }
 0x550   : > { %v3712_v54 = vpack.i.bf16 %v1196_v53, %v740_v29  ;;  %v1420_v53 = vrot.slane %v3912_v0, %v1419_v50 }
 0x551   : > { %v3463_v55 = vpop.f32.mrf.mxu0 }
 0x552   : > { %3713 = vrot.lane.b32.xlu1 %v3712_v54, %s3852_s22  ;;  %v1425_v54 = vsub.s32 3, %v3969_v34 }
 0x553   : > { %v1199_v56 = vpop.f32.mrf.mxu0 }
 0x555   : > { %v3464_v57 = vpop.f32.mrf.mxu0 }
 0x557   : > { %v1306_v58 = vpop.f32.mrf.mxu0 }
 0x558   : > { %v3717_v59 = vpack.i.bf16 %v1306_v58, %v850_v37  ;;  %v1426_v58 = vrot.slane %v3912_v0, %v1425_v54 }
 0x559   : > { %v3475_v60 = vpop.f32.mrf.mxu0 }
 0x55a   : > { %3718 = vrot.lane.b32.xlu0 %v3717_v59, %s3853_s23 }
 0x55b   : > { %v1309_v61 = vpop.f32.mrf.mxu0 }
 0x55d   : > { %v3476_v62 = vpop.f32.mrf.mxu0 }
 0x5bc   : > { %v3709_v63 = vpop.permute.xlu1 %3708 }
 0x5bd   : > { %v3711_v3 = vunpack.i.h.bf16 %v3709_v63  ;;  %v3710_v4 = vunpack.i.l.bf16 %v3709_v63  ;;  %v1494_v63 = vld [vmem:[#allocation3] sm:$0xff] }
 0x5bf   : > { %v1324_v8 = vsel %vm418_vm4, %v976_v41, %v3711_v3  ;;  %v868_v9 = vsel %vm418_vm4, %v520_v21, %v3710_v4 }
 0x5c4   : > { %v3714_v2 = vpop.permute.xlu1 %3713 }
 0x5c5   : > { %v3716_v5 = vunpack.i.h.bf16 %v3714_v2  ;;  %v3715_v6 = vunpack.i.l.bf16 %v3714_v2  ;;  %v1495_v2 = vld [vmem:[#allocation3 + $0x8] sm:$0xff] }
 0x5c6   : > { %v4221_v3 = vpack.c.bf16 %v1495_v2, %v1494_v63 }
 0x5c7   : > { %v1325_v12 = vsel %vm869_vm6, %v1324_v8, %v3716_v5  ;;  %v870_v13 = vsel %vm869_vm6, %v868_v9, %v3715_v6  ;;  %v1436_v5 = vsub.s32 4, %v3969_v34 }
 0x5c8   : > { %v1509_v4 = vsel %vm418_vm4, %v4221_v3, 0 }
 0x5cc   : > { %v3719_v7 = vpop.permute.xlu0 %3718 }
 0x5cd   : > { %v3721_v10 = vunpack.i.h.bf16 %v3719_v7  ;;  %v3720_v11 = vunpack.i.l.bf16 %v3719_v7  ;;  %v1437_v7 = vrot.slane %v3912_v0, %v1436_v5 }
 0x5cf   : > { %v1326_v14 = vsel %vm871_vm7, %v1325_v12, %v3721_v10  ;;  %v872_v15 = vsel %vm871_vm7, %v870_v13, %v3720_v11 }
 0x5d0   : > { %v1327_v16 = vpack.c.bf16 %v1326_v14, %v872_v15 }
 0x5d2   : > { %3482 = vmatmul.mubr.msk.bf16.vlgmr.msra.gmra.mxu1 %vm365_vm3, %v1327_v16  ;;  %v1496_v16 = vld [vmem:[#allocation3 + $0x10] sm:$0xff] }
 0x5d3   : > { %3495 = vmatprep.mubr.msk.bf16.mxu1 %vm3839_vm2, %v3838_v23  ;;  %3494 = vmatpush3.bf16.xpose.msra.mxu1 %v1509_v4 }
 0x5d4   : > { %3505 = vmatprep.subr.bf16.mxu1 %v3838_v23 }
 0x692   : > { %v1381_v43 = vpop.f32.mrf.mxu1 }
 0x693   : > { %v1382_v19 = vadd.f32 %v1381_v43, %v1331_v18 }
 0x694   : > { %v3483_v21 = vpop.f32.mrf.mxu1 }
 0x695   : > { %v1388_v20 = vadd.f32 %v1382_v19, %v3959_v30 }
 0x696   : > { %v1384_v22 = vpop.f32.mrf.mxu1 }
 0x697   : > { %v1385_v24 = vadd.f32 %v1384_v22, %v1331_v18  ;;  %v1390_v25 = vsel %vm365_vm3, %v1388_v20, 0.0  ;;  %v1497_v18 = vld [vmem:[#allocation3 + $0x18] sm:$0xff] }
 0x698   : > { %1391 = vadd.xlane.f32.xlu1 %v1390_v25  ;;  %v3484_v26 = vpop.f32.mrf.mxu1  ;;  %v4245_v19 = vpack.c.bf16 %v1497_v18, %v1496_v16 }
 0x699   : > { %v1389_v27 = vadd.f32 %v1385_v24, %v3961_v31  ;;  %v3741_v31 = vld [vmem:[%s4563_s3 + $0x40] ss:$28 sps:$4 sm:$0xff]  }
 0x69a   : > { %3486 = vmatpush3.bf16.msra.mxu0 %v3741_v31 }
 0x69b   : > { %v1393_v28 = vsel %vm365_vm3, %v1389_v27, 0.0  ;;  %3487 = vmatprep.subr.bf16.mxu0 %v3838_v23 }
 0x69c   : > { %1394 = vadd.xlane.f32.xlu0 %v1393_v28 }
 0x69e   : > { %3488 = vmatpush3.bf16.msra.mxu0 %v3742_v42 }
 0x69f   : > { %3499 = vmatprep.subr.bf16.mxu0 %v3838_v23 }
 0x721   : > { %v1392_v29 = vpop.xlane.xlu1 %1391 }
 0x722   : > { %v1397_v32 = vmul.f32 0.03125, %v1392_v29 }
 0x724   : > { %v1399_v36 = vsub.f32 %v1388_v20, %v1397_v32 }
 0x725   : > { %v1395_v33 = vpop.xlane.xlu0 %1394 }
 0x726   : > { %v1398_v37 = vmul.f32 0.03125, %v1395_v33  ;;  %v1401_v38 = vmul.f32 %v1399_v36, %v1399_v36 }
 0x728   : > { %v1400_v39 = vsub.f32 %v1389_v27, %v1398_v37  ;;  %v1403_v30 = vsel %vm365_vm3, %v1401_v38, 0.0  ;;  %v1955_v27 = vsel %vm418_vm4, %v4245_v19, 0 }
 0x729   : > { %1404 = vadd.xlane.f32.xlu0 %v1403_v30 }
 0x72a   : > { %v1402_v40 = vmul.f32 %v1400_v39, %v1400_v39 }
 0x72c   : > { %v1406_v41 = vsel %vm365_vm3, %v1402_v40, 0.0 }
 0x72d   : > { %1407 = vadd.xlane.f32.xlu1 %v1406_v41 }
 0x73f   : > { %1613 = vrot.lane.b32.xlu0 %v4221_v3, %s3840_s29 }
 0x7b2   : > { %v1405_v45 = vpop.xlane.xlu0 %1404 }
 0x7b3   : > { %v1409_v44 = vmul.f32 0.03125, %v1405_v45 }
 0x7b5   : > { %v1411_v46 = vadd.f32 1e-05, %v1409_v44 }
 0x7b6   : > { %v1408_v47 = vpop.xlane.xlu1 %1407  ;;  %v1614_v12 = vpop.permute.xlu0 %1613 }
 0x7b7   : > { %3783 = vrsqrt.f32 %v1411_v46  ;;  %v1410_v48 = vmul.f32 0.03125, %v1408_v47  ;;  %v1619_v15 = vsel %vm418_vm4, %v1614_v12, 0 }
 0x7b9   : > { %v1412_v49 = vadd.f32 1e-05, %v1410_v48 }
 0x7bb   : > { %3785 = vrsqrt.f32 %v1412_v49 }
 0x7c4   : > { %v3784_v51 = vpop.eup %3783 }
 0x7c5   : > { %v1415_v52 = vmul.f32 %v3784_v51, %v1399_v36 }
 0x7c7   : > { %v1421_v57 = vmul.f32 %v1420_v53, %v1415_v52 }
 0x7c8   : > { %v3786_v55 = vpop.eup %3785 }
 0x7c9   : > { %v1416_v56 = vmul.f32 %v3786_v55, %v1400_v39  ;;  %v4212_v60 = vadd.f32 %v1426_v58, %v1421_v57 }
 0x7cb   : > { %v1422_v59 = vmul.f32 %v1420_v53, %v1416_v56 }
 0x7cd   : > { %v4214_v61 = vadd.f32 %v1426_v58, %v1422_v59 }
 0x7cf   : > { %v1429_v62 = vpack.c.bf16 %v4214_v61, %v4212_v60 }
 0x7d1   : > { %3490 = vmatmul.mubr.msk.bf16.vlgmr.msra.gmra.mxu0 %vm365_vm3, %v1429_v62 }
 0x7d2   : > { %3501 = vmatprep.mubr.msk.bf16.mxu0 %vm3839_vm2, %v3838_v23 }
 0x891   : > { %v1487_v6 = vpop.f32.mrf.mxu0 }
 0x892   : > { %v1488_v10 = vadd.f32 %v1487_v6, %v1437_v7 }
 0x893   : > { %v3491_v8 = vpop.f32.mrf.mxu0 }
 0x895   : > { %v1490_v9 = vpop.f32.mrf.mxu0 }
 0x896   : > { %v1491_v11 = vadd.f32 %v1490_v9, %v1437_v7 }
 0x897   : > { %v3492_v13 = vpop.f32.mrf.mxu0 }
 0x898   : > { %v1502_v14 = vpack.c.bf16 %v1491_v11, %v1488_v10 }
 0x89a   : > { %1719 = vrot.lane.b32.xlu0 %v1502_v14, %s3845_s11  ;;  %1611 = vrot.lane.b32.xlu1 %v1502_v14, %s3840_s29  ;;  %v1950_v43 = vrot.slane %v1502_v14, 4 }
 0x89b   : > { %3496 = vmatmul.mubr.msk.bf16.vlgmr.msra.gmra.mxu1 %vm418_vm4, %v1502_v14 }
 0x89c   : > { %3506 = vmatpush3.bf16.xpose.msra.mxu1 %v1619_v15  ;;  %3507 = vmatprep.mubr.msk.bf16.mxu1 %vm3839_vm2, %v3838_v23 }
 0x89d   : > { %3517 = vmatprep.subr.bf16.mxu1 %v3838_v23 }
 0x89e   : > { %1827 = vrot.lane.b32.xlu0 %v1502_v14, %s3846_s12  ;;  %1721 = vrot.lane.b32.xlu1 %v4221_v3, %s3845_s11 }
 0x8a2   : > { %2056 = vrot.lane.b32.xlu0 %v1950_v43, %s3840_s29  ;;  %1829 = vrot.lane.b32.xlu1 %v4221_v3, %s3846_s12 }
 0x8a6   : > { %2164 = vrot.lane.b32.xlu0 %v1950_v43, %s3845_s11  ;;  %2058 = vrot.lane.b32.xlu1 %v4245_v19, %s3840_s29 }
 0x8aa   : > { %2272 = vrot.lane.b32.xlu0 %v1950_v43, %s3846_s12  ;;  %2166 = vrot.lane.b32.xlu1 %v4245_v19, %s3845_s11  ;;  %s3856_s11 = smov (!%p3244_p4), 32  }
 0x8ae   : > { %2274 = vrot.lane.b32.xlu1 %v4245_v19, %s3846_s12 }
 0x90c   : > { %v1612_v21 = vpop.permute.xlu1 %1611  ;;  %v1720_v26 = vpop.permute.xlu0 %1719 }
 0x90d   : > { %3508 = vmatmul.mubr.msk.bf16.vlgmr.msra.gmra.mxu1 %vm418_vm4, %v1612_v21 }
 0x90e   : > { %3519 = vmatprep.mubr.msk.bf16.mxu1 %vm3839_vm2, %v3838_v23 }
 0x910   : > { %v1722_v20 = vpop.permute.xlu1 %1721  ;;  %v1828_v28 = vpop.permute.xlu0 %1827 }
 0x911   : > { %v1727_v22 = vsel %vm418_vm4, %v1722_v20, 0 }
 0x912   : > { %3518 = vmatpush3.bf16.xpose.msra.mxu1 %v1727_v22 }
 0x913   : > { %3529 = vmatprep.subr.bf16.mxu1 %v3838_v23 }
 0x914   : > { %v1830_v24 = vpop.permute.xlu1 %1829  ;;  %v2057_v37 = vpop.permute.xlu0 %2056 }
 0x915   : > { %v1835_v25 = vsel %vm418_vm4, %v1830_v24, 0 }
 0x918   : > { %v2059_v29 = vpop.permute.xlu1 %2058  ;;  %v2165_v30 = vpop.permute.xlu0 %2164 }
 0x919   : > { %3520 = vmatmul.mubr.msk.bf16.vlgmr.msra.gmra.mxu1 %vm418_vm4, %v1720_v26  ;;  %v2064_v32 = vsel %vm418_vm4, %v2059_v29, 0 }
 0x91a   : > { %3530 = vmatpush3.bf16.xpose.msra.mxu1 %v1835_v25  ;;  %3531 = vmatprep.mubr.msk.bf16.mxu1 %vm3839_vm2, %v3838_v23 }
 0x91b   : > { %3541 = vmatprep.subr.bf16.mxu1 %v3838_v23 }
 0x91c   : > { %v2167_v36 = vpop.permute.xlu1 %2166  ;;  %v2273_v40 = vpop.permute.xlu0 %2272 }
 0x91d   : > { %v2172_v33 = vsel %vm418_vm4, %v2167_v36, 0 }
 0x920   : > { %v2275_v38 = vpop.permute.xlu1 %2274 }
 0x921   : > { %3532 = vmatmul.mubr.msk.bf16.vlgmr.msra.gmra.mxu1 %vm418_vm4, %v1828_v28  ;;  %v2280_v39 = vsel %vm418_vm4, %v2275_v38, 0 }
 0x922   : > { %3542 = vmatpush3.bf16.xpose.msra.mxu1 %v1955_v27  ;;  %3543 = vmatprep.mubr.msk.bf16.mxu1 %vm3839_vm2, %v3838_v23 }
 0x923   : > { %3553 = vmatprep.subr.bf16.mxu1 %v3838_v23 }
 0x929   : > { %3544 = vmatmul.mubr.msk.bf16.vlgmr.msra.gmra.mxu1 %vm418_vm4, %v1950_v43 }
 0x92a   : > { %3554 = vmatpush3.bf16.xpose.msra.mxu1 %v2064_v32  ;;  %3555 = vmatprep.mubr.msk.bf16.mxu1 %vm3839_vm2, %v3838_v23 }
 0x92b   : > { %3565 = vmatprep.subr.bf16.mxu1 %v3838_v23 }
 0x931   : > { %3556 = vmatmul.mubr.msk.bf16.vlgmr.msra.gmra.mxu1 %vm418_vm4, %v2057_v37 }
 0x932   : > { %3566 = vmatpush3.bf16.xpose.msra.mxu1 %v2172_v33  ;;  %3567 = vmatprep.mubr.msk.bf16.mxu1 %vm3839_vm2, %v3838_v23 }
 0x933   : > { %3577 = vmatprep.subr.bf16.mxu1 %v3838_v23 }
 0x939   : > { %3568 = vmatmul.mubr.msk.bf16.vlgmr.msra.gmra.mxu1 %vm418_vm4, %v2165_v30 }
 0x93a   : > { %3578 = vmatpush3.bf16.xpose.msra.mxu1 %v2280_v39  ;;  %3579 = vmatprep.mubr.msk.bf16.mxu1 %vm3839_vm2, %v3838_v23 }
 0x93b   : > { %3589 = vmatprep.subr.bf16.mxu1 %v3838_v23 }
 0x941   : > { %3580 = vmatmul.mubr.msk.bf16.vlgmr.msra.gmra.mxu1 %vm418_vm4, %v2273_v40 }
 0x942   : > { %3593 = vmatprep.mubr.msk.bf16.mxu1 %vm3839_vm2, %v3838_v23 }
 0x95b   : > { %v1545_v41 = vpop.f32.mrf.mxu1 }
 0x95c   : > { %v1551_v31 = vsel %vm869_vm6, %v1545_v41, -inf }
 0x95d   : > { %1552 = vmax.xlane.f32.xlu1 %v1551_v31  ;;  %v3497_v42 = vpop.f32.mrf.mxu1 }
 0x95f   : > { %v1548_v45 = vpop.f32.mrf.mxu1 }
 0x961   : > { %v3498_v44 = vpop.f32.mrf.mxu1 }
 0x9cd   : > { %v1655_v46 = vpop.f32.mrf.mxu1 }
 0x9ce   : > { %v1661_v47 = vsel %vm869_vm6, %v1655_v46, -inf }
 0x9cf   : > { %1662 = vmax.xlane.f32.xlu0 %v1661_v47  ;;  %v3509_v48 = vpop.f32.mrf.mxu1 }
 0x9d1   : > { %v1658_v49 = vpop.f32.mrf.mxu1 }
 0x9d3   : > { %v3510_v51 = vpop.f32.mrf.mxu1 }
 0x9d9   : > { %v1763_v52 = vpop.f32.mrf.mxu1 }
 0x9da   : > { %v1769_v53 = vsel %vm869_vm6, %v1763_v52, -inf }
 0x9db   : > { %1770 = vmax.xlane.f32.xlu0 %v1769_v53  ;;  %v3521_v55 = vpop.f32.mrf.mxu1 }
 0x9dd   : > { %v1766_v56 = vpop.f32.mrf.mxu1 }
 0x9df   : > { %v3522_v57 = vpop.f32.mrf.mxu1 }
 0x9e1   : > { %v1871_v58 = vpop.f32.mrf.mxu1 }
 0x9e2   : > { %v1877_v59 = vsel %vm869_vm6, %v1871_v58, -inf }
 0x9e3   : > { %1878 = vmax.xlane.f32.xlu1 %v1877_v59  ;;  %v3533_v62 = vpop.f32.mrf.mxu1 }
 0x9e5   : > { %v1874_v63 = vpop.f32.mrf.mxu1 }
 0x9e6   : > { %v1553_v26 = vpop.xlane.xlu1 %1552 }
 0x9e7   : > { %v3534_v2 = vpop.f32.mrf.mxu1  ;;  %v1554_v27 = vsub.f32 %v1545_v41, %v1553_v26 }
 0x9e9   : > { %v1991_v4 = vpop.f32.mrf.mxu1  ;;  %v1555_v28 = vmul.f32 1.442695, %v1554_v27 }
 0x9ea   : > { %v1997_v6 = vsel %vm869_vm6, %v1991_v4, -inf }
 0x9eb   : > { %1998 = vmax.xlane.f32.xlu0 %v1997_v6  ;;  %v3545_v7 = vpop.f32.mrf.mxu1  ;;  %3787 = vpow2.f32 %v1555_v28 }
 0x9ed   : > { %v1994_v8 = vpop.f32.mrf.mxu1 }
 0x9ef   : > { %v3546_v9 = vpop.f32.mrf.mxu1 }
 0x9f1   : > { %v4294_v10 = vpop.f32.mrf.mxu1 }
 0x9f2   : > { %v2106_v11 = vsel %vm869_vm6, %v4294_v10, -inf }
 0x9f3   : > { %2107 = vmax.xlane.f32.xlu1 %v2106_v11  ;;  %v3557_v12 = vpop.f32.mrf.mxu1 }
 0x9f5   : > { %v2103_v13 = vpop.f32.mrf.mxu1 }
 0x9f7   : > { %v3558_v14 = vpop.f32.mrf.mxu1 }
 0x9f8   : > { %v4307_v32 = vpop.eup %3787 }
 0x9f9   : > { %v2208_v15 = vpop.f32.mrf.mxu1  ;;  %v1557_v36 = vsel %vm869_vm6, %v4307_v32, 0.0 }
 0x9fa   : > { %v2214_v16 = vsel %vm869_vm6, %v2208_v15, -inf }
 0x9fb   : > { %2215 = vmax.xlane.f32.xlu0 %v2214_v16  ;;  %v3569_v18 = vpop.f32.mrf.mxu1 }
 0x9fd   : > { %v2211_v43 = vpop.f32.mrf.mxu1 }
 0x9ff   : > { %v3570_v21 = vpop.f32.mrf.mxu1 }
 0xa01   : > { %v4299_v20 = vpop.f32.mrf.mxu1 }
 0xa02   : > { %v2322_v29 = vsel %vm869_vm6, %v4299_v20, -inf }
 0xa03   : > { %v3581_v22 = vpop.f32.mrf.mxu1 }
 0xa04   : > { %1673 = vrot.lane.b32.xlu1 %v4221_v3, %s3843_s9 }
 0xa05   : > { %v2319_v24 = vpop.f32.mrf.mxu1 }
 0xa07   : > { %v3582_v25 = vpop.f32.mrf.mxu1 }
 0xa11   : > { %1564 = vrot.lane.b32.xlu0 %v4221_v3, %s3841_s30 }
 0xa28   : > { %2323 = vmax.xlane.f32.xlu1 %v2322_v29 }
 0xa30   : > { %1558 = vadd.xlane.f32.xlu0 %v1557_v36 }
 0xa39   : > { %1781 = vrot.lane.b32.xlu1 %v4221_v3, %s3842_s8 }
 0xa58   : > { %v1663_v33 = vpop.xlane.xlu0 %1662 }
 0xa59   : > { %v1664_v37 = vsub.f32 %v1655_v46, %v1663_v33 }
 0xa5b   : > { %v1665_v38 = vmul.f32 1.442695, %v1664_v37 }
 0xa5d   : > { %3789 = vpow2.f32 %v1665_v38 }
 0xa64   : > { %v1771_v39 = vpop.xlane.xlu0 %1770 }
 0xa65   : > { %v1772_v30 = vsub.f32 %v1763_v52, %v1771_v39 }
 0xa67   : > { %v1773_v40 = vmul.f32 1.442695, %v1772_v30 }
 0xa69   : > { %3791 = vpow2.f32 %v1773_v40 }
 0xa6a   : > { %v4313_v41 = vpop.eup %3789 }
 0xa6b   : > { %v1667_v31 = vsel %vm869_vm6, %v4313_v41, 0.0 }
 0xa6c   : > { %v1879_v42 = vpop.xlane.xlu1 %1878  ;;  %1668 = vadd.xlane.f32.xlu1 %v1667_v31 }
 0xa6d   : > { %v1880_v45 = vsub.f32 %v1871_v58, %v1879_v42 }
 0xa6f   : > { %v1881_v44 = vmul.f32 1.442695, %v1880_v45 }
 0xa71   : > { %3793 = vpow2.f32 %v1881_v44 }
 0xa74   : > { %v1999_v47 = vpop.xlane.xlu0 %1998 }
 0xa75   : > { %v2000_v48 = vsub.f32 %v1991_v4, %v1999_v47 }
 0xa76   : > { %v4317_v49 = vpop.eup %3791 }
 0xa77   : > { %v2001_v46 = vmul.f32 1.442695, %v2000_v48  ;;  %v1775_v51 = vsel %vm869_vm6, %v4317_v49, 0.0 }
 0xa78   : > { %1776 = vadd.xlane.f32.xlu0 %v1775_v51 }
 0xa79   : > { %3795 = vpow2.f32 %v2001_v46 }
 0xa7c   : > { %v2108_v63 = vpop.xlane.xlu1 %2107 }
 0xa7d   : > { %v2109_v2 = vsub.f32 %v4294_v10, %v2108_v63 }
 0xa7e   : > { %v4321_v52 = vpop.eup %3793 }
 0xa7f   : > { %v1883_v53 = vsel %vm869_vm6, %v4321_v52, 0.0  ;;  %v2110_v7 = vmul.f32 1.442695, %v2109_v2 }
 0xa80   : > { %1884 = vadd.xlane.f32.xlu1 %v1883_v53  ;;  %v1674_v11 = vpop.permute.xlu1 %1673 }
 0xa84   : > { %v2216_v55 = vpop.xlane.xlu0 %2215 }
 0xa85   : > { %v2217_v56 = vsub.f32 %v2208_v15, %v2216_v55 }
 0xa86   : > { %v4325_v57 = vpop.eup %3795 }
 0xa87   : > { %v2218_v58 = vmul.f32 1.442695, %v2217_v56  ;;  %v2003_v59 = vsel %vm869_vm6, %v4325_v57, 0.0 }
 0xa88   : > { %2004 = vadd.xlane.f32.xlu1 %v2003_v59  ;;  %v1565_v62 = vpop.permute.xlu0 %1564 }
 0xa89   : > { %3797 = vpow2.f32 %v2218_v58  ;;  %3500 = vmatpush3.bf16.msra.mxu0 %v1565_v62 }
 0xa8a   : > { %3511 = vmatprep.subr.bf16.mxu0 %v3838_v23  ;;  %3799 = vpow2.f32 %v2110_v7 }
 0xa8e   : > { %1889 = vrot.lane.b32.xlu0 %v4221_v3, %s3844_s10 }
 0xa96   : > { %v4333_v4 = vpop.eup %3797 }
 0xa97   : > { %v2220_v6 = vsel %vm869_vm6, %v4333_v4, 0.0  ;;  %v4337_v8 = vpop.eup %3799 }
 0xa98   : > { %2221 = vadd.xlane.f32.xlu1 %v2220_v6  ;;  %v2112_v9 = vsel %vm869_vm6, %v4337_v8, 0.0 }
 0xaad   : > { %2113 = vadd.xlane.f32.xlu0 %v2112_v9 }
 0xab1   : > { %v2324_v12 = vpop.xlane.xlu1 %2323 }
 0xab2   : > { %v2325_v3 = vsub.f32 %v4299_v20, %v2324_v12 }
 0xab4   : > { %v2326_v13 = vmul.f32 1.442695, %v2325_v3 }
 0xab5   : > { %v1782_v21 = vpop.permute.xlu1 %1781 }
 0xab6   : > { %3801 = vpow2.f32 %v2326_v13 }
 0xab9   : > { %v1559_v10 = vpop.xlane.xlu0 %1558 }
 0xaba   : > { %3803 = vrcp.f32 %v1559_v10 }
 0xac3   : > { %v4342_v14 = vpop.eup %3801  ;;  %2118 = vrot.lane.b32.xlu0 %v4245_v19, %s3843_s9 }
 0xac4   : > { %v2328_v15 = vsel %vm869_vm6, %v4342_v14, 0.0 }
 0xac5   : > { %2329 = vadd.xlane.f32.xlu1 %v2328_v15 }
 0xac7   : > { %v3804_v16 = vpop.eup %3803  ;;  %2226 = vrot.lane.b32.xlu0 %v4245_v19, %s3842_s8 }
 0xac8   : > { %v1561_v18 = vmul.f32 %v3804_v16, %v4307_v32 }
 0xaca   : > { %v1562_v43 = vpack.c.bf16 %v1561_v18, %v1561_v18 }
 0xacb   : > { %2334 = vrot.lane.b32.xlu0 %v4245_v19, %s3844_s10  ;;  %s3855_s10 = smov (!%p3244_p4), 96  }
 0xacc   : > { %3502 = vmatmul.mubr.msk.bf16.vlgmr.msra.gmra.mxu0 %vm869_vm6, %v1562_v43 }
 0xacd   : > { %3512 = vmatpush3.bf16.msra.mxu0 %v1674_v11  ;;  %3513 = vmatprep.mubr.msk.bf16.mxu0 %vm3839_vm2, %v3838_v23 }
 0xace   : > { %3523 = vmatprep.subr.bf16.mxu0 %v3838_v23 }
 0xad6   : > { %2010 = vrot.lane.b32.xlu1 %v4245_v19, %s3841_s30 }
 0xaf5   : > { %v1669_v20 = vpop.xlane.xlu1 %1668 }
 0xaf6   : > { %3805 = vrcp.f32 %v1669_v20 }
 0xb01   : > { %v1777_v22 = vpop.xlane.xlu0 %1776 }
 0xb02   : > { %3807 = vrcp.f32 %v1777_v22  ;;  %v3743_v22 = vld [vmem:[%s4563_s3 + $0x48] ss:$28 sps:$4 sm:$0xff]  }
 0xb03   : > { %v3806_v24 = vpop.eup %3805  ;;  %3590 = vmatpush3.bf16.msra.mxu1 %v3743_v22  ;;  %v3746_v22 = vld [vmem:[%s4563_s3 + $0x14] ss:$28 sps:$4 sm:$0xff]  }
 0xb04   : > { %v1671_v25 = vmul.f32 %v3806_v24, %v4313_v41  ;;  %3591 = vmatprep.subr.bf16.mxu1 %v3838_v23 }
 0xb05   : > { %v1890_v32 = vpop.permute.xlu0 %1889 }
 0xb06   : > { %v1672_v26 = vpack.c.bf16 %v1671_v25, %v1671_v25 }
 0xb08   : > { %3514 = vmatmul.mubr.msk.bf16.vlgmr.msra.gmra.mxu0 %vm869_vm6, %v1672_v26 }
 0xb09   : > { %3524 = vmatpush3.bf16.msra.mxu0 %v1782_v21  ;;  %v1885_v27 = vpop.xlane.xlu1 %1884  ;;  %3525 = vmatprep.mubr.msk.bf16.mxu0 %vm3839_vm2, %v3838_v23 }
 0xb0a   : > { %3809 = vrcp.f32 %v1885_v27  ;;  %3535 = vmatprep.subr.bf16.mxu0 %v3838_v23 }
 0xb0f   : > { %v3808_v19 = vpop.eup %3807 }
 0xb10   : > { %v1779_v28 = vmul.f32 %v3808_v19, %v4317_v49  ;;  %v3744_v19 = vld [vmem:[%s4563_s3 + $0x10] ss:$28 sps:$4 sm:$0xff]  }
 0xb11   : > { %v2005_v38 = vpop.xlane.xlu1 %2004  ;;  %3592 = vmatpush3.bf16.msra.mxu1 %v3744_v19 }
 0xb12   : > { %v1780_v29 = vpack.c.bf16 %v1779_v28, %v1779_v28  ;;  %3811 = vrcp.f32 %v2005_v38  ;;  %3605 = vmatprep.subr.bf16.mxu1 %v3838_v23 }
 0xb14   : > { %3526 = vmatmul.mubr.msk.bf16.vlgmr.msra.gmra.mxu0 %vm869_vm6, %v1780_v29 }
 0xb15   : > { %3536 = vmatpush3.bf16.msra.mxu0 %v1890_v32  ;;  %3537 = vmatprep.mubr.msk.bf16.mxu0 %vm3839_vm2, %v3838_v23 }
 0xb16   : > { %3547 = vmatprep.subr.bf16.mxu0 %v3838_v23 }
 0xb17   : > { %v3810_v36 = vpop.eup %3809 }
 0xb18   : > { %v1887_v33 = vmul.f32 %v3810_v36, %v4321_v52 }
 0xb1a   : > { %v1888_v37 = vpack.c.bf16 %v1887_v33, %v1887_v33 }
 0xb1c   : > { %3538 = vmatmul.mubr.msk.bf16.vlgmr.msra.gmra.mxu0 %vm869_vm6, %v1888_v37 }
 0xb1d   : > { %3549 = vmatprep.mubr.msk.bf16.mxu0 %vm3839_vm2, %v3838_v23 }
 0xb1f   : > { %v3812_v40 = vpop.eup %3811 }
 0xb20   : > { %v2007_v31 = vmul.f32 %v3812_v40, %v4325_v57 }
 0xb21   : > { %v2222_v30 = vpop.xlane.xlu1 %2221 }
 0xb22   : > { %v2008_v45 = vpack.c.bf16 %v2007_v31, %v2007_v31 }
 0xb36   : > { %v2114_v39 = vpop.xlane.xlu0 %2113 }
 0xb37   : > { %3813 = vrcp.f32 %v2114_v39 }
 0xb38   : > { %3815 = vrcp.f32 %v2222_v30 }
 0xb3a   : > { %v2119_v44 = vpop.permute.xlu0 %2118 }
 0xb3e   : > { %v2227_v46 = vpop.permute.xlu0 %2226 }
 0xb42   : > { %v2335_v55 = vpop.permute.xlu0 %2334 }
 0xb44   : > { %v3814_v47 = vpop.eup %3813 }
 0xb45   : > { %v2116_v48 = vmul.f32 %v3814_v47, %v4337_v8  ;;  %v3816_v51 = vpop.eup %3815 }
 0xb46   : > { %v2224_v52 = vmul.f32 %v3816_v51, %v4333_v4 }
 0xb47   : > { %v2117_v49 = vpack.c.bf16 %v2116_v48, %v2116_v48 }
 0xb48   : > { %v2225_v53 = vpack.c.bf16 %v2224_v52, %v2224_v52 }
 0xb4e   : > { %v2330_v41 = vpop.xlane.xlu1 %2329 }
 0xb4f   : > { %3817 = vrcp.f32 %v2330_v41 }
 0xb52   : > { %v2011_v42 = vpop.permute.xlu1 %2010 }
 0xb53   : > { %3548 = vmatpush3.bf16.msra.mxu0 %v2011_v42 }
 0xb54   : > { %3559 = vmatprep.subr.bf16.mxu0 %v3838_v23 }
 0xb56   : > { %3550 = vmatmul.mubr.msk.bf16.vlgmr.msra.gmra.mxu0 %vm869_vm6, %v2008_v45 }
 0xb57   : > { %3560 = vmatpush3.bf16.msra.mxu0 %v2119_v44  ;;  %3561 = vmatprep.mubr.msk.bf16.mxu0 %vm3839_vm2, %v3838_v23 }
 0xb58   : > { %3571 = vmatprep.subr.bf16.mxu0 %v3838_v23 }
 0xb5c   : > { %v3818_v56 = vpop.eup %3817 }
 0xb5d   : > { %v2332_v57 = vmul.f32 %v3818_v56, %v4342_v14 }
 0xb5e   : > { %3562 = vmatmul.mubr.msk.bf16.vlgmr.msra.gmra.mxu0 %vm869_vm6, %v2117_v49 }
 0xb5f   : > { %3572 = vmatpush3.bf16.msra.mxu0 %v2227_v46  ;;  %3573 = vmatprep.mubr.msk.bf16.mxu0 %vm3839_vm2, %v3838_v23  ;;  %v2333_v58 = vpack.c.bf16 %v2332_v57, %v2332_v57 }
 0xb60   : > { %3583 = vmatprep.subr.bf16.mxu0 %v3838_v23 }
 0xb66   : > { %3574 = vmatmul.mubr.msk.bf16.vlgmr.msra.gmra.mxu0 %vm869_vm6, %v2225_v53 }
 0xb67   : > { %3584 = vmatpush3.bf16.msra.mxu0 %v2335_v55  ;;  %3585 = vmatprep.mubr.msk.bf16.mxu0 %vm3839_vm2, %v3838_v23 }
 0xb68   : > { %3597 = vmatprep.subr.bf16.mxu0 %v3838_v23 }
 0xb6e   : > { %3586 = vmatmul.mubr.msk.bf16.vlgmr.msra.gmra.mxu0 %vm869_vm6, %v2333_v58 }
 0xb6f   : > { %3601 = vmatprep.mubr.msk.bf16.mxu0 %vm3839_vm2, %v3838_v23 }
 0xb8c   : > { %v1604_v59 = vpop.f32.mrf.mxu0 }
 0xb8e   : > { %v3503_v62 = vpop.f32.mrf.mxu0 }
 0xb8f   : > { %v2398_v62 = vsub.s32 6, %v3969_v34 }
 0xb90   : > { %v1607_v63 = vpop.f32.mrf.mxu0 }
 0xb92   : > { %v3504_v2 = vpop.f32.mrf.mxu0 }
 0xbc8   : > { %v1713_v4 = vpop.f32.mrf.mxu0 }
 0xbca   : > { %v3515_v6 = vpop.f32.mrf.mxu0 }
 0xbcc   : > { %v1716_v7 = vpop.f32.mrf.mxu0 }
 0xbce   : > { %v3516_v8 = vpop.f32.mrf.mxu0 }
 0xbd4   : > { %v1821_v9 = vpop.f32.mrf.mxu0 }
 0xbd6   : > { %v3527_v11 = vpop.f32.mrf.mxu0 }
 0xbd8   : > { %v1824_v12 = vpop.f32.mrf.mxu0 }
 0xbda   : > { %v3528_v3 = vpop.f32.mrf.mxu0 }
 0xbdc   : > { %v1929_v13 = vpop.f32.mrf.mxu0 }
 0xbde   : > { %v3539_v10 = vpop.f32.mrf.mxu0 }
 0xbe0   : > { %v1932_v14 = vpop.f32.mrf.mxu0 }
 0xbe2   : > { %v3540_v15 = vpop.f32.mrf.mxu0 }
 0xc16   : > { %v2050_v16 = vpop.f32.mrf.mxu0 }
 0xc18   : > { %v3551_v18 = vpop.f32.mrf.mxu0 }
 0xc1a   : > { %v2053_v43 = vpop.f32.mrf.mxu0 }
 0xc1c   : > { %v3552_v21 = vpop.f32.mrf.mxu0 }
 0xc1e   : > { %v2158_v20 = vpop.f32.mrf.mxu0 }
 0xc1f   : > { %v3722_v24 = vpack.i.bf16 %v2158_v20, %v1713_v4 }
 0xc20   : > { %v3563_v25 = vpop.f32.mrf.mxu0 }
 0xc21   : > { %3723 = vrot.lane.b32.xlu1 %v3722_v24, %s3851_s19  ;;  %v3747_v24 = vld [vmem:[%s4564_s4 + $0x18] sm:$0xff]  }
 0xc22   : > { %v2161_v26 = vpop.f32.mrf.mxu0 }
 0xc24   : > { %v3564_v27 = vpop.f32.mrf.mxu0 }
 0xc26   : > { %v2266_v28 = vpop.f32.mrf.mxu0 }
 0xc27   : > { %v3727_v29 = vpack.i.bf16 %v2266_v28, %v1821_v9 }
 0xc28   : > { %v3575_v32 = vpop.f32.mrf.mxu0 }
 0xc29   : > { %3728 = vrot.lane.b32.xlu0 %v3727_v29, %s3852_s22  ;;  %v2486_v32 = vsub.s32 7, %v3969_v34 }
 0xc2a   : > { %v2269_v36 = vpop.f32.mrf.mxu0 }
 0xc2c   : > { %v3576_v33 = vpop.f32.mrf.mxu0 }
 0xc2e   : > { %v2374_v37 = vpop.f32.mrf.mxu0 }
 0xc2f   : > { %v3732_v38 = vpack.i.bf16 %v2374_v37, %v1929_v13  ;;  %v2487_v37 = vrot.slane %v3912_v0, %v2486_v32 }
 0xc30   : > { %v3587_v39 = vpop.f32.mrf.mxu0 }
 0xc31   : > { %3733 = vrot.lane.b32.xlu1 %v3732_v38, %s3853_s23  ;;  %v2493_v39 = vrot.slane %v3917_v1, %v351_v35  ;;  %v3750_v35 = vld [vmem:[%s4564_s4] sm:$0xff]  }
 0xc32   : > { %v2377_v30 = vpop.f32.mrf.mxu0 }
 0xc34   : > { %v3588_v40 = vpop.f32.mrf.mxu0 }
 0xc93   : > { %v3724_v41 = vpop.permute.xlu1 %3723 }
 0xc94   : > { %v3726_v42 = vunpack.i.h.bf16 %v3724_v41  ;;  %v3725_v45 = vunpack.i.l.bf16 %v3724_v41 }
 0xc96   : > { %v2392_v49 = vsel %vm418_vm4, %v2050_v16, %v3726_v42  ;;  %v1947_v46 = vsel %vm418_vm4, %v1604_v59, %v3725_v45  ;;  %v2399_v59 = vrot.slane %v3912_v0, %v2398_v62  ;;  %v3749_v0 = vld [vmem:[%s4564_s4 + $0x8] sm:$0xff]  }
 0xc9b   : > { %v3729_v31 = vpop.permute.xlu0 %3728 }
 0xc9c   : > { %v3731_v44 = vunpack.i.h.bf16 %v3729_v31  ;;  %v3730_v47 = vunpack.i.l.bf16 %v3729_v31 }
 0xc9e   : > { %v2393_v53 = vsel %vm869_vm6, %v2392_v49, %v3731_v44  ;;  %v1948_v55 = vsel %vm869_vm6, %v1947_v46, %v3730_v47  ;;  %v3748_v44 = vld [vmem:[%s4564_s4 + $0x10] sm:$0xff]   ;;  %v2504_v47 = vrot.slane %v3917_v1, %v1330_v17 }
 0xca3   : > { %v3734_v48 = vpop.permute.xlu1 %3733 }
 0xca4   : > { %v3736_v51 = vunpack.i.h.bf16 %v3734_v48  ;;  %v3735_v52 = vunpack.i.l.bf16 %v3734_v48 }
 0xca6   : > { %v2394_v56 = vsel %vm871_vm7, %v2393_v53, %v3736_v51  ;;  %v1949_v57 = vsel %vm871_vm7, %v1948_v55, %v3735_v52 }
 0xca7   : > { %v2395_v58 = vpack.c.bf16 %v2394_v56, %v1949_v57 }
 0xca9   : > { %3594 = vmatmul.mubr.msk.bf16.vlgmr.msra.gmra.mxu1 %vm365_vm3, %v2395_v58 }
 0xcaa   : > { %3613 = vmatprep.mubr.msk.bf16.mxu1 %vm3839_vm2, %v3838_v23  ;;  %3606 = vmatpush3.bf16.msra.mxu1 %v3747_v24 }
 0xcab   : > { %3607 = vmatprep.subr.bf16.mxu1 %v3838_v23 }
 0xcae   : > { %3608 = vmatpush3.bf16.msra.mxu1 %v3748_v44 }
 0xcaf   : > { %3609 = vmatprep.subr.bf16.mxu1 %v3838_v23 }
 0xcb2   : > { %3610 = vmatpush3.bf16.msra.mxu1 %v3749_v0 }
 0xcb3   : > { %3611 = vmatprep.subr.bf16.mxu1 %v3838_v23 }
 0xcb6   : > { %3612 = vmatpush3.bf16.msra.mxu1 %v3750_v35 }
 0xd69   : > { %v2449_v63 = vpop.f32.mrf.mxu1 }
 0xd6a   : > { %v2450_v2 = vadd.f32 %v2449_v63, %v2399_v59 }
 0xd6b   : > { %v3595_v4 = vpop.f32.mrf.mxu1 }
 0xd6c   : > { %v2456_v6 = vadd.f32 %v2450_v2, %v4212_v60 }
 0xd6d   : > { %v2452_v7 = vpop.f32.mrf.mxu1 }
 0xd6e   : > { %v2453_v8 = vadd.f32 %v2452_v7, %v2399_v59  ;;  %v2458_v9 = vsel %vm365_vm3, %v2456_v6, 0.0 }
 0xd6f   : > { %2459 = vadd.xlane.f32.xlu0 %v2458_v9  ;;  %v3596_v11 = vpop.f32.mrf.mxu1 }
 0xd70   : > { %v2457_v12 = vadd.f32 %v2453_v8, %v4214_v61  ;;  %v3745_v61 = vld [vmem:[%s4563_s3 + $0x4c] ss:$28 sps:$4 sm:$0xff]  }
 0xd71   : > { %3598 = vmatpush3.bf16.msra.mxu0 %v3745_v61 }
 0xd72   : > { %v2461_v3 = vsel %vm365_vm3, %v2457_v12, 0.0  ;;  %3599 = vmatprep.subr.bf16.mxu0 %v3838_v23  ;;  %v2575_v23 = vrot.slane %v3917_v1, %v1419_v50 }
 0xd73   : > { %2462 = vadd.xlane.f32.xlu1 %v2461_v3 }
 0xd75   : > { %3600 = vmatpush3.bf16.msra.mxu0 %v3746_v22  ;;  %v2676_v22 = vrot.slane %v3917_v1, %v1425_v54 }
 0xdf8   : > { %v2460_v13 = vpop.xlane.xlu0 %2459 }
 0xdf9   : > { %v2464_v10 = vmul.f32 0.03125, %v2460_v13 }
 0xdfb   : > { %v2466_v14 = vsub.f32 %v2456_v6, %v2464_v10 }
 0xdfc   : > { %v2463_v15 = vpop.xlane.xlu1 %2462 }
 0xdfd   : > { %v2465_v16 = vmul.f32 0.03125, %v2463_v15  ;;  %v2468_v18 = vmul.f32 %v2466_v14, %v2466_v14 }
 0xdff   : > { %v2467_v43 = vsub.f32 %v2457_v12, %v2465_v16  ;;  %v2470_v60 = vsel %vm365_vm3, %v2468_v18, 0.0 }
 0xe00   : > { %2471 = vadd.xlane.f32.xlu0 %v2470_v60 }
 0xe01   : > { %v2469_v21 = vmul.f32 %v2467_v43, %v2467_v43 }
 0xe03   : > { %v2473_v20 = vsel %vm365_vm3, %v2469_v21, 0.0 }
 0xe04   : > { %2474 = vadd.xlane.f32.xlu0 %v2473_v20 }
 0xe89   : > { %v2472_v25 = vpop.xlane.xlu0 %2471 }
 0xe8a   : > { %v2476_v26 = vmul.f32 0.03125, %v2472_v25  ;;  %v2682_v25 = vrot.slane %v3917_v1, %v1436_v5 }
 0xe8c   : > { %v2478_v27 = vadd.f32 1e-05, %v2476_v26 }
 0xe8d   : > { %v2475_v19 = vpop.xlane.xlu0 %2474 }
 0xe8e   : > { %3819 = vrsqrt.f32 %v2478_v27  ;;  %v2477_v28 = vmul.f32 0.03125, %v2475_v19 }
 0xe90   : > { %v2479_v29 = vadd.f32 1e-05, %v2477_v28 }
 0xe92   : > { %3821 = vrsqrt.f32 %v2479_v29 }
 0xe9b   : > { %v3820_v36 = vpop.eup %3819 }
 0xe9c   : > { %v2482_v33 = vmul.f32 %v3820_v36, %v2466_v14 }
 0xe9e   : > { %v2488_v40 = vmul.f32 %v2487_v37, %v2482_v33 }
 0xe9f   : > { %v3822_v38 = vpop.eup %3821 }
 0xea0   : > { %v2483_v30 = vmul.f32 %v3822_v38, %v2467_v43  ;;  %v2494_v31 = vadd.f32 %v2493_v39, %v2488_v40 }
 0xea2   : > { %v2489_v41 = vmul.f32 %v2487_v37, %v2483_v30 }
 0xea4   : > { %v2495_v42 = vadd.f32 %v2493_v39, %v2489_v41 }
 0xea6   : > { %v2496_v45 = vpack.c.bf16 %v2495_v42, %v2494_v31 }
 0xea8   : > { %3602 = vmatmul.mubr.msk.bf16.vlgmr.msra.gmra.mxu0 %vm365_vm3, %v2496_v45 }
 0xf68   : > { %v2554_v48 = vpop.f32.mrf.mxu0 }
 0xf69   : > { %v2555_v46 = vadd.f32 %v2554_v48, %v2504_v47 }
 0xf6a   : > { %v3603_v49 = vpop.f32.mrf.mxu0 }
 0xf6b   : > { %v2561_v55 = vmax.f32 %v2555_v46, 0.0 }
 0xf6c   : > { %v2557_v51 = vpop.f32.mrf.mxu0 }
 0xf6d   : > { %v2558_v52 = vadd.f32 %v2557_v51, %v2504_v47 }
 0xf6e   : > { %v3604_v53 = vpop.f32.mrf.mxu0 }
 0xf6f   : > { %v2562_v56 = vmax.f32 %v2558_v52, 0.0 }
 0xf71   : > { %v2563_v57 = vpack.c.bf16 %v2562_v56, %v2561_v55 }
 0xf73   : > { %3614 = vmatmul.mubr.msk.bf16.vlgmr.msra.gmra.mxu1 %vm2600_vm8, %v2563_v57 }
0x1033   : > { %v2638_v58 = vpop.f32.mrf.mxu1 }
0x1034   : > { %v2639_v62 = vadd.f32 %v2638_v58, %v2575_v23 }
0x1035   : > { %v3615_v59 = vpop.f32.mrf.mxu1 }
0x1036   : > { %v2645_v17 = vadd.f32 %v2639_v62, %v2494_v31 }
0x1037   : > { %v2641_v63 = vpop.f32.mrf.mxu1 }
0x1038   : > { %v2642_v2 = vadd.f32 %v2641_v63, %v2575_v23  ;;  %v2647_v4 = vsel %vm365_vm3, %v2645_v17, 0.0 }
0x1039   : > { %2648 = vadd.xlane.f32.xlu1 %v2647_v4  ;;  %v3616_v6 = vpop.f32.mrf.mxu1 }
0x103a   : > { %v2646_v7 = vadd.f32 %v2642_v2, %v2495_v42 }
0x103c   : > { %v2650_v8 = vsel %vm365_vm3, %v2646_v7, 0.0 }
0x103d   : > { %2651 = vadd.xlane.f32.xlu0 %v2650_v8 }
0x10c2   : > { %v2649_v9 = vpop.xlane.xlu1 %2648 }
0x10c3   : > { %v2653_v11 = vmul.f32 0.03125, %v2649_v9 }
0x10c5   : > { %v2655_v12 = vsub.f32 %v2645_v17, %v2653_v11 }
0x10c6   : > { %v2652_v3 = vpop.xlane.xlu0 %2651 }
0x10c7   : > { %v2654_v13 = vmul.f32 0.03125, %v2652_v3  ;;  %v2657_v50 = vmul.f32 %v2655_v12, %v2655_v12 }
0x10c9   : > { %v2656_v10 = vsub.f32 %v2646_v7, %v2654_v13  ;;  %v2659_v14 = vsel %vm365_vm3, %v2657_v50, 0.0 }
0x10ca   : > { %2660 = vadd.xlane.f32.xlu1 %v2659_v14 }
0x10cb   : > { %v2658_v15 = vmul.f32 %v2656_v10, %v2656_v10 }
0x10cd   : > { %v2662_v16 = vsel %vm365_vm3, %v2658_v15, 0.0 }
0x10ce   : > { %2663 = vadd.xlane.f32.xlu0 %v2662_v16 }
0x1153   : > { %v2661_v18 = vpop.xlane.xlu1 %2660 }
0x1154   : > { %v2665_v43 = vmul.f32 0.03125, %v2661_v18 }
0x1156   : > { %v2667_v60 = vadd.f32 1e-05, %v2665_v43 }
0x1157   : > { %v2664_v21 = vpop.xlane.xlu0 %2663 }
0x1158   : > { %3823 = vrsqrt.f32 %v2667_v60  ;;  %v2666_v20 = vmul.f32 0.03125, %v2664_v21 }
0x115a   : > { %v2668_v61 = vadd.f32 1e-05, %v2666_v20 }
0x115c   : > { %3825 = vrsqrt.f32 %v2668_v61 }
0x1165   : > { %v3824_v24 = vpop.eup %3823 }
0x1166   : > { %v2671_v26 = vmul.f32 %v3824_v24, %v2655_v12 }
0x1168   : > { %v2677_v27 = vmul.f32 %v2676_v22, %v2671_v26 }
0x1169   : > { %v3826_v19 = vpop.eup %3825 }
0x116a   : > { %v2683_v28 = vadd.f32 %v2682_v25, %v2677_v27  ;;  %v2672_v29 = vmul.f32 %v3826_v19, %v2656_v10 }
0x116c   : > { %2685 = vst.msk [vmem:[#allocation2] sm:$0xff] %vm365_vm3, %v2683_v28  ;;  %v2678_v32 = vmul.f32 %v2676_v22, %v2672_v29  ;;  %2690 = sbr.rel (%p3244_p4) target bundleno = 4926 (0x133e), region = 52 }
0x116e   : > { %v2684_v36 = vadd.f32 %v2682_v25, %v2678_v32 }
0x1170   : > { %2686 = vst.msk [vmem:[#allocation2 + $0x8] sm:$0xff] %vm365_vm3, %v2684_v36 }
0x1171   : > { %v2758_v54 = vld [vmem:[%s4562_s2] sm:$0xff]  ;;  %v2759_v5 = vld [vmem:[%s4562_s2 + $0x8] sm:$0xff]  ;;  %v2760_v33 = vld [vmem:[%s4562_s2 + $0x10] sm:$0xff]  ;;  %v3854_v39 = vmov 0.0   ;;  %vm3857_vm9 = vmmov 0   ;;  %v2691_v42 = vpack.c.bf16 %v2684_v36, %v2683_v28  ;;  %v2698_v23 = vsub.s32 5, %v3969_v34 }
0x1172   : > { %v2762_v37 = vpack.c.bf16 %v2759_v5, %v2758_v54  ;;  %v2761_v38 = vld [vmem:[%s4562_s2 + $0x18] sm:$0xff]  ;;  %3617 = vmatprep.subr.bf16.mxu0 %v3854_v39  ;;  %3625 = vmatprep.subr.bf16.mxu1 %v3854_v39  ;;  %v3827_v30 = vld [vmem:[%s4563_s3 + $0x50] ss:$28 sps:$4 sm:$0xff]   ;;  %vm2957_vm10 = vcmask 392192  }
0x1173   : > { %v2763_v40 = vpack.c.bf16 %v2761_v38, %v2760_v33  ;;  %3618 = vmatpush3.bf16.msra.mxu0 %v3827_v30  ;;  %v3828_v31 = vld [vmem:[%s4563_s3 + $0x18] ss:$28 sps:$4 sm:$0xff]   ;;  %3621 = vmatprep.mubr.msk.bf16.mxu0 %vm3857_vm9, %v3854_v39  ;;  %v2962_v53 = vrot.slane %v2691_v42, 4  ;;  %v2699_v58 = vrot.slane %v3917_v1, %v2698_v23 }
0x1174   : > { %2808 = vrot.lane.b32.xlu0 %v2762_v37, %s3855_s10  ;;  %2898 = vrot.lane.b32.xlu1 %v2762_v37, %s3856_s11  ;;  %v2765_v41 = vsel %vm365_vm3, %v2762_v37, 0 }
0x1175   : > { %3626 = vmatpush3.bf16.xpose.msra.mxu1 %v2765_v41  ;;  %3619 = vmatprep.subr.bf16.mxu0 %v3854_v39  ;;  %v2967_v49 = vsel %vm365_vm3, %v2763_v40, 0 }
0x1176   : > { %3627 = vmatprep.mubr.msk.bf16.mxu1 %vm3857_vm9, %v3854_v39  ;;  %3637 = vmatprep.subr.bf16.mxu1 %v3854_v39 }
0x1177   : > { %3620 = vmatpush3.bf16.msra.mxu0 %v3828_v31 }
0x1178   : > { %2853 = vrot.lane.b32.xlu0 %v2762_v37, %s3858_s15  ;;  %3010 = vrot.lane.b32.xlu1 %v2763_v40, %s3855_s10 }
0x1179   : > { %3631 = vmatprep.subr.bf16.mxu0 %v3854_v39 }
0x117a   : > { %3622 = vmatmul.mubr.msk.bf16.vlgmr.msra.gmra.mxu0 %vm365_vm3, %v2691_v42 }
0x117b   : > { %3633 = vmatprep.mubr.msk.bf16.mxu0 %vm3857_vm9, %v3854_v39 }
0x117c   : > { %3055 = vrot.lane.b32.xlu0 %v2763_v40, %s3858_s15  ;;  %3100 = vrot.lane.b32.xlu1 %v2763_v40, %s3856_s11 }
0x117d   : > { %3628 = vmatmul.mubr.msk.bf16.vlgmr.msra.gmra.mxu1 %vm365_vm3, %v2691_v42 }
0x117e   : > { %3639 = vmatprep.mubr.msk.bf16.mxu1 %vm3857_vm9, %v3854_v39 }
0x11e6   : > { %v2809_v45 = vpop.permute.xlu0 %2808  ;;  %v2899_v35 = vpop.permute.xlu1 %2898 }
0x11e7   : > { %v2811_v44 = vsel %vm365_vm3, %v2809_v45, 0  ;;  %v2901_v48 = vsel %vm365_vm3, %v2899_v35, 0 }
0x11e8   : > { %3632 = vmatpush3.bf16.xpose.msra.mxu0 %v2811_v44 }
0x11e9   : > { %3643 = vmatprep.subr.bf16.mxu0 %v3854_v39 }
0x11ea   : > { %v2854_v0 = vpop.permute.xlu0 %2853  ;;  %v3011_v46 = vpop.permute.xlu1 %3010 }
0x11eb   : > { %v2856_v47 = vsel %vm365_vm3, %v2854_v0, 0  ;;  %v3013_v51 = vsel %vm365_vm3, %v3011_v46, 0 }
0x11ec   : > { %3638 = vmatpush3.bf16.xpose.msra.mxu1 %v2856_v47 }
0x11ed   : > { %3649 = vmatprep.subr.bf16.mxu1 %v3854_v39 }
0x11ee   : > { %v3056_v52 = vpop.permute.xlu0 %3055  ;;  %v3101_v56 = vpop.permute.xlu1 %3100 }
0x11ef   : > { %3634 = vmatmul.mubr.msk.bf16.vlgmr.msra.gmra.mxu0 %vm365_vm3, %v2691_v42  ;;  %v3058_v55 = vsel %vm365_vm3, %v3056_v52, 0  ;;  %v3103_v57 = vsel %vm365_vm3, %v3101_v56, 0 }
0x11f0   : > { %3644 = vmatpush3.bf16.xpose.msra.mxu0 %v2901_v48  ;;  %3645 = vmatprep.mubr.msk.bf16.mxu0 %vm3857_vm9, %v3854_v39 }
0x11f1   : > { %3655 = vmatprep.subr.bf16.mxu0 %v3854_v39 }
0x11f3   : > { %3640 = vmatmul.mubr.msk.bf16.vlgmr.msra.gmra.mxu1 %vm365_vm3, %v2691_v42 }
0x11f4   : > { %3650 = vmatpush3.bf16.xpose.msra.mxu1 %v2967_v49  ;;  %3651 = vmatprep.mubr.msk.bf16.mxu1 %vm3857_vm9, %v3854_v39 }
0x11f5   : > { %3661 = vmatprep.subr.bf16.mxu1 %v3854_v39 }
0x11f7   : > { %3646 = vmatmul.mubr.msk.bf16.vlgmr.msra.gmra.mxu0 %vm365_vm3, %v2691_v42 }
0x11f8   : > { %3656 = vmatpush3.bf16.xpose.msra.mxu0 %v3013_v51  ;;  %3657 = vmatprep.mubr.msk.bf16.mxu0 %vm3857_vm9, %v3854_v39 }
0x11f9   : > { %3667 = vmatprep.subr.bf16.mxu0 %v3854_v39 }
0x11fb   : > { %3652 = vmatmul.mubr.msk.bf16.vlgmr.msra.gmra.mxu1 %vm365_vm3, %v2962_v53 }
0x11fc   : > { %3662 = vmatpush3.bf16.xpose.msra.mxu1 %v3058_v55  ;;  %3663 = vmatprep.mubr.msk.bf16.mxu1 %vm3857_vm9, %v3854_v39 }
0x11ff   : > { %3658 = vmatmul.mubr.msk.bf16.vlgmr.msra.gmra.mxu0 %vm365_vm3, %v2962_v53 }
0x1200   : > { %3668 = vmatpush3.bf16.xpose.msra.mxu0 %v3103_v57  ;;  %3669 = vmatprep.mubr.msk.bf16.mxu0 %vm3857_vm9, %v3854_v39 }
0x1203   : > { %3664 = vmatmul.mubr.msk.bf16.vlgmr.msra.gmra.mxu1 %vm365_vm3, %v2962_v53 }
0x1207   : > { %3670 = vmatmul.mubr.msk.bf16.vlgmr.msra.gmra.mxu0 %vm365_vm3, %v2962_v53 }
0x123a   : > { %v2749_v62 = vpop.f32.mrf.mxu0 }
0x123b   : > { %v2750_v17 = vadd.f32 %v2749_v62, %v2699_v58 }
0x123c   : > { %v3623_v63 = vpop.f32.mrf.mxu0 }
0x123d   : > { %v2801_v59 = vpop.f32.mrf.mxu1  ;;  %2756 = vst [vmem:[%s4566_s6] sm:$0xff] %v2750_v17 }
0x123e   : > { %v2752_v4 = vpop.f32.mrf.mxu0 }
0x123f   : > { %v3629_v2 = vpop.f32.mrf.mxu1  ;;  %v2753_v7 = vadd.f32 %v2752_v4, %v2699_v58 }
0x1240   : > { %v3624_v8 = vpop.f32.mrf.mxu0 }
0x1241   : > { %v2804_v6 = vpop.f32.mrf.mxu1  ;;  %2757 = vst [vmem:[%s4566_s6 + $0x8] sm:$0xff] %v2753_v7 }
0x1243   : > { %v3630_v9 = vpop.f32.mrf.mxu1 }
0x12af   : > { %v2847_v34 = vpop.f32.mrf.mxu0 }
0x12b0   : > { %2944 = vrot.lane.b32.xlu0 %v2847_v34, %s3859_s20 }
0x12b1   : > { %v3635_v1 = vpop.f32.mrf.mxu0 }
0x12b3   : > { %v2850_v11 = vpop.f32.mrf.mxu0  ;;  %v2892_v12 = vpop.f32.mrf.mxu1 }
0x12b4   : > { %2948 = vrot.lane.b32.xlu0 %v2892_v12, %s3856_s11 }
0x12b5   : > { %v3636_v3 = vpop.f32.mrf.mxu0  ;;  %v3641_v13 = vpop.f32.mrf.mxu1 }
0x12b7   : > { %v2895_v50 = vpop.f32.mrf.mxu1  ;;  %v2937_v10 = vpop.f32.mrf.mxu0 }
0x12b8   : > { %2952 = vrot.lane.b32.xlu0 %v2937_v10, %s3860_s21 }
0x12b9   : > { %v3642_v14 = vpop.f32.mrf.mxu1  ;;  %v3647_v15 = vpop.f32.mrf.mxu0 }
0x12bb   : > { %v2940_v16 = vpop.f32.mrf.mxu0  ;;  %v3003_v18 = vpop.f32.mrf.mxu1 }
0x12bd   : > { %v3648_v43 = vpop.f32.mrf.mxu0  ;;  %v3653_v60 = vpop.f32.mrf.mxu1 }
0x12bf   : > { %v3006_v21 = vpop.f32.mrf.mxu1  ;;  %v3049_v20 = vpop.f32.mrf.mxu0 }
0x12c0   : > { %3146 = vrot.lane.b32.xlu1 %v3049_v20, %s3859_s20 }
0x12c1   : > { %v3654_v61 = vpop.f32.mrf.mxu1  ;;  %v3659_v22 = vpop.f32.mrf.mxu0 }
0x12c3   : > { %v3052_v24 = vpop.f32.mrf.mxu0  ;;  %v3094_v25 = vpop.f32.mrf.mxu1 }
0x12c4   : > { %3150 = vrot.lane.b32.xlu1 %v3094_v25, %s3856_s11 }
0x12c5   : > { %v3660_v26 = vpop.f32.mrf.mxu0  ;;  %v3665_v27 = vpop.f32.mrf.mxu1 }
0x12c7   : > { %v3097_v19 = vpop.f32.mrf.mxu1  ;;  %v3139_v28 = vpop.f32.mrf.mxu0 }
0x12c8   : > { %3154 = vrot.lane.b32.xlu1 %v3139_v28, %s3860_s21 }
0x12c9   : > { %v3666_v29 = vpop.f32.mrf.mxu1  ;;  %v3671_v32 = vpop.f32.mrf.mxu0 }
0x12cb   : > { %v3142_v36 = vpop.f32.mrf.mxu0 }
0x12cd   : > { %v3672_v54 = vpop.f32.mrf.mxu0 }
0x1322   : > { %v2945_v5 = vpop.permute.xlu0 %2944 }
0x1323   : > { %v2955_v37 = vsel %vm869_vm6, %v2801_v59, %v2945_v5 }
0x1326   : > { %v2949_v33 = vpop.permute.xlu0 %2948 }
0x1327   : > { %v2956_v38 = vsel %vm365_vm3, %v2955_v37, %v2949_v33 }
0x132a   : > { %v2953_v39 = vpop.permute.xlu0 %2952 }
0x132b   : > { %v2958_v30 = vsel %vm2957_vm10, %v2956_v38, %v2953_v39 }
0x132c   : > { %v2959_v40 = vsel %vm2600_vm8, %v2958_v30, 0.0 }
0x132d   : > { %2960 = vst [vmem:[%s4567_s7] sm:$0xff] %v2959_v40 }
0x1332   : > { %v3147_v41 = vpop.permute.xlu1 %3146 }
0x1333   : > { %v3157_v42 = vsel %vm869_vm6, %v3003_v18, %v3147_v41 }
0x1336   : > { %v3151_v31 = vpop.permute.xlu1 %3150 }
0x1337   : > { %v3158_v45 = vsel %vm365_vm3, %v3157_v42, %v3151_v31 }
0x133a   : > { %v3155_v44 = vpop.permute.xlu1 %3154 }
0x133b   : > { %v3159_v0 = vsel %vm2957_vm10, %v3158_v45, %v3155_v44 }
0x133c   : > { %v3160_v35 = vsel %vm2600_vm8, %v3159_v0, 0.0 }
0x133d   : > { %3161 = vst [vmem:[%s4567_s7 + $0x8] sm:$0xff] %v3160_v35 }
0x133e PF: > { %s18_s24 = sadd.s32 1, %s3835_s24  }
0x133f   : > { %p15_p5 = scmp.ge.s32.totalorder %s18_s24, 4  }
0x1341   :  { %17 = sbr.rel (!%p15_p5) target bundleno = 1 (0x1), region = 83 }

</bundles_post_ra>
